<compile_context>
chip_gen: v7x
topology: tpu7x:2x2x1
jax: 0.10.0
libtpu: 0.0.40
codegen_flags: <defaults>
</compile_context>

<pallas_src>
import functools
import math

import jax
import jax.numpy as jnp
from jax.experimental import pallas as pl
from jax.experimental.pallas import tpu as pltpu

MASK_BIAS = 1e9  # additive mask bias magnitude; (mask - 1) * MASK_BIAS


def _layernorm(x, g, b, eps):
    """LayerNorm with independent sum / sum-of-squares reductions."""
    inv_d = 1.0 / x.shape[-1]
    mu = jnp.sum(x, axis=-1, keepdims=True) * inv_d
    ms = jnp.sum(x * x, axis=-1, keepdims=True) * inv_d
    var = jnp.maximum(ms - mu * mu, 0.0)
    return (x - mu) * jax.lax.rsqrt(var + eps) * g + b


def _mha_blocked(q, k, v, bias, wo, bo, aw_ref, n_heads):
    """Scaled dot-product MHA over a block of batch elements.

    q:    (block_b*Lq, D) f32, already scaled by 1/sqrt(dk)
    k, v: (block_b*Lk, D) f32 (already projected)
    bias: (block_b, Lq, Lk) f32 additive mask bias (0 = attend, -1e9 = masked)
    wo:   (D, D) bf16 output projection, bo: (1, D) f32
    aw_ref: bf16 output ref of block shape (block_b, H, Lq, Lk)

    Per (batch, head) everything is a 128-aligned static 2-D slice, so there
    are no head split/merge relayouts; the head merge is folded into per-head
    sublane slices of wo.  Returns the (block_b*Lq, D) f32 attention output.
    """
    block_b, Lq, Lk = bias.shape
    D = q.shape[-1]
    dk = D // n_heads

    qb = q.astype(jnp.bfloat16)
    kb = k.astype(jnp.bfloat16)
    vb = v.astype(jnp.bfloat16)

    ctx_rows = []
    for b in range(block_b):
        q_b = qb[b * Lq:(b + 1) * Lq]
        k_b = kb[b * Lk:(b + 1) * Lk]
        v_b = vb[b * Lk:(b + 1) * Lk]
        bias_b = bias[b]
        ctx_b = None
        for h in range(n_heads):
            lo, hi = h * dk, (h + 1) * dk
            s = jnp.einsum('qd,kd->qk', q_b[:, lo:hi], k_b[:, lo:hi],
                           preferred_element_type=jnp.float32) + bias_b
            m = jnp.max(s, axis=-1, keepdims=True)
            p = jnp.exp(s - m)
            denom = jnp.sum(p, axis=-1, keepdims=True)
            # approx reciprocal error << bf16 rounding of the stored maps
            aw = (p * pl.reciprocal(denom, approx=True)).astype(jnp.bfloat16)
            aw_ref[b, h, :, :] = aw                      # bf16 attention map
            cv = jnp.dot(aw, v_b[:, lo:hi],
                         preferred_element_type=jnp.float32)      # (Lq, dk)
            part = jnp.dot(cv.astype(jnp.bfloat16), wo[lo:hi, :],
                           preferred_element_type=jnp.float32)    # (Lq, D)
            ctx_b = part if ctx_b is None else ctx_b + part
        ctx_rows.append(ctx_b)

    ctx = ctx_rows[0] if block_b == 1 else jnp.concatenate(ctx_rows, axis=0)
    return ctx + bo


def decoder_block_kernel(
    ys_ref, yym_ref, xs_ref, xym_ref,
    ln1g_ref, ln1b_ref,
    sa_wqkv_ref, sa_bqkv_ref, sa_wo_ref, sa_bo_ref,
    ln2g_ref, ln2b_ref,
    ca_wq_ref, ca_bq_ref, ca_wkv_ref, ca_bkv_ref, ca_wo_ref, ca_bo_ref,
    ln3g_ref, ln3b_ref,
    w1_ref, b1_ref, w2_ref, b2_ref,
    out_ref, yyaws_ref, xyaws_ref,
    *, n_heads, eps,
):
    D = out_ref.shape[-1]
    scale = jnp.float32(1.0 / math.sqrt(D // n_heads))

    ys = ys_ref[...].astype(jnp.float32)          # (block_b*L, D)

    # ---- self-attention sublayer -------------------------------------------
    residual = ys
    ysn = _layernorm(ys, ln1g_ref[...], ln1b_ref[...], eps)
    qkv = jnp.dot(ysn.astype(jnp.bfloat16), sa_wqkv_ref[...],
                  preferred_element_type=jnp.float32) + sa_bqkv_ref[...]
    q = qkv[:, :D] * scale                        # fold 1/sqrt(dk) into q
    k = qkv[:, D:2 * D]
    v = qkv[:, 2 * D:]
    bias_self = (yym_ref[...].astype(jnp.float32) - 1.0) * MASK_BIAS
    sa_out = _mha_blocked(q, k, v, bias_self, sa_wo_ref[...], sa_bo_ref[...],
                          yyaws_ref, n_heads)
    out = sa_out + residual                       # dropout is identity in eval

    # ---- source-target attention sublayer ----------------------------------
    residual = out
    outn = _layernorm(out, ln2g_ref[...], ln2b_ref[...], eps)
    qc = (jnp.dot(outn.astype(jnp.bfloat16), ca_wq_ref[...],
                  preferred_element_type=jnp.float32) + ca_bq_ref[...]) * scale
    kv = jnp.dot(xs_ref[...], ca_wkv_ref[...],            # xs is already bf16
                 preferred_element_type=jnp.float32) + ca_bkv_ref[...]
    bias_cross = (xym_ref[...].astype(jnp.float32) - 1.0) * MASK_BIAS
    ca_out = _mha_blocked(qc, kv[:, :D], kv[:, D:], bias_cross,
                          ca_wo_ref[...], ca_bo_ref[...], xyaws_ref, n_heads)
    out = ca_out + residual

    # ---- position-wise feed-forward sublayer -------------------------------
    residual = out
    outn = _layernorm(out, ln3g_ref[...], ln3b_ref[...], eps)
    h1 = jnp.maximum(
        jnp.dot(outn.astype(jnp.bfloat16), w1_ref[...],
                preferred_element_type=jnp.float32) + b1_ref[...], 0.0)  # relu
    ff = jnp.dot(h1.astype(jnp.bfloat16), w2_ref[...],
                 preferred_element_type=jnp.float32) + b2_ref[...]
    out_ref[...] = ff + residual


def _pick_block_b(B, L, target_rows=256):
    """Largest divisor of B giving ~target_rows rows/step but >=2 grid steps."""
    cap = max(1, target_rows // max(L, 1))
    if B >= 2:
        cap = min(cap, B // 2)     # keep >=2 parallel steps (v7x: 2 TCs/chip)
    cap = max(1, min(cap, B))
    for bb in range(cap, 0, -1):
        if B % bb == 0:
            return bb
    return 1


def transformer_decoder_block(ys, yy_mask, xs, xy_mask, params, *,
                              n_heads, eps=1e-12, block_b=None):
    """One grid step processes `block_b` batch elements; weights stay resident."""
    B, L, D = ys.shape
    T = xs.shape[1]
    H = n_heads
    if block_b is None:
        block_b = _pick_block_b(B, L)
    assert B % block_b == 0
    nb = B // block_b

    # Flatten batch x seq into rows outside the kernel (free metadata reshape),
    # so every projection / FFN matmul sees (block_b*L, D) rows.
    ys2 = ys.reshape(B * L, D)
    xs2 = xs.reshape(B * T, D)

    def rows_spec(rows, width):
        return pl.BlockSpec((rows, width), lambda b: (b, 0))

    def batch_spec(shape):
        nd = len(shape)
        return pl.BlockSpec(shape, lambda b: (b,) + (0,) * (nd - 1))

    def full_spec(shape):
        nd = len(shape)
        return pl.BlockSpec(shape, lambda b: (0,) * nd)

    in_specs = [
        rows_spec(block_b * L, D),        # ys  (flattened rows, bf16)
        batch_spec((block_b, L, L)),      # yy_mask (bf16 {0,1})
        rows_spec(block_b * T, D),        # xs  (flattened rows, bf16)
        batch_spec((block_b, L, T)),      # xy_mask (bf16 {0,1})
    ] + [full_spec(p.shape) for p in params]

    out_shape = (
        jax.ShapeDtypeStruct((B * L, D), jnp.float32),
        jax.ShapeDtypeStruct((B, H, L, L), jnp.bfloat16),   # bf16 maps: half
        jax.ShapeDtypeStruct((B, H, L, T), jnp.bfloat16),   # the HBM writeback
    )
    out_specs = [
        rows_spec(block_b * L, D),
        batch_spec((block_b, H, L, L)),
        batch_spec((block_b, H, L, T)),
    ]

    kernel = functools.partial(decoder_block_kernel, n_heads=n_heads, eps=eps)

    out2, yy_aws, xy_aws = pl.pallas_call(
        kernel,
        out_shape=out_shape,
        grid_spec=pltpu.PrefetchScalarGridSpec(
            num_scalar_prefetch=0,
            grid=(nb,),
            in_specs=in_specs,
            out_specs=out_specs,
        ),
        compiler_params=pltpu.CompilerParams(
            dimension_semantics=("parallel",),
            vmem_limit_bytes=48 * 1024 * 1024,   # headroom on v7x (64 MiB VMEM)
        ),
    )(ys2, yy_mask, xs2, xy_mask, *params)

    return out2.reshape(B, L, D), yy_aws, xy_aws


def make_params(key, d_model, d_ff):
    """Deterministic synthetic parameters (per-Linear Xavier scale).

    Weight matrices are stored bf16 [in, out]; biases / LN params f32.
    Q/K/V (self) and K/V (cross) projections are fused along the out dim.
    """
    D, F = d_model, d_ff
    f32, bf16 = jnp.float32, jnp.bfloat16
    ks = jax.random.split(key, 12)
    it = iter(ks)

    def w(shape, k):
        fan_in, fan_out = shape
        limit = math.sqrt(6.0 / (fan_in + fan_out))
        return jax.random.uniform(k, shape, f32, -limit, limit)

    params = []
    # norm1 gamma, beta
    params += [jnp.ones((1, D), f32), jnp.zeros((1, D), f32)]
    # self-attn fused Wqkv (D, 3D), bqkv, Wo, bo
    sa_wqkv = jnp.concatenate([w((D, D), next(it)) for _ in range(3)],
                              axis=1).astype(bf16)
    params += [sa_wqkv, jnp.zeros((1, 3 * D), f32),
               w((D, D), next(it)).astype(bf16), jnp.zeros((1, D), f32)]
    # norm2 gamma, beta
    params += [jnp.ones((1, D), f32), jnp.zeros((1, D), f32)]
    # cross-attn Wq, bq, fused Wkv (D, 2D), bkv, Wo, bo
    params += [w((D, D), next(it)).astype(bf16), jnp.zeros((1, D), f32)]
    ca_wkv = jnp.concatenate([w((D, D), next(it)) for _ in range(2)],
                             axis=1).astype(bf16)
    params += [ca_wkv, jnp.zeros((1, 2 * D), f32),
               w((D, D), next(it)).astype(bf16), jnp.zeros((1, D), f32)]
    # norm3 gamma, beta
    params += [jnp.ones((1, D), f32), jnp.zeros((1, D), f32)]
    # FFN w1, b1, w2, b2
    params += [w((D, F), next(it)).astype(bf16), jnp.zeros((1, F), f32),
               w((F, D), next(it)).astype(bf16), jnp.zeros((1, D), f32)]
    return params


if __name__ == "__main__":
    B, L, T = 4, 16, 32       # batch, target length, source (encoder) length
    D, F, H = 256, 512, 2     # d_model, d_ff, n_heads (d_k = 128, lane-aligned)

    root = jax.random.PRNGKey(0)
    k_ys, k_xs, k_params = jax.random.split(root, 3)

    # Activations and {0,1} masks in bf16 at the kernel boundary (half the DMA).
    ys = jax.random.normal(k_ys, (B, L, D), jnp.float32).astype(jnp.bfloat16)
    xs = jax.random.normal(k_xs, (B, T, D), jnp.float32).astype(jnp.bfloat16)

    causal = jnp.tril(jnp.ones((L, L), jnp.float32))
    yy_mask = jnp.broadcast_to(causal, (B, L, L)).astype(jnp.bfloat16)
    xy_mask = jnp.ones((B, L, T), jnp.bfloat16)

    params = make_params(k_params, D, F)

    out, yy_aws, xy_aws = transformer_decoder_block(
        ys, yy_mask, xs, xy_mask, params, n_heads=H, eps=1e-12)
    jax.block_until_ready((out, yy_aws, xy_aws))

    assert out.shape == (B, L, D) and out.dtype == jnp.float32
    assert yy_aws.shape == (B, H, L, L) and yy_aws.dtype == jnp.bfloat16
    assert xy_aws.shape == (B, H, L, T) and xy_aws.dtype == jnp.bfloat16
    assert bool(jnp.all(jnp.isfinite(out)))

    # TODO(synk): dropout layers, stochastic residual "death_rate" branch,
    # MoChA / TransformerXL / lm_fusion variants and the incremental-decoding
    # `cache` path are training-/config-only and not part of this eval-mode
    # scaled_dot forward path.
    print("KERNEL_OK")
</pallas_src>

<mosaic_0001>
module attributes {stable_mosaic.version = 11 : i64} {
  func.func @decoder_block_kernel(%arg0: i32, %arg1: memref<32x256xbf16, #tpu.memory_space<vmem>>, %arg2: memref<2x16x16xbf16, #tpu.memory_space<vmem>>, %arg3: memref<64x256xbf16, #tpu.memory_space<vmem>>, %arg4: memref<2x16x32xbf16, #tpu.memory_space<vmem>>, %arg5: memref<1x256xf32, #tpu.memory_space<vmem>>, %arg6: memref<1x256xf32, #tpu.memory_space<vmem>>, %arg7: memref<256x768xbf16, #tpu.memory_space<vmem>>, %arg8: memref<1x768xf32, #tpu.memory_space<vmem>>, %arg9: memref<256x256xbf16, #tpu.memory_space<vmem>>, %arg10: memref<1x256xf32, #tpu.memory_space<vmem>>, %arg11: memref<1x256xf32, #tpu.memory_space<vmem>>, %arg12: memref<1x256xf32, #tpu.memory_space<vmem>>, %arg13: memref<256x256xbf16, #tpu.memory_space<vmem>>, %arg14: memref<1x256xf32, #tpu.memory_space<vmem>>, %arg15: memref<256x512xbf16, #tpu.memory_space<vmem>>, %arg16: memref<1x512xf32, #tpu.memory_space<vmem>>, %arg17: memref<256x256xbf16, #tpu.memory_space<vmem>>, %arg18: memref<1x256xf32, #tpu.memory_space<vmem>>, %arg19: memref<1x256xf32, #tpu.memory_space<vmem>>, %arg20: memref<1x256xf32, #tpu.memory_space<vmem>>, %arg21: memref<256x512xbf16, #tpu.memory_space<vmem>>, %arg22: memref<1x512xf32, #tpu.memory_space<vmem>>, %arg23: memref<512x256xbf16, #tpu.memory_space<vmem>>, %arg24: memref<1x256xf32, #tpu.memory_space<vmem>>, %arg25: memref<32x256xf32, #tpu.memory_space<vmem>>, %arg26: memref<2x2x16x16xbf16, #tpu.memory_space<vmem>>, %arg27: memref<2x2x16x32xbf16, #tpu.memory_space<vmem>>) attributes {dimension_semantics = [#tpu.dimension_semantics<parallel>], iteration_bounds = array<i64: 2>, scalar_prefetch = 0 : i64, scratch_operands = 0 : i64, tpu.core_type = #tpu.core_type<tc>, window_params = [{transform_indices = @transform_0, window_bounds = array<i64: 32, 256>}, {transform_indices = @transform_1, window_bounds = array<i64: 2, 16, 16>}, {transform_indices = @transform_2, window_bounds = array<i64: 64, 256>}, {transform_indices = @transform_3, window_bounds = array<i64: 2, 16, 32>}, {pipeline_mode = #tpu.pipeline_mode<synchronous>, transform_indices = @transform_4, window_bounds = array<i64: 1, 256>}, {pipeline_mode = #tpu.pipeline_mode<synchronous>, transform_indices = @transform_5, window_bounds = array<i64: 1, 256>}, {pipeline_mode = #tpu.pipeline_mode<synchronous>, transform_indices = @transform_6, window_bounds = array<i64: 256, 768>}, {pipeline_mode = #tpu.pipeline_mode<synchronous>, transform_indices = @transform_7, window_bounds = array<i64: 1, 768>}, {pipeline_mode = #tpu.pipeline_mode<synchronous>, transform_indices = @transform_8, window_bounds = array<i64: 256, 256>}, {pipeline_mode = #tpu.pipeline_mode<synchronous>, transform_indices = @transform_9, window_bounds = array<i64: 1, 256>}, {pipeline_mode = #tpu.pipeline_mode<synchronous>, transform_indices = @transform_10, window_bounds = array<i64: 1, 256>}, {pipeline_mode = #tpu.pipeline_mode<synchronous>, transform_indices = @transform_11, window_bounds = array<i64: 1, 256>}, {pipeline_mode = #tpu.pipeline_mode<synchronous>, transform_indices = @transform_12, window_bounds = array<i64: 256, 256>}, {pipeline_mode = #tpu.pipeline_mode<synchronous>, transform_indices = @transform_13, window_bounds = array<i64: 1, 256>}, {pipeline_mode = #tpu.pipeline_mode<synchronous>, transform_indices = @transform_14, window_bounds = array<i64: 256, 512>}, {pipeline_mode = #tpu.pipeline_mode<synchronous>, transform_indices = @transform_15, window_bounds = array<i64: 1, 512>}, {pipeline_mode = #tpu.pipeline_mode<synchronous>, transform_indices = @transform_16, window_bounds = array<i64: 256, 256>}, {pipeline_mode = #tpu.pipeline_mode<synchronous>, transform_indices = @transform_17, window_bounds = array<i64: 1, 256>}, {pipeline_mode = #tpu.pipeline_mode<synchronous>, transform_indices = @transform_18, window_bounds = array<i64: 1, 256>}, {pipeline_mode = #tpu.pipeline_mode<synchronous>, transform_indices = @transform_19, window_bounds = array<i64: 1, 256>}, {pipeline_mode = #tpu.pipeline_mode<synchronous>, transform_indices = @transform_20, window_bounds = array<i64: 256, 512>}, {pipeline_mode = #tpu.pipeline_mode<synchronous>, transform_indices = @transform_21, window_bounds = array<i64: 1, 512>}, {pipeline_mode = #tpu.pipeline_mode<synchronous>, transform_indices = @transform_22, window_bounds = array<i64: 512, 256>}, {pipeline_mode = #tpu.pipeline_mode<synchronous>, transform_indices = @transform_23, window_bounds = array<i64: 1, 256>}, {transform_indices = @transform_24, window_bounds = array<i64: 32, 256>}, {transform_indices = @transform_25, window_bounds = array<i64: 2, 2, 16, 16>}, {transform_indices = @transform_26, window_bounds = array<i64: 2, 2, 16, 32>}]} {
    %c0 = arith.constant 0 : index
    %c0_0 = arith.constant 0 : index
    %0 = vector.load %arg1[%c0, %c0_0] : memref<32x256xbf16, #tpu.memory_space<vmem>>, vector<32x256xbf16>
    %1 = arith.extf %0 : vector<32x256xbf16> to vector<32x256xf32>
    %c0_1 = arith.constant 0 : index
    %c0_2 = arith.constant 0 : index
    %2 = vector.load %arg5[%c0_1, %c0_2] : memref<1x256xf32, #tpu.memory_space<vmem>>, vector<1x256xf32>
    %c0_3 = arith.constant 0 : index
    %c0_4 = arith.constant 0 : index
    %3 = vector.load %arg6[%c0_3, %c0_4] : memref<1x256xf32, #tpu.memory_space<vmem>>, vector<1x256xf32>
    %cst = arith.constant dense<0.000000e+00> : vector<32xf32>
    %4 = vector.multi_reduction <add>, %1, %cst [1] : vector<32x256xf32> to vector<32xf32>
    %5 = vector.shape_cast %4 : vector<32xf32> to vector<32x1xf32>
    %cst_5 = arith.constant 3.906250e-03 : f32
    %6 = vector.broadcast %cst_5 : f32 to vector<32x1xf32>
    %7 = arith.mulf %5, %6 : vector<32x1xf32>
    %8 = arith.mulf %1, %1 : vector<32x256xf32>
    %cst_6 = arith.constant dense<0.000000e+00> : vector<32xf32>
    %9 = vector.multi_reduction <add>, %8, %cst_6 [1] : vector<32x256xf32> to vector<32xf32>
    %10 = vector.shape_cast %9 : vector<32xf32> to vector<32x1xf32>
    %cst_7 = arith.constant 3.906250e-03 : f32
    %11 = vector.broadcast %cst_7 : f32 to vector<32x1xf32>
    %12 = arith.mulf %10, %11 : vector<32x1xf32>
    %13 = arith.mulf %7, %7 : vector<32x1xf32>
    %14 = arith.subf %12, %13 : vector<32x1xf32>
    %cst_8 = arith.constant 0.000000e+00 : f32
    %15 = vector.broadcast %cst_8 : f32 to vector<32x1xf32>
    %16 = arith.maximumf %14, %15 : vector<32x1xf32>
    %17 = vector.broadcast %7 : vector<32x1xf32> to vector<32x256xf32>
    %18 = arith.subf %1, %17 : vector<32x256xf32>
    %cst_9 = arith.constant 9.99999996E-13 : f32
    %19 = vector.broadcast %cst_9 : f32 to vector<32x1xf32>
    %20 = arith.addf %16, %19 : vector<32x1xf32>
    %21 = math.rsqrt %20 : vector<32x1xf32>
    %22 = vector.broadcast %21 : vector<32x1xf32> to vector<32x256xf32>
    %23 = arith.mulf %18, %22 : vector<32x256xf32>
    %24 = vector.broadcast %2 : vector<1x256xf32> to vector<32x256xf32>
    %25 = arith.mulf %23, %24 : vector<32x256xf32>
    %26 = vector.broadcast %3 : vector<1x256xf32> to vector<32x256xf32>
    %27 = arith.addf %25, %26 : vector<32x256xf32>
    %28 = arith.truncf %27 : vector<32x256xf32> to vector<32x256xbf16>
    %c0_10 = arith.constant 0 : index
    %c0_11 = arith.constant 0 : index
    %29 = vector.load %arg7[%c0_10, %c0_11] : memref<256x768xbf16, #tpu.memory_space<vmem>>, vector<256x768xbf16>
    %cst_12 = arith.constant dense<0.000000e+00> : vector<32x768xf32>
    %30 = tpu.matmul %28, %29, %cst_12 {dimension_numbers = #tpu.dot_dimension_numbers<[1], [0], [0], [1], [0, 0, 1, 1], [], []>} : vector<32x256xbf16>, vector<256x768xbf16>, vector<32x768xf32> -> vector<32x768xf32>
    %c0_13 = arith.constant 0 : index
    %c0_14 = arith.constant 0 : index
    %31 = vector.load %arg8[%c0_13, %c0_14] : memref<1x768xf32, #tpu.memory_space<vmem>>, vector<1x768xf32>
    %32 = vector.broadcast %31 : vector<1x768xf32> to vector<32x768xf32>
    %33 = arith.addf %30, %32 : vector<32x768xf32>
    %34 = vector.extract_strided_slice %33 {offsets = [0, 0], sizes = [32, 256], strides = [1, 1]} : vector<32x768xf32> to vector<32x256xf32>
    %cst_15 = arith.constant 0.0883883461 : f32
    %35 = vector.broadcast %cst_15 : f32 to vector<32x256xf32>
    %36 = arith.mulf %34, %35 : vector<32x256xf32>
    %37 = vector.extract_strided_slice %33 {offsets = [0, 256], sizes = [32, 256], strides = [1, 1]} : vector<32x768xf32> to vector<32x256xf32>
    %38 = vector.extract_strided_slice %33 {offsets = [0, 512], sizes = [32, 256], strides = [1, 1]} : vector<32x768xf32> to vector<32x256xf32>
    %c0_16 = arith.constant 0 : index
    %c0_17 = arith.constant 0 : index
    %c0_18 = arith.constant 0 : index
    %39 = vector.load %arg2[%c0_16, %c0_17, %c0_18] : memref<2x16x16xbf16, #tpu.memory_space<vmem>>, vector<2x16x16xbf16>
    %40 = arith.extf %39 : vector<2x16x16xbf16> to vector<2x16x16xf32>
    %cst_19 = arith.constant 1.000000e+00 : f32
    %41 = vector.broadcast %cst_19 : f32 to vector<2x16x16xf32>
    %42 = arith.subf %40, %41 : vector<2x16x16xf32>
    %cst_20 = arith.constant 1.000000e+09 : f32
    %43 = vector.broadcast %cst_20 : f32 to vector<2x16x16xf32>
    %44 = arith.mulf %42, %43 : vector<2x16x16xf32>
    %c0_21 = arith.constant 0 : index
    %c0_22 = arith.constant 0 : index
    %45 = vector.load %arg9[%c0_21, %c0_22] : memref<256x256xbf16, #tpu.memory_space<vmem>>, vector<256x256xbf16>
    %c0_23 = arith.constant 0 : index
    %c0_24 = arith.constant 0 : index
    %46 = vector.load %arg10[%c0_23, %c0_24] : memref<1x256xf32, #tpu.memory_space<vmem>>, vector<1x256xf32>
    %47 = arith.truncf %36 : vector<32x256xf32> to vector<32x256xbf16>
    %48 = arith.truncf %37 : vector<32x256xf32> to vector<32x256xbf16>
    %49 = arith.truncf %38 : vector<32x256xf32> to vector<32x256xbf16>
    %50 = vector.extract_strided_slice %47 {offsets = [0, 0], sizes = [16, 256], strides = [1, 1]} : vector<32x256xbf16> to vector<16x256xbf16>
    %51 = vector.extract_strided_slice %48 {offsets = [0, 0], sizes = [16, 256], strides = [1, 1]} : vector<32x256xbf16> to vector<16x256xbf16>
    %52 = vector.extract_strided_slice %49 {offsets = [0, 0], sizes = [16, 256], strides = [1, 1]} : vector<32x256xbf16> to vector<16x256xbf16>
    %53 = vector.extract_strided_slice %44 {offsets = [0, 0, 0], sizes = [1, 16, 16], strides = [1, 1, 1]} : vector<2x16x16xf32> to vector<1x16x16xf32>
    %54 = vector.shape_cast %53 : vector<1x16x16xf32> to vector<16x16xf32>
    %55 = vector.extract_strided_slice %50 {offsets = [0, 0], sizes = [16, 128], strides = [1, 1]} : vector<16x256xbf16> to vector<16x128xbf16>
    %56 = vector.extract_strided_slice %51 {offsets = [0, 0], sizes = [16, 128], strides = [1, 1]} : vector<16x256xbf16> to vector<16x128xbf16>
    "tpu.trace_start"() <{level = 10 : i32, message = "qd,kd->qk"}> : () -> ()
    %cst_25 = arith.constant dense<0.000000e+00> : vector<16x16xf32>
    %57 = tpu.matmul %55, %56, %cst_25 {dimension_numbers = #tpu.dot_dimension_numbers<[1], [1], [0], [0], [0, 0, 1, 0], [], []>} : vector<16x128xbf16>, vector<16x128xbf16>, vector<16x16xf32> -> vector<16x16xf32>
    "tpu.trace_stop"() : () -> ()
    %58 = arith.addf %57, %54 : vector<16x16xf32>
    %cst_26 = arith.constant dense<0xFF800000> : vector<16xf32>
    %59 = vector.multi_reduction <maximumf>, %58, %cst_26 [1] : vector<16x16xf32> to vector<16xf32>
    %60 = vector.shape_cast %59 : vector<16xf32> to vector<16x1xf32>
    %61 = vector.broadcast %60 : vector<16x1xf32> to vector<16x16xf32>
    %62 = arith.subf %58, %61 : vector<16x16xf32>
    %63 = math.exp %62 : vector<16x16xf32>
    %cst_27 = arith.constant dense<0.000000e+00> : vector<16xf32>
    %64 = vector.multi_reduction <add>, %63, %cst_27 [1] : vector<16x16xf32> to vector<16xf32>
    %65 = vector.shape_cast %64 : vector<16xf32> to vector<16x1xf32>
    %66 = tpu.reciprocal %65 {approx = true} : vector<16x1xf32> -> vector<16x1xf32>
    %67 = vector.broadcast %66 : vector<16x1xf32> to vector<16x16xf32>
    %68 = arith.mulf %63, %67 : vector<16x16xf32>
    %69 = arith.truncf %68 : vector<16x16xf32> to vector<16x16xbf16>
    %c0_28 = arith.constant 0 : index
    %c0_29 = arith.constant 0 : index
    %c0_30 = arith.constant 0 : index
    %c0_31 = arith.constant 0 : index
    %70 = vector.load %arg26[%c0_28, %c0_29, %c0_30, %c0_31] : memref<2x2x16x16xbf16, #tpu.memory_space<vmem>>, vector<1x1x16x16xbf16>
    %71 = vector.shape_cast %70 : vector<1x1x16x16xbf16> to vector<16x16xbf16>
    %72 = vector.shape_cast %69 : vector<16x16xbf16> to vector<1x1x16x16xbf16>
    tpu.vector_store %arg26[%c0_28, %c0_29, %c0_30, %c0_31], %72 {strides = array<i32>} : memref<2x2x16x16xbf16, #tpu.memory_space<vmem>>, vector<1x1x16x16xbf16>,
    %73 = vector.extract_strided_slice %52 {offsets = [0, 0], sizes = [16, 128], strides = [1, 1]} : vector<16x256xbf16> to vector<16x128xbf16>
    %cst_32 = arith.constant dense<0.000000e+00> : vector<16x128xf32>
    %74 = tpu.matmul %69, %73, %cst_32 {dimension_numbers = #tpu.dot_dimension_numbers<[1], [0], [0], [1], [0, 0, 1, 1], [], []>} : vector<16x16xbf16>, vector<16x128xbf16>, vector<16x128xf32> -> vector<16x128xf32>
    %75 = arith.truncf %74 : vector<16x128xf32> to vector<16x128xbf16>
    %76 = vector.extract_strided_slice %45 {offsets = [0, 0], sizes = [128, 256], strides = [1, 1]} : vector<256x256xbf16> to vector<128x256xbf16>
    %cst_33 = arith.constant dense<0.000000e+00> : vector<16x256xf32>
    %77 = tpu.matmul %75, %76, %cst_33 {dimension_numbers = #tpu.dot_dimension_numbers<[1], [0], [0], [1], [0, 0, 1, 1], [], []>} : vector<16x128xbf16>, vector<128x256xbf16>, vector<16x256xf32> -> vector<16x256xf32>
    %78 = vector.extract_strided_slice %50 {offsets = [0, 128], sizes = [16, 128], strides = [1, 1]} : vector<16x256xbf16> to vector<16x128xbf16>
    %79 = vector.extract_strided_slice %51 {offsets = [0, 128], sizes = [16, 128], strides = [1, 1]} : vector<16x256xbf16> to vector<16x128xbf16>
    "tpu.trace_start"() <{level = 10 : i32, message = "qd,kd->qk"}> : () -> ()
    %cst_34 = arith.constant dense<0.000000e+00> : vector<16x16xf32>
    %80 = tpu.matmul %78, %79, %cst_34 {dimension_numbers = #tpu.dot_dimension_numbers<[1], [1], [0], [0], [0, 0, 1, 0], [], []>} : vector<16x128xbf16>, vector<16x128xbf16>, vector<16x16xf32> -> vector<16x16xf32>
    "tpu.trace_stop"() : () -> ()
    %81 = arith.addf %80, %54 : vector<16x16xf32>
    %cst_35 = arith.constant dense<0xFF800000> : vector<16xf32>
    %82 = vector.multi_reduction <maximumf>, %81, %cst_35 [1] : vector<16x16xf32> to vector<16xf32>
    %83 = vector.shape_cast %82 : vector<16xf32> to vector<16x1xf32>
    %84 = vector.broadcast %83 : vector<16x1xf32> to vector<16x16xf32>
    %85 = arith.subf %81, %84 : vector<16x16xf32>
    %86 = math.exp %85 : vector<16x16xf32>
    %cst_36 = arith.constant dense<0.000000e+00> : vector<16xf32>
    %87 = vector.multi_reduction <add>, %86, %cst_36 [1] : vector<16x16xf32> to vector<16xf32>
    %88 = vector.shape_cast %87 : vector<16xf32> to vector<16x1xf32>
    %89 = tpu.reciprocal %88 {approx = true} : vector<16x1xf32> -> vector<16x1xf32>
    %90 = vector.broadcast %89 : vector<16x1xf32> to vector<16x16xf32>
    %91 = arith.mulf %86, %90 : vector<16x16xf32>
    %92 = arith.truncf %91 : vector<16x16xf32> to vector<16x16xbf16>
    %c0_37 = arith.constant 0 : index
    %c1 = arith.constant 1 : index
    %c0_38 = arith.constant 0 : index
    %c0_39 = arith.constant 0 : index
    %93 = vector.load %arg26[%c0_37, %c1, %c0_38, %c0_39] : memref<2x2x16x16xbf16, #tpu.memory_space<vmem>>, vector<1x1x16x16xbf16>
    %94 = vector.shape_cast %93 : vector<1x1x16x16xbf16> to vector<16x16xbf16>
    %95 = vector.shape_cast %92 : vector<16x16xbf16> to vector<1x1x16x16xbf16>
    tpu.vector_store %arg26[%c0_37, %c1, %c0_38, %c0_39], %95 {strides = array<i32>} : memref<2x2x16x16xbf16, #tpu.memory_space<vmem>>, vector<1x1x16x16xbf16>,
    %96 = vector.extract_strided_slice %52 {offsets = [0, 128], sizes = [16, 128], strides = [1, 1]} : vector<16x256xbf16> to vector<16x128xbf16>
    %cst_40 = arith.constant dense<0.000000e+00> : vector<16x128xf32>
    %97 = tpu.matmul %92, %96, %cst_40 {dimension_numbers = #tpu.dot_dimension_numbers<[1], [0], [0], [1], [0, 0, 1, 1], [], []>} : vector<16x16xbf16>, vector<16x128xbf16>, vector<16x128xf32> -> vector<16x128xf32>
    %98 = arith.truncf %97 : vector<16x128xf32> to vector<16x128xbf16>
    %99 = vector.extract_strided_slice %45 {offsets = [128, 0], sizes = [128, 256], strides = [1, 1]} : vector<256x256xbf16> to vector<128x256xbf16>
    %cst_41 = arith.constant dense<0.000000e+00> : vector<16x256xf32>
    %100 = tpu.matmul %98, %99, %cst_41 {dimension_numbers = #tpu.dot_dimension_numbers<[1], [0], [0], [1], [0, 0, 1, 1], [], []>} : vector<16x128xbf16>, vector<128x256xbf16>, vector<16x256xf32> -> vector<16x256xf32>
    %101 = arith.addf %77, %100 : vector<16x256xf32>
    %102 = vector.extract_strided_slice %47 {offsets = [16, 0], sizes = [16, 256], strides = [1, 1]} : vector<32x256xbf16> to vector<16x256xbf16>
    %103 = vector.extract_strided_slice %48 {offsets = [16, 0], sizes = [16, 256], strides = [1, 1]} : vector<32x256xbf16> to vector<16x256xbf16>
    %104 = vector.extract_strided_slice %49 {offsets = [16, 0], sizes = [16, 256], strides = [1, 1]} : vector<32x256xbf16> to vector<16x256xbf16>
    %105 = vector.extract_strided_slice %44 {offsets = [1, 0, 0], sizes = [1, 16, 16], strides = [1, 1, 1]} : vector<2x16x16xf32> to vector<1x16x16xf32>
    %106 = vector.shape_cast %105 : vector<1x16x16xf32> to vector<16x16xf32>
    %107 = vector.extract_strided_slice %102 {offsets = [0, 0], sizes = [16, 128], strides = [1, 1]} : vector<16x256xbf16> to vector<16x128xbf16>
    %108 = vector.extract_strided_slice %103 {offsets = [0, 0], sizes = [16, 128], strides = [1, 1]} : vector<16x256xbf16> to vector<16x128xbf16>
    "tpu.trace_start"() <{level = 10 : i32, message = "qd,kd->qk"}> : () -> ()
    %cst_42 = arith.constant dense<0.000000e+00> : vector<16x16xf32>
    %109 = tpu.matmul %107, %108, %cst_42 {dimension_numbers = #tpu.dot_dimension_numbers<[1], [1], [0], [0], [0, 0, 1, 0], [], []>} : vector<16x128xbf16>, vector<16x128xbf16>, vector<16x16xf32> -> vector<16x16xf32>
    "tpu.trace_stop"() : () -> ()
    %110 = arith.addf %109, %106 : vector<16x16xf32>
    %cst_43 = arith.constant dense<0xFF800000> : vector<16xf32>
    %111 = vector.multi_reduction <maximumf>, %110, %cst_43 [1] : vector<16x16xf32> to vector<16xf32>
    %112 = vector.shape_cast %111 : vector<16xf32> to vector<16x1xf32>
    %113 = vector.broadcast %112 : vector<16x1xf32> to vector<16x16xf32>
    %114 = arith.subf %110, %113 : vector<16x16xf32>
    %115 = math.exp %114 : vector<16x16xf32>
    %cst_44 = arith.constant dense<0.000000e+00> : vector<16xf32>
    %116 = vector.multi_reduction <add>, %115, %cst_44 [1] : vector<16x16xf32> to vector<16xf32>
    %117 = vector.shape_cast %116 : vector<16xf32> to vector<16x1xf32>
    %118 = tpu.reciprocal %117 {approx = true} : vector<16x1xf32> -> vector<16x1xf32>
    %119 = vector.broadcast %118 : vector<16x1xf32> to vector<16x16xf32>
    %120 = arith.mulf %115, %119 : vector<16x16xf32>
    %121 = arith.truncf %120 : vector<16x16xf32> to vector<16x16xbf16>
    %c1_45 = arith.constant 1 : index
    %c0_46 = arith.constant 0 : index
    %c0_47 = arith.constant 0 : index
    %c0_48 = arith.constant 0 : index
    %122 = vector.load %arg26[%c1_45, %c0_46, %c0_47, %c0_48] : memref<2x2x16x16xbf16, #tpu.memory_space<vmem>>, vector<1x1x16x16xbf16>
    %123 = vector.shape_cast %122 : vector<1x1x16x16xbf16> to vector<16x16xbf16>
    %124 = vector.shape_cast %121 : vector<16x16xbf16> to vector<1x1x16x16xbf16>
    tpu.vector_store %arg26[%c1_45, %c0_46, %c0_47, %c0_48], %124 {strides = array<i32>} : memref<2x2x16x16xbf16, #tpu.memory_space<vmem>>, vector<1x1x16x16xbf16>,
    %125 = vector.extract_strided_slice %104 {offsets = [0, 0], sizes = [16, 128], strides = [1, 1]} : vector<16x256xbf16> to vector<16x128xbf16>
    %cst_49 = arith.constant dense<0.000000e+00> : vector<16x128xf32>
    %126 = tpu.matmul %121, %125, %cst_49 {dimension_numbers = #tpu.dot_dimension_numbers<[1], [0], [0], [1], [0, 0, 1, 1], [], []>} : vector<16x16xbf16>, vector<16x128xbf16>, vector<16x128xf32> -> vector<16x128xf32>
    %127 = arith.truncf %126 : vector<16x128xf32> to vector<16x128xbf16>
    %128 = vector.extract_strided_slice %45 {offsets = [0, 0], sizes = [128, 256], strides = [1, 1]} : vector<256x256xbf16> to vector<128x256xbf16>
    %cst_50 = arith.constant dense<0.000000e+00> : vector<16x256xf32>
    %129 = tpu.matmul %127, %128, %cst_50 {dimension_numbers = #tpu.dot_dimension_numbers<[1], [0], [0], [1], [0, 0, 1, 1], [], []>} : vector<16x128xbf16>, vector<128x256xbf16>, vector<16x256xf32> -> vector<16x256xf32>
    %130 = vector.extract_strided_slice %102 {offsets = [0, 128], sizes = [16, 128], strides = [1, 1]} : vector<16x256xbf16> to vector<16x128xbf16>
    %131 = vector.extract_strided_slice %103 {offsets = [0, 128], sizes = [16, 128], strides = [1, 1]} : vector<16x256xbf16> to vector<16x128xbf16>
    "tpu.trace_start"() <{level = 10 : i32, message = "qd,kd->qk"}> : () -> ()
    %cst_51 = arith.constant dense<0.000000e+00> : vector<16x16xf32>
    %132 = tpu.matmul %130, %131, %cst_51 {dimension_numbers = #tpu.dot_dimension_numbers<[1], [1], [0], [0], [0, 0, 1, 0], [], []>} : vector<16x128xbf16>, vector<16x128xbf16>, vector<16x16xf32> -> vector<16x16xf32>
    "tpu.trace_stop"() : () -> ()
    %133 = arith.addf %132, %106 : vector<16x16xf32>
    %cst_52 = arith.constant dense<0xFF800000> : vector<16xf32>
    %134 = vector.multi_reduction <maximumf>, %133, %cst_52 [1] : vector<16x16xf32> to vector<16xf32>
    %135 = vector.shape_cast %134 : vector<16xf32> to vector<16x1xf32>
    %136 = vector.broadcast %135 : vector<16x1xf32> to vector<16x16xf32>
    %137 = arith.subf %133, %136 : vector<16x16xf32>
    %138 = math.exp %137 : vector<16x16xf32>
    %cst_53 = arith.constant dense<0.000000e+00> : vector<16xf32>
    %139 = vector.multi_reduction <add>, %138, %cst_53 [1] : vector<16x16xf32> to vector<16xf32>
    %140 = vector.shape_cast %139 : vector<16xf32> to vector<16x1xf32>
    %141 = tpu.reciprocal %140 {approx = true} : vector<16x1xf32> -> vector<16x1xf32>
    %142 = vector.broadcast %141 : vector<16x1xf32> to vector<16x16xf32>
    %143 = arith.mulf %138, %142 : vector<16x16xf32>
    %144 = arith.truncf %143 : vector<16x16xf32> to vector<16x16xbf16>
    %c1_54 = arith.constant 1 : index
    %c1_55 = arith.constant 1 : index
    %c0_56 = arith.constant 0 : index
    %c0_57 = arith.constant 0 : index
    %145 = vector.load %arg26[%c1_54, %c1_55, %c0_56, %c0_57] : memref<2x2x16x16xbf16, #tpu.memory_space<vmem>>, vector<1x1x16x16xbf16>
    %146 = vector.shape_cast %145 : vector<1x1x16x16xbf16> to vector<16x16xbf16>
    %147 = vector.shape_cast %144 : vector<16x16xbf16> to vector<1x1x16x16xbf16>
    tpu.vector_store %arg26[%c1_54, %c1_55, %c0_56, %c0_57], %147 {strides = array<i32>} : memref<2x2x16x16xbf16, #tpu.memory_space<vmem>>, vector<1x1x16x16xbf16>,
    %148 = vector.extract_strided_slice %104 {offsets = [0, 128], sizes = [16, 128], strides = [1, 1]} : vector<16x256xbf16> to vector<16x128xbf16>
    %cst_58 = arith.constant dense<0.000000e+00> : vector<16x128xf32>
    %149 = tpu.matmul %144, %148, %cst_58 {dimension_numbers = #tpu.dot_dimension_numbers<[1], [0], [0], [1], [0, 0, 1, 1], [], []>} : vector<16x16xbf16>, vector<16x128xbf16>, vector<16x128xf32> -> vector<16x128xf32>
    %150 = arith.truncf %149 : vector<16x128xf32> to vector<16x128xbf16>
    %151 = vector.extract_strided_slice %45 {offsets = [128, 0], sizes = [128, 256], strides = [1, 1]} : vector<256x256xbf16> to vector<128x256xbf16>
    %cst_59 = arith.constant dense<0.000000e+00> : vector<16x256xf32>
    %152 = tpu.matmul %150, %151, %cst_59 {dimension_numbers = #tpu.dot_dimension_numbers<[1], [0], [0], [1], [0, 0, 1, 1], [], []>} : vector<16x128xbf16>, vector<128x256xbf16>, vector<16x256xf32> -> vector<16x256xf32>
    %153 = arith.addf %129, %152 : vector<16x256xf32>
    %154 = tpu.concatenate %101, %153 in 0 : vector<16x256xf32>, vector<16x256xf32> -> vector<32x256xf32>
    %155 = vector.broadcast %46 : vector<1x256xf32> to vector<32x256xf32>
    %156 = arith.addf %154, %155 : vector<32x256xf32>
    %157 = arith.addf %156, %1 : vector<32x256xf32>
    %c0_60 = arith.constant 0 : index
    %c0_61 = arith.constant 0 : index
    %158 = vector.load %arg11[%c0_60, %c0_61] : memref<1x256xf32, #tpu.memory_space<vmem>>, vector<1x256xf32>
    %c0_62 = arith.constant 0 : index
    %c0_63 = arith.constant 0 : index
    %159 = vector.load %arg12[%c0_62, %c0_63] : memref<1x256xf32, #tpu.memory_space<vmem>>, vector<1x256xf32>
    %cst_64 = arith.constant dense<0.000000e+00> : vector<32xf32>
    %160 = vector.multi_reduction <add>, %157, %cst_64 [1] : vector<32x256xf32> to vector<32xf32>
    %161 = vector.shape_cast %160 : vector<32xf32> to vector<32x1xf32>
    %cst_65 = arith.constant 3.906250e-03 : f32
    %162 = vector.broadcast %cst_65 : f32 to vector<32x1xf32>
    %163 = arith.mulf %161, %162 : vector<32x1xf32>
    %164 = arith.mulf %157, %157 : vector<32x256xf32>
    %cst_66 = arith.constant dense<0.000000e+00> : vector<32xf32>
    %165 = vector.multi_reduction <add>, %164, %cst_66 [1] : vector<32x256xf32> to vector<32xf32>
    %166 = vector.shape_cast %165 : vector<32xf32> to vector<32x1xf32>
    %cst_67 = arith.constant 3.906250e-03 : f32
    %167 = vector.broadcast %cst_67 : f32 to vector<32x1xf32>
    %168 = arith.mulf %166, %167 : vector<32x1xf32>
    %169 = arith.mulf %163, %163 : vector<32x1xf32>
    %170 = arith.subf %168, %169 : vector<32x1xf32>
    %cst_68 = arith.constant 0.000000e+00 : f32
    %171 = vector.broadcast %cst_68 : f32 to vector<32x1xf32>
    %172 = arith.maximumf %170, %171 : vector<32x1xf32>
    %173 = vector.broadcast %163 : vector<32x1xf32> to vector<32x256xf32>
    %174 = arith.subf %157, %173 : vector<32x256xf32>
    %cst_69 = arith.constant 9.99999996E-13 : f32
    %175 = vector.broadcast %cst_69 : f32 to vector<32x1xf32>
    %176 = arith.addf %172, %175 : vector<32x1xf32>
    %177 = math.rsqrt %176 : vector<32x1xf32>
    %178 = vector.broadcast %177 : vector<32x1xf32> to vector<32x256xf32>
    %179 = arith.mulf %174, %178 : vector<32x256xf32>
    %180 = vector.broadcast %158 : vector<1x256xf32> to vector<32x256xf32>
    %181 = arith.mulf %179, %180 : vector<32x256xf32>
    %182 = vector.broadcast %159 : vector<1x256xf32> to vector<32x256xf32>
    %183 = arith.addf %181, %182 : vector<32x256xf32>
    %184 = arith.truncf %183 : vector<32x256xf32> to vector<32x256xbf16>
    %c0_70 = arith.constant 0 : index
    %c0_71 = arith.constant 0 : index
    %185 = vector.load %arg13[%c0_70, %c0_71] : memref<256x256xbf16, #tpu.memory_space<vmem>>, vector<256x256xbf16>
    %cst_72 = arith.constant dense<0.000000e+00> : vector<32x256xf32>
    %186 = tpu.matmul %184, %185, %cst_72 {dimension_numbers = #tpu.dot_dimension_numbers<[1], [0], [0], [1], [0, 0, 1, 1], [], []>} : vector<32x256xbf16>, vector<256x256xbf16>, vector<32x256xf32> -> vector<32x256xf32>
    %c0_73 = arith.constant 0 : index
    %c0_74 = arith.constant 0 : index
    %187 = vector.load %arg14[%c0_73, %c0_74] : memref<1x256xf32, #tpu.memory_space<vmem>>, vector<1x256xf32>
    %188 = vector.broadcast %187 : vector<1x256xf32> to vector<32x256xf32>
    %189 = arith.addf %186, %188 : vector<32x256xf32>
    %cst_75 = arith.constant 0.0883883461 : f32
    %190 = vector.broadcast %cst_75 : f32 to vector<32x256xf32>
    %191 = arith.mulf %189, %190 : vector<32x256xf32>
    %c0_76 = arith.constant 0 : index
    %c0_77 = arith.constant 0 : index
    %192 = vector.load %arg3[%c0_76, %c0_77] : memref<64x256xbf16, #tpu.memory_space<vmem>>, vector<64x256xbf16>
    %c0_78 = arith.constant 0 : index
    %c0_79 = arith.constant 0 : index
    %193 = vector.load %arg15[%c0_78, %c0_79] : memref<256x512xbf16, #tpu.memory_space<vmem>>, vector<256x512xbf16>
    %cst_80 = arith.constant dense<0.000000e+00> : vector<64x512xf32>
    %194 = tpu.matmul %192, %193, %cst_80 {dimension_numbers = #tpu.dot_dimension_numbers<[1], [0], [0], [1], [0, 0, 1, 1], [], []>} : vector<64x256xbf16>, vector<256x512xbf16>, vector<64x512xf32> -> vector<64x512xf32>
    %c0_81 = arith.constant 0 : index
    %c0_82 = arith.constant 0 : index
    %195 = vector.load %arg16[%c0_81, %c0_82] : memref<1x512xf32, #tpu.memory_space<vmem>>, vector<1x512xf32>
    %196 = vector.broadcast %195 : vector<1x512xf32> to vector<64x512xf32>
    %197 = arith.addf %194, %196 : vector<64x512xf32>
    %c0_83 = arith.constant 0 : index
    %c0_84 = arith.constant 0 : index
    %c0_85 = arith.constant 0 : index
    %198 = vector.load %arg4[%c0_83, %c0_84, %c0_85] : memref<2x16x32xbf16, #tpu.memory_space<vmem>>, vector<2x16x32xbf16>
    %199 = arith.extf %198 : vector<2x16x32xbf16> to vector<2x16x32xf32>
    %cst_86 = arith.constant 1.000000e+00 : f32
    %200 = vector.broadcast %cst_86 : f32 to vector<2x16x32xf32>
    %201 = arith.subf %199, %200 : vector<2x16x32xf32>
    %cst_87 = arith.constant 1.000000e+09 : f32
    %202 = vector.broadcast %cst_87 : f32 to vector<2x16x32xf32>
    %203 = arith.mulf %201, %202 : vector<2x16x32xf32>
    %204 = vector.extract_strided_slice %197 {offsets = [0, 0], sizes = [64, 256], strides = [1, 1]} : vector<64x512xf32> to vector<64x256xf32>
    %205 = vector.extract_strided_slice %197 {offsets = [0, 256], sizes = [64, 256], strides = [1, 1]} : vector<64x512xf32> to vector<64x256xf32>
    %c0_88 = arith.constant 0 : index
    %c0_89 = arith.constant 0 : index
    %206 = vector.load %arg17[%c0_88, %c0_89] : memref<256x256xbf16, #tpu.memory_space<vmem>>, vector<256x256xbf16>
    %c0_90 = arith.constant 0 : index
    %c0_91 = arith.constant 0 : index
    %207 = vector.load %arg18[%c0_90, %c0_91] : memref<1x256xf32, #tpu.memory_space<vmem>>, vector<1x256xf32>
    %208 = arith.truncf %191 : vector<32x256xf32> to vector<32x256xbf16>
    %209 = arith.truncf %204 : vector<64x256xf32> to vector<64x256xbf16>
    %210 = arith.truncf %205 : vector<64x256xf32> to vector<64x256xbf16>
    %211 = vector.extract_strided_slice %208 {offsets = [0, 0], sizes = [16, 256], strides = [1, 1]} : vector<32x256xbf16> to vector<16x256xbf16>
    %212 = vector.extract_strided_slice %209 {offsets = [0, 0], sizes = [32, 256], strides = [1, 1]} : vector<64x256xbf16> to vector<32x256xbf16>
    %213 = vector.extract_strided_slice %210 {offsets = [0, 0], sizes = [32, 256], strides = [1, 1]} : vector<64x256xbf16> to vector<32x256xbf16>
    %214 = vector.extract_strided_slice %203 {offsets = [0, 0, 0], sizes = [1, 16, 32], strides = [1, 1, 1]} : vector<2x16x32xf32> to vector<1x16x32xf32>
    %215 = vector.shape_cast %214 : vector<1x16x32xf32> to vector<16x32xf32>
    %216 = vector.extract_strided_slice %211 {offsets = [0, 0], sizes = [16, 128], strides = [1, 1]} : vector<16x256xbf16> to vector<16x128xbf16>
    %217 = vector.extract_strided_slice %212 {offsets = [0, 0], sizes = [32, 128], strides = [1, 1]} : vector<32x256xbf16> to vector<32x128xbf16>
    "tpu.trace_start"() <{level = 10 : i32, message = "qd,kd->qk"}> : () -> ()
    %cst_92 = arith.constant dense<0.000000e+00> : vector<16x32xf32>
    %218 = tpu.matmul %216, %217, %cst_92 {dimension_numbers = #tpu.dot_dimension_numbers<[1], [1], [0], [0], [0, 0, 1, 0], [], []>} : vector<16x128xbf16>, vector<32x128xbf16>, vector<16x32xf32> -> vector<16x32xf32>
    "tpu.trace_stop"() : () -> ()
    %219 = arith.addf %218, %215 : vector<16x32xf32>
    %cst_93 = arith.constant dense<0xFF800000> : vector<16xf32>
    %220 = vector.multi_reduction <maximumf>, %219, %cst_93 [1] : vector<16x32xf32> to vector<16xf32>
    %221 = vector.shape_cast %220 : vector<16xf32> to vector<16x1xf32>
    %222 = vector.broadcast %221 : vector<16x1xf32> to vector<16x32xf32>
    %223 = arith.subf %219, %222 : vector<16x32xf32>
    %224 = math.exp %223 : vector<16x32xf32>
    %cst_94 = arith.constant dense<0.000000e+00> : vector<16xf32>
    %225 = vector.multi_reduction <add>, %224, %cst_94 [1] : vector<16x32xf32> to vector<16xf32>
    %226 = vector.shape_cast %225 : vector<16xf32> to vector<16x1xf32>
    %227 = tpu.reciprocal %226 {approx = true} : vector<16x1xf32> -> vector<16x1xf32>
    %228 = vector.broadcast %227 : vector<16x1xf32> to vector<16x32xf32>
    %229 = arith.mulf %224, %228 : vector<16x32xf32>
    %230 = arith.truncf %229 : vector<16x32xf32> to vector<16x32xbf16>
    %c0_95 = arith.constant 0 : index
    %c0_96 = arith.constant 0 : index
    %c0_97 = arith.constant 0 : index
    %c0_98 = arith.constant 0 : index
    %231 = vector.load %arg27[%c0_95, %c0_96, %c0_97, %c0_98] : memref<2x2x16x32xbf16, #tpu.memory_space<vmem>>, vector<1x1x16x32xbf16>
    %232 = vector.shape_cast %231 : vector<1x1x16x32xbf16> to vector<16x32xbf16>
    %233 = vector.shape_cast %230 : vector<16x32xbf16> to vector<1x1x16x32xbf16>
    tpu.vector_store %arg27[%c0_95, %c0_96, %c0_97, %c0_98], %233 {strides = array<i32>} : memref<2x2x16x32xbf16, #tpu.memory_space<vmem>>, vector<1x1x16x32xbf16>,
    %234 = vector.extract_strided_slice %213 {offsets = [0, 0], sizes = [32, 128], strides = [1, 1]} : vector<32x256xbf16> to vector<32x128xbf16>
    %cst_99 = arith.constant dense<0.000000e+00> : vector<16x128xf32>
    %235 = tpu.matmul %230, %234, %cst_99 {dimension_numbers = #tpu.dot_dimension_numbers<[1], [0], [0], [1], [0, 0, 1, 1], [], []>} : vector<16x32xbf16>, vector<32x128xbf16>, vector<16x128xf32> -> vector<16x128xf32>
    %236 = arith.truncf %235 : vector<16x128xf32> to vector<16x128xbf16>
    %237 = vector.extract_strided_slice %206 {offsets = [0, 0], sizes = [128, 256], strides = [1, 1]} : vector<256x256xbf16> to vector<128x256xbf16>
    %cst_100 = arith.constant dense<0.000000e+00> : vector<16x256xf32>
    %238 = tpu.matmul %236, %237, %cst_100 {dimension_numbers = #tpu.dot_dimension_numbers<[1], [0], [0], [1], [0, 0, 1, 1], [], []>} : vector<16x128xbf16>, vector<128x256xbf16>, vector<16x256xf32> -> vector<16x256xf32>
    %239 = vector.extract_strided_slice %211 {offsets = [0, 128], sizes = [16, 128], strides = [1, 1]} : vector<16x256xbf16> to vector<16x128xbf16>
    %240 = vector.extract_strided_slice %212 {offsets = [0, 128], sizes = [32, 128], strides = [1, 1]} : vector<32x256xbf16> to vector<32x128xbf16>
    "tpu.trace_start"() <{level = 10 : i32, message = "qd,kd->qk"}> : () -> ()
    %cst_101 = arith.constant dense<0.000000e+00> : vector<16x32xf32>
    %241 = tpu.matmul %239, %240, %cst_101 {dimension_numbers = #tpu.dot_dimension_numbers<[1], [1], [0], [0], [0, 0, 1, 0], [], []>} : vector<16x128xbf16>, vector<32x128xbf16>, vector<16x32xf32> -> vector<16x32xf32>
    "tpu.trace_stop"() : () -> ()
    %242 = arith.addf %241, %215 : vector<16x32xf32>
    %cst_102 = arith.constant dense<0xFF800000> : vector<16xf32>
    %243 = vector.multi_reduction <maximumf>, %242, %cst_102 [1] : vector<16x32xf32> to vector<16xf32>
    %244 = vector.shape_cast %243 : vector<16xf32> to vector<16x1xf32>
    %245 = vector.broadcast %244 : vector<16x1xf32> to vector<16x32xf32>
    %246 = arith.subf %242, %245 : vector<16x32xf32>
    %247 = math.exp %246 : vector<16x32xf32>
    %cst_103 = arith.constant dense<0.000000e+00> : vector<16xf32>
    %248 = vector.multi_reduction <add>, %247, %cst_103 [1] : vector<16x32xf32> to vector<16xf32>
    %249 = vector.shape_cast %248 : vector<16xf32> to vector<16x1xf32>
    %250 = tpu.reciprocal %249 {approx = true} : vector<16x1xf32> -> vector<16x1xf32>
    %251 = vector.broadcast %250 : vector<16x1xf32> to vector<16x32xf32>
    %252 = arith.mulf %247, %251 : vector<16x32xf32>
    %253 = arith.truncf %252 : vector<16x32xf32> to vector<16x32xbf16>
    %c0_104 = arith.constant 0 : index
    %c1_105 = arith.constant 1 : index
    %c0_106 = arith.constant 0 : index
    %c0_107 = arith.constant 0 : index
    %254 = vector.load %arg27[%c0_104, %c1_105, %c0_106, %c0_107] : memref<2x2x16x32xbf16, #tpu.memory_space<vmem>>, vector<1x1x16x32xbf16>
    %255 = vector.shape_cast %254 : vector<1x1x16x32xbf16> to vector<16x32xbf16>
    %256 = vector.shape_cast %253 : vector<16x32xbf16> to vector<1x1x16x32xbf16>
    tpu.vector_store %arg27[%c0_104, %c1_105, %c0_106, %c0_107], %256 {strides = array<i32>} : memref<2x2x16x32xbf16, #tpu.memory_space<vmem>>, vector<1x1x16x32xbf16>,
    %257 = vector.extract_strided_slice %213 {offsets = [0, 128], sizes = [32, 128], strides = [1, 1]} : vector<32x256xbf16> to vector<32x128xbf16>
    %cst_108 = arith.constant dense<0.000000e+00> : vector<16x128xf32>
    %258 = tpu.matmul %253, %257, %cst_108 {dimension_numbers = #tpu.dot_dimension_numbers<[1], [0], [0], [1], [0, 0, 1, 1], [], []>} : vector<16x32xbf16>, vector<32x128xbf16>, vector<16x128xf32> -> vector<16x128xf32>
    %259 = arith.truncf %258 : vector<16x128xf32> to vector<16x128xbf16>
    %260 = vector.extract_strided_slice %206 {offsets = [128, 0], sizes = [128, 256], strides = [1, 1]} : vector<256x256xbf16> to vector<128x256xbf16>
    %cst_109 = arith.constant dense<0.000000e+00> : vector<16x256xf32>
    %261 = tpu.matmul %259, %260, %cst_109 {dimension_numbers = #tpu.dot_dimension_numbers<[1], [0], [0], [1], [0, 0, 1, 1], [], []>} : vector<16x128xbf16>, vector<128x256xbf16>, vector<16x256xf32> -> vector<16x256xf32>
    %262 = arith.addf %238, %261 : vector<16x256xf32>
    %263 = vector.extract_strided_slice %208 {offsets = [16, 0], sizes = [16, 256], strides = [1, 1]} : vector<32x256xbf16> to vector<16x256xbf16>
    %264 = vector.extract_strided_slice %209 {offsets = [32, 0], sizes = [32, 256], strides = [1, 1]} : vector<64x256xbf16> to vector<32x256xbf16>
    %265 = vector.extract_strided_slice %210 {offsets = [32, 0], sizes = [32, 256], strides = [1, 1]} : vector<64x256xbf16> to vector<32x256xbf16>
    %266 = vector.extract_strided_slice %203 {offsets = [1, 0, 0], sizes = [1, 16, 32], strides = [1, 1, 1]} : vector<2x16x32xf32> to vector<1x16x32xf32>
    %267 = vector.shape_cast %266 : vector<1x16x32xf32> to vector<16x32xf32>
    %268 = vector.extract_strided_slice %263 {offsets = [0, 0], sizes = [16, 128], strides = [1, 1]} : vector<16x256xbf16> to vector<16x128xbf16>
    %269 = vector.extract_strided_slice %264 {offsets = [0, 0], sizes = [32, 128], strides = [1, 1]} : vector<32x256xbf16> to vector<32x128xbf16>
    "tpu.trace_start"() <{level = 10 : i32, message = "qd,kd->qk"}> : () -> ()
    %cst_110 = arith.constant dense<0.000000e+00> : vector<16x32xf32>
    %270 = tpu.matmul %268, %269, %cst_110 {dimension_numbers = #tpu.dot_dimension_numbers<[1], [1], [0], [0], [0, 0, 1, 0], [], []>} : vector<16x128xbf16>, vector<32x128xbf16>, vector<16x32xf32> -> vector<16x32xf32>
    "tpu.trace_stop"() : () -> ()
    %271 = arith.addf %270, %267 : vector<16x32xf32>
    %cst_111 = arith.constant dense<0xFF800000> : vector<16xf32>
    %272 = vector.multi_reduction <maximumf>, %271, %cst_111 [1] : vector<16x32xf32> to vector<16xf32>
    %273 = vector.shape_cast %272 : vector<16xf32> to vector<16x1xf32>
    %274 = vector.broadcast %273 : vector<16x1xf32> to vector<16x32xf32>
    %275 = arith.subf %271, %274 : vector<16x32xf32>
    %276 = math.exp %275 : vector<16x32xf32>
    %cst_112 = arith.constant dense<0.000000e+00> : vector<16xf32>
    %277 = vector.multi_reduction <add>, %276, %cst_112 [1] : vector<16x32xf32> to vector<16xf32>
    %278 = vector.shape_cast %277 : vector<16xf32> to vector<16x1xf32>
    %279 = tpu.reciprocal %278 {approx = true} : vector<16x1xf32> -> vector<16x1xf32>
    %280 = vector.broadcast %279 : vector<16x1xf32> to vector<16x32xf32>
    %281 = arith.mulf %276, %280 : vector<16x32xf32>
    %282 = arith.truncf %281 : vector<16x32xf32> to vector<16x32xbf16>
    %c1_113 = arith.constant 1 : index
    %c0_114 = arith.constant 0 : index
    %c0_115 = arith.constant 0 : index
    %c0_116 = arith.constant 0 : index
    %283 = vector.load %arg27[%c1_113, %c0_114, %c0_115, %c0_116] : memref<2x2x16x32xbf16, #tpu.memory_space<vmem>>, vector<1x1x16x32xbf16>
    %284 = vector.shape_cast %283 : vector<1x1x16x32xbf16> to vector<16x32xbf16>
    %285 = vector.shape_cast %282 : vector<16x32xbf16> to vector<1x1x16x32xbf16>
    tpu.vector_store %arg27[%c1_113, %c0_114, %c0_115, %c0_116], %285 {strides = array<i32>} : memref<2x2x16x32xbf16, #tpu.memory_space<vmem>>, vector<1x1x16x32xbf16>,
    %286 = vector.extract_strided_slice %265 {offsets = [0, 0], sizes = [32, 128], strides = [1, 1]} : vector<32x256xbf16> to vector<32x128xbf16>
    %cst_117 = arith.constant dense<0.000000e+00> : vector<16x128xf32>
    %287 = tpu.matmul %282, %286, %cst_117 {dimension_numbers = #tpu.dot_dimension_numbers<[1], [0], [0], [1], [0, 0, 1, 1], [], []>} : vector<16x32xbf16>, vector<32x128xbf16>, vector<16x128xf32> -> vector<16x128xf32>
    %288 = arith.truncf %287 : vector<16x128xf32> to vector<16x128xbf16>
    %289 = vector.extract_strided_slice %206 {offsets = [0, 0], sizes = [128, 256], strides = [1, 1]} : vector<256x256xbf16> to vector<128x256xbf16>
    %cst_118 = arith.constant dense<0.000000e+00> : vector<16x256xf32>
    %290 = tpu.matmul %288, %289, %cst_118 {dimension_numbers = #tpu.dot_dimension_numbers<[1], [0], [0], [1], [0, 0, 1, 1], [], []>} : vector<16x128xbf16>, vector<128x256xbf16>, vector<16x256xf32> -> vector<16x256xf32>
    %291 = vector.extract_strided_slice %263 {offsets = [0, 128], sizes = [16, 128], strides = [1, 1]} : vector<16x256xbf16> to vector<16x128xbf16>
    %292 = vector.extract_strided_slice %264 {offsets = [0, 128], sizes = [32, 128], strides = [1, 1]} : vector<32x256xbf16> to vector<32x128xbf16>
    "tpu.trace_start"() <{level = 10 : i32, message = "qd,kd->qk"}> : () -> ()
    %cst_119 = arith.constant dense<0.000000e+00> : vector<16x32xf32>
    %293 = tpu.matmul %291, %292, %cst_119 {dimension_numbers = #tpu.dot_dimension_numbers<[1], [1], [0], [0], [0, 0, 1, 0], [], []>} : vector<16x128xbf16>, vector<32x128xbf16>, vector<16x32xf32> -> vector<16x32xf32>
    "tpu.trace_stop"() : () -> ()
    %294 = arith.addf %293, %267 : vector<16x32xf32>
    %cst_120 = arith.constant dense<0xFF800000> : vector<16xf32>
    %295 = vector.multi_reduction <maximumf>, %294, %cst_120 [1] : vector<16x32xf32> to vector<16xf32>
    %296 = vector.shape_cast %295 : vector<16xf32> to vector<16x1xf32>
    %297 = vector.broadcast %296 : vector<16x1xf32> to vector<16x32xf32>
    %298 = arith.subf %294, %297 : vector<16x32xf32>
    %299 = math.exp %298 : vector<16x32xf32>
    %cst_121 = arith.constant dense<0.000000e+00> : vector<16xf32>
    %300 = vector.multi_reduction <add>, %299, %cst_121 [1] : vector<16x32xf32> to vector<16xf32>
    %301 = vector.shape_cast %300 : vector<16xf32> to vector<16x1xf32>
    %302 = tpu.reciprocal %301 {approx = true} : vector<16x1xf32> -> vector<16x1xf32>
    %303 = vector.broadcast %302 : vector<16x1xf32> to vector<16x32xf32>
    %304 = arith.mulf %299, %303 : vector<16x32xf32>
    %305 = arith.truncf %304 : vector<16x32xf32> to vector<16x32xbf16>
    %c1_122 = arith.constant 1 : index
    %c1_123 = arith.constant 1 : index
    %c0_124 = arith.constant 0 : index
    %c0_125 = arith.constant 0 : index
    %306 = vector.load %arg27[%c1_122, %c1_123, %c0_124, %c0_125] : memref<2x2x16x32xbf16, #tpu.memory_space<vmem>>, vector<1x1x16x32xbf16>
    %307 = vector.shape_cast %306 : vector<1x1x16x32xbf16> to vector<16x32xbf16>
    %308 = vector.shape_cast %305 : vector<16x32xbf16> to vector<1x1x16x32xbf16>
    tpu.vector_store %arg27[%c1_122, %c1_123, %c0_124, %c0_125], %308 {strides = array<i32>} : memref<2x2x16x32xbf16, #tpu.memory_space<vmem>>, vector<1x1x16x32xbf16>,
    %309 = vector.extract_strided_slice %265 {offsets = [0, 128], sizes = [32, 128], strides = [1, 1]} : vector<32x256xbf16> to vector<32x128xbf16>
    %cst_126 = arith.constant dense<0.000000e+00> : vector<16x128xf32>
    %310 = tpu.matmul %305, %309, %cst_126 {dimension_numbers = #tpu.dot_dimension_numbers<[1], [0], [0], [1], [0, 0, 1, 1], [], []>} : vector<16x32xbf16>, vector<32x128xbf16>, vector<16x128xf32> -> vector<16x128xf32>
    %311 = arith.truncf %310 : vector<16x128xf32> to vector<16x128xbf16>
    %312 = vector.extract_strided_slice %206 {offsets = [128, 0], sizes = [128, 256], strides = [1, 1]} : vector<256x256xbf16> to vector<128x256xbf16>
    %cst_127 = arith.constant dense<0.000000e+00> : vector<16x256xf32>
    %313 = tpu.matmul %311, %312, %cst_127 {dimension_numbers = #tpu.dot_dimension_numbers<[1], [0], [0], [1], [0, 0, 1, 1], [], []>} : vector<16x128xbf16>, vector<128x256xbf16>, vector<16x256xf32> -> vector<16x256xf32>
    %314 = arith.addf %290, %313 : vector<16x256xf32>
    %315 = tpu.concatenate %262, %314 in 0 : vector<16x256xf32>, vector<16x256xf32> -> vector<32x256xf32>
    %316 = vector.broadcast %207 : vector<1x256xf32> to vector<32x256xf32>
    %317 = arith.addf %315, %316 : vector<32x256xf32>
    %318 = arith.addf %317, %157 : vector<32x256xf32>
    %c0_128 = arith.constant 0 : index
    %c0_129 = arith.constant 0 : index
    %319 = vector.load %arg19[%c0_128, %c0_129] : memref<1x256xf32, #tpu.memory_space<vmem>>, vector<1x256xf32>
    %c0_130 = arith.constant 0 : index
    %c0_131 = arith.constant 0 : index
    %320 = vector.load %arg20[%c0_130, %c0_131] : memref<1x256xf32, #tpu.memory_space<vmem>>, vector<1x256xf32>
    %cst_132 = arith.constant dense<0.000000e+00> : vector<32xf32>
    %321 = vector.multi_reduction <add>, %318, %cst_132 [1] : vector<32x256xf32> to vector<32xf32>
    %322 = vector.shape_cast %321 : vector<32xf32> to vector<32x1xf32>
    %cst_133 = arith.constant 3.906250e-03 : f32
    %323 = vector.broadcast %cst_133 : f32 to vector<32x1xf32>
    %324 = arith.mulf %322, %323 : vector<32x1xf32>
    %325 = arith.mulf %318, %318 : vector<32x256xf32>
    %cst_134 = arith.constant dense<0.000000e+00> : vector<32xf32>
    %326 = vector.multi_reduction <add>, %325, %cst_134 [1] : vector<32x256xf32> to vector<32xf32>
    %327 = vector.shape_cast %326 : vector<32xf32> to vector<32x1xf32>
    %cst_135 = arith.constant 3.906250e-03 : f32
    %328 = vector.broadcast %cst_135 : f32 to vector<32x1xf32>
    %329 = arith.mulf %327, %328 : vector<32x1xf32>
    %330 = arith.mulf %324, %324 : vector<32x1xf32>
    %331 = arith.subf %329, %330 : vector<32x1xf32>
    %cst_136 = arith.constant 0.000000e+00 : f32
    %332 = vector.broadcast %cst_136 : f32 to vector<32x1xf32>
    %333 = arith.maximumf %331, %332 : vector<32x1xf32>
    %334 = vector.broadcast %324 : vector<32x1xf32> to vector<32x256xf32>
    %335 = arith.subf %318, %334 : vector<32x256xf32>
    %cst_137 = arith.constant 9.99999996E-13 : f32
    %336 = vector.broadcast %cst_137 : f32 to vector<32x1xf32>
    %337 = arith.addf %333, %336 : vector<32x1xf32>
    %338 = math.rsqrt %337 : vector<32x1xf32>
    %339 = vector.broadcast %338 : vector<32x1xf32> to vector<32x256xf32>
    %340 = arith.mulf %335, %339 : vector<32x256xf32>
    %341 = vector.broadcast %319 : vector<1x256xf32> to vector<32x256xf32>
    %342 = arith.mulf %340, %341 : vector<32x256xf32>
    %343 = vector.broadcast %320 : vector<1x256xf32> to vector<32x256xf32>
    %344 = arith.addf %342, %343 : vector<32x256xf32>
    %345 = arith.truncf %344 : vector<32x256xf32> to vector<32x256xbf16>
    %c0_138 = arith.constant 0 : index
    %c0_139 = arith.constant 0 : index
    %346 = vector.load %arg21[%c0_138, %c0_139] : memref<256x512xbf16, #tpu.memory_space<vmem>>, vector<256x512xbf16>
    %cst_140 = arith.constant dense<0.000000e+00> : vector<32x512xf32>
    %347 = tpu.matmul %345, %346, %cst_140 {dimension_numbers = #tpu.dot_dimension_numbers<[1], [0], [0], [1], [0, 0, 1, 1], [], []>} : vector<32x256xbf16>, vector<256x512xbf16>, vector<32x512xf32> -> vector<32x512xf32>
    %c0_141 = arith.constant 0 : index
    %c0_142 = arith.constant 0 : index
    %348 = vector.load %arg22[%c0_141, %c0_142] : memref<1x512xf32, #tpu.memory_space<vmem>>, vector<1x512xf32>
    %349 = vector.broadcast %348 : vector<1x512xf32> to vector<32x512xf32>
    %350 = arith.addf %347, %349 : vector<32x512xf32>
    %cst_143 = arith.constant 0.000000e+00 : f32
    %351 = vector.broadcast %cst_143 : f32 to vector<32x512xf32>
    %352 = arith.maximumf %350, %351 : vector<32x512xf32>
    %353 = arith.truncf %352 : vector<32x512xf32> to vector<32x512xbf16>
    %c0_144 = arith.constant 0 : index
    %c0_145 = arith.constant 0 : index
    %354 = vector.load %arg23[%c0_144, %c0_145] : memref<512x256xbf16, #tpu.memory_space<vmem>>, vector<512x256xbf16>
    %cst_146 = arith.constant dense<0.000000e+00> : vector<32x256xf32>
    %355 = tpu.matmul %353, %354, %cst_146 {dimension_numbers = #tpu.dot_dimension_numbers<[1], [0], [0], [1], [0, 0, 1, 1], [], []>} : vector<32x512xbf16>, vector<512x256xbf16>, vector<32x256xf32> -> vector<32x256xf32>
    %c0_147 = arith.constant 0 : index
    %c0_148 = arith.constant 0 : index
    %356 = vector.load %arg24[%c0_147, %c0_148] : memref<1x256xf32, #tpu.memory_space<vmem>>, vector<1x256xf32>
    %357 = vector.broadcast %356 : vector<1x256xf32> to vector<32x256xf32>
    %358 = arith.addf %355, %357 : vector<32x256xf32>
    %359 = arith.addf %358, %318 : vector<32x256xf32>
    %c0_149 = arith.constant 0 : index
    %c0_150 = arith.constant 0 : index
    %360 = vector.load %arg25[%c0_149, %c0_150] : memref<32x256xf32, #tpu.memory_space<vmem>>, vector<32x256xf32>
    tpu.vector_store %arg25[%c0_149, %c0_150], %359 {strides = array<i32>} : memref<32x256xf32, #tpu.memory_space<vmem>>, vector<32x256xf32>,
    return
  }
  func.func @transform_0(%arg0: i32) -> (i32, i32) {
    %c0_i32 = arith.constant 0 : i32
    %c0_i32_0 = arith.constant 0 : i32
    return %arg0, %c0_i32 : i32, i32
  }
  func.func @transform_1(%arg0: i32) -> (i32, i32, i32) {
    %c0_i32 = arith.constant 0 : i32
    %c0_i32_0 = arith.constant 0 : i32
    %c0_i32_1 = arith.constant 0 : i32
    return %arg0, %c0_i32, %c0_i32_0 : i32, i32, i32
  }
  func.func @transform_2(%arg0: i32) -> (i32, i32) {
    %c0_i32 = arith.constant 0 : i32
    %c0_i32_0 = arith.constant 0 : i32
    return %arg0, %c0_i32 : i32, i32
  }
  func.func @transform_3(%arg0: i32) -> (i32, i32, i32) {
    %c0_i32 = arith.constant 0 : i32
    %c0_i32_0 = arith.constant 0 : i32
    %c0_i32_1 = arith.constant 0 : i32
    return %arg0, %c0_i32, %c0_i32_0 : i32, i32, i32
  }
  func.func @transform_4(%arg0: i32) -> (i32, i32) {
    %c0_i32 = arith.constant 0 : i32
    %c0_i32_0 = arith.constant 0 : i32
    %c0_i32_1 = arith.constant 0 : i32
    return %c0_i32, %c0_i32_0 : i32, i32
  }
  func.func @transform_5(%arg0: i32) -> (i32, i32) {
    %c0_i32 = arith.constant 0 : i32
    %c0_i32_0 = arith.constant 0 : i32
    %c0_i32_1 = arith.constant 0 : i32
    return %c0_i32, %c0_i32_0 : i32, i32
  }
  func.func @transform_6(%arg0: i32) -> (i32, i32) {
    %c0_i32 = arith.constant 0 : i32
    %c0_i32_0 = arith.constant 0 : i32
    %c0_i32_1 = arith.constant 0 : i32
    return %c0_i32, %c0_i32_0 : i32, i32
  }
  func.func @transform_7(%arg0: i32) -> (i32, i32) {
    %c0_i32 = arith.constant 0 : i32
    %c0_i32_0 = arith.constant 0 : i32
    %c0_i32_1 = arith.constant 0 : i32
    return %c0_i32, %c0_i32_0 : i32, i32
  }
  func.func @transform_8(%arg0: i32) -> (i32, i32) {
    %c0_i32 = arith.constant 0 : i32
    %c0_i32_0 = arith.constant 0 : i32
    %c0_i32_1 = arith.constant 0 : i32
    return %c0_i32, %c0_i32_0 : i32, i32
  }
  func.func @transform_9(%arg0: i32) -> (i32, i32) {
    %c0_i32 = arith.constant 0 : i32
    %c0_i32_0 = arith.constant 0 : i32
    %c0_i32_1 = arith.constant 0 : i32
    return %c0_i32, %c0_i32_0 : i32, i32
  }
  func.func @transform_10(%arg0: i32) -> (i32, i32) {
    %c0_i32 = arith.constant 0 : i32
    %c0_i32_0 = arith.constant 0 : i32
    %c0_i32_1 = arith.constant 0 : i32
    return %c0_i32, %c0_i32_0 : i32, i32
  }
  func.func @transform_11(%arg0: i32) -> (i32, i32) {
    %c0_i32 = arith.constant 0 : i32
    %c0_i32_0 = arith.constant 0 : i32
    %c0_i32_1 = arith.constant 0 : i32
    return %c0_i32, %c0_i32_0 : i32, i32
  }
  func.func @transform_12(%arg0: i32) -> (i32, i32) {
    %c0_i32 = arith.constant 0 : i32
    %c0_i32_0 = arith.constant 0 : i32
    %c0_i32_1 = arith.constant 0 : i32
    return %c0_i32, %c0_i32_0 : i32, i32
  }
  func.func @transform_13(%arg0: i32) -> (i32, i32) {
    %c0_i32 = arith.constant 0 : i32
    %c0_i32_0 = arith.constant 0 : i32
    %c0_i32_1 = arith.constant 0 : i32
    return %c0_i32, %c0_i32_0 : i32, i32
  }
  func.func @transform_14(%arg0: i32) -> (i32, i32) {
    %c0_i32 = arith.constant 0 : i32
    %c0_i32_0 = arith.constant 0 : i32
    %c0_i32_1 = arith.constant 0 : i32
    return %c0_i32, %c0_i32_0 : i32, i32
  }
  func.func @transform_15(%arg0: i32) -> (i32, i32) {
    %c0_i32 = arith.constant 0 : i32
    %c0_i32_0 = arith.constant 0 : i32
    %c0_i32_1 = arith.constant 0 : i32
    return %c0_i32, %c0_i32_0 : i32, i32
  }
  func.func @transform_16(%arg0: i32) -> (i32, i32) {
    %c0_i32 = arith.constant 0 : i32
    %c0_i32_0 = arith.constant 0 : i32
    %c0_i32_1 = arith.constant 0 : i32
    return %c0_i32, %c0_i32_0 : i32, i32
  }
  func.func @transform_17(%arg0: i32) -> (i32, i32) {
    %c0_i32 = arith.constant 0 : i32
    %c0_i32_0 = arith.constant 0 : i32
    %c0_i32_1 = arith.constant 0 : i32
    return %c0_i32, %c0_i32_0 : i32, i32
  }
  func.func @transform_18(%arg0: i32) -> (i32, i32) {
    %c0_i32 = arith.constant 0 : i32
    %c0_i32_0 = arith.constant 0 : i32
    %c0_i32_1 = arith.constant 0 : i32
    return %c0_i32, %c0_i32_0 : i32, i32
  }
  func.func @transform_19(%arg0: i32) -> (i32, i32) {
    %c0_i32 = arith.constant 0 : i32
    %c0_i32_0 = arith.constant 0 : i32
    %c0_i32_1 = arith.constant 0 : i32
    return %c0_i32, %c0_i32_0 : i32, i32
  }
  func.func @transform_20(%arg0: i32) -> (i32, i32) {
    %c0_i32 = arith.constant 0 : i32
    %c0_i32_0 = arith.constant 0 : i32
    %c0_i32_1 = arith.constant 0 : i32
    return %c0_i32, %c0_i32_0 : i32, i32
  }
  func.func @transform_21(%arg0: i32) -> (i32, i32) {
    %c0_i32 = arith.constant 0 : i32
    %c0_i32_0 = arith.constant 0 : i32
    %c0_i32_1 = arith.constant 0 : i32
    return %c0_i32, %c0_i32_0 : i32, i32
  }
  func.func @transform_22(%arg0: i32) -> (i32, i32) {
    %c0_i32 = arith.constant 0 : i32
    %c0_i32_0 = arith.constant 0 : i32
    %c0_i32_1 = arith.constant 0 : i32
    return %c0_i32, %c0_i32_0 : i32, i32
  }
  func.func @transform_23(%arg0: i32) -> (i32, i32) {
    %c0_i32 = arith.constant 0 : i32
    %c0_i32_0 = arith.constant 0 : i32
    %c0_i32_1 = arith.constant 0 : i32
    return %c0_i32, %c0_i32_0 : i32, i32
  }
  func.func @transform_24(%arg0: i32) -> (i32, i32) {
    %c0_i32 = arith.constant 0 : i32
    %c0_i32_0 = arith.constant 0 : i32
    return %arg0, %c0_i32 : i32, i32
  }
  func.func @transform_25(%arg0: i32) -> (i32, i32, i32, i32) {
    %c0_i32 = arith.constant 0 : i32
    %c0_i32_0 = arith.constant 0 : i32
    %c0_i32_1 = arith.constant 0 : i32
    %c0_i32_2 = arith.constant 0 : i32
    return %arg0, %c0_i32, %c0_i32_0, %c0_i32_1 : i32, i32, i32, i32
  }
  func.func @transform_26(%arg0: i32) -> (i32, i32, i32, i32) {
    %c0_i32 = arith.constant 0 : i32
    %c0_i32_0 = arith.constant 0 : i32
    %c0_i32_1 = arith.constant 0 : i32
    %c0_i32_2 = arith.constant 0 : i32
    return %arg0, %c0_i32, %c0_i32_0, %c0_i32_1 : i32, i32, i32, i32
  }
}

</mosaic_0001>

<bundles_post_ra>
// kernel: tpu_custom_call.1
= control target key start
LH: loop header
LB: loop body
LE: loop exit
PB: predicated region body
PF: predicated region fallthrough
CT: control target
= control target key end

     0   :  { %s10114_s0 = inlined_call_operand.hbm [shape: bf16[64,256], index: 0, kind: input, shape index: {}]   ;;  %s10115_s1 = inlined_call_operand.hbm [shape: bf16[4,16,16], index: 1, kind: input, shape index: {}]   ;;  %s10116_s2 = inlined_call_operand.hbm [shape: bf16[128,256], index: 2, kind: input, shape index: {}]   ;;  %s10117_s3 = inlined_call_operand.hbm [shape: bf16[4,16,32], index: 3, kind: input, shape index: {}]   ;;  %s10118_s4 = inlined_call_operand.hbm [shape: f32[1,256], index: 4, kind: input, shape index: {}]   ;;  %s10119_s5 = inlined_call_operand.vmem [shape: f32[1,256], index: 5, kind: input, shape index: {}]   ;;  %s10120_s6 = inlined_call_operand.hbm [shape: bf16[256,768], index: 6, kind: input, shape index: {}]   ;;  %s10121_s7 = inlined_call_operand.vmem [shape: f32[1,768], index: 7, kind: input, shape index: {}]   ;;  %s10122_s8 = inlined_call_operand.hbm [shape: bf16[256,256], index: 8, kind: input, shape index: {}]   ;;  %s10123_s9 = inlined_call_operand.vmem [shape: f32[1,256], index: 9, kind: input, shape index: {}]   ;;  %s10124_s10 = inlined_call_operand.vmem [shape: f32[1,256], index: 10, kind: input, shape index: {}]   ;;  %s10125_s11 = inlined_call_operand.vmem [shape: f32[1,256], index: 11, kind: input, shape index: {}]   ;;  %s10126_s12 = inlined_call_operand.hbm [shape: bf16[256,256], index: 12, kind: input, shape index: {}]   ;;  %s10127_s13 = inlined_call_operand.vmem [shape: f32[1,256], index: 13, kind: input, shape index: {}]   ;;  %s10128_s14 = inlined_call_operand.hbm [shape: bf16[256,512], index: 14, kind: input, shape index: {}]   ;;  %s10129_s15 = inlined_call_operand.vmem [shape: f32[1,512], index: 15, kind: input, shape index: {}]   ;;  %s10130_s16 = inlined_call_operand.hbm [shape: bf16[256,256], index: 16, kind: input, shape index: {}]   ;;  %s10131_s17 = inlined_call_operand.vmem [shape: f32[1,256], index: 17, kind: input, shape index: {}]   ;;  %s10132_s18 = inlined_call_operand.vmem [shape: f32[1,256], index: 18, kind: input, shape index: {}]   ;;  %s10133_s19 = inlined_call_operand.vmem [shape: f32[1,256], index: 19, kind: input, shape index: {}]   ;;  %s10134_s20 = inlined_call_operand.hbm [shape: bf16[256,512], index: 20, kind: input, shape index: {}]   ;;  %s10135_s21 = inlined_call_operand.vmem [shape: f32[1,512], index: 21, kind: input, shape index: {}]   ;;  %s10136_s22 = inlined_call_operand.hbm [shape: bf16[512,256], index: 22, kind: input, shape index: {}]   ;;  %s10137_s23 = inlined_call_operand.vmem [shape: f32[1,256], index: 23, kind: input, shape index: {}]   ;;  %s10138_s24 = inlined_call_operand.hbm [shape: f32[64,256], index: 24, kind: output, shape index: {0}]   ;;  %s10139_s25 = inlined_call_operand.hbm [shape: bf16[4,2,16,16], index: 25, kind: output, shape index: {1}]   ;;  %s10140_s26 = inlined_call_operand.hbm [shape: bf16[4,2,16,32], index: 26, kind: output, shape index: {2}]  }
   0x1   :  { %10206 = sst [smem:[#allocation56_spill]] %s10114_s0 }
   0x2   :  { %10207 = sst [smem:[#allocation57_spill]] %s10115_s1 }
   0x3   :  { %10208 = sst [smem:[#allocation58_spill]] %s10116_s2 }
   0x4   :  { %10209 = sst [smem:[#allocation59_spill]] %s10117_s3 }
   0x5   :  { %10210 = sst [smem:[#allocation60_spill]] %s10118_s4 }
   0x6   :  { %10211 = sst [smem:[#allocation61_spill]] %s10119_s5 }
   0x7   :  { %10212 = sst [smem:[#allocation62_spill]] %s10120_s6 }
   0x8   :  { %10213 = sst [smem:[#allocation63_spill]] %s10121_s7 }
   0x9   :  { %10214 = sst [smem:[#allocation64_spill]] %s10122_s8 }
   0xa   :  { %10215 = sst [smem:[#allocation65_spill]] %s10123_s9 }
   0xb   :  { %10216 = sst [smem:[#allocation66_spill]] %s10124_s10 }
   0xc   :  { %10217 = sst [smem:[#allocation67_spill]] %s10125_s11 }
   0xd   :  { %10218 = sst [smem:[#allocation68_spill]] %s10126_s12 }
   0xe   :  { %10219 = sst [smem:[#allocation69_spill]] %s10127_s13 }
   0xf   :  { %10220 = sst [smem:[#allocation70_spill]] %s10129_s15 }
  0x10   :  { %10221 = sst [smem:[#allocation71_spill]] %s10130_s16 }
  0x11   :  { %10222 = sst [smem:[#allocation72_spill]] %s10131_s17 }
  0x12   :  { %10223 = sst [smem:[#allocation73_spill]] %s10132_s18 }
  0x13   :  { %10224 = sst [smem:[#allocation74_spill]] %s10133_s19 }
  0x14   :  { %10225 = sst [smem:[#allocation75_spill]] %s10135_s21 }
  0x15   :  { %10226 = sst [smem:[#allocation76_spill]] %s10137_s23 }
  0x16   :  { %10227 = sst [smem:[#allocation77_spill]] %s10138_s24 }
  0x17   :  { %10228 = sst [smem:[#allocation78_spill]] %s10139_s25 }
  0x18   :  { %10229 = sst [smem:[#allocation79_spill]] %s10140_s26 }
  0x19   :  { %32 = vsyncpa [#allocation3], 0 }
  0x1a   :  { %34 = vsyncpa [#allocation3 + $0x1], 0 }
  0x1b   :  { %35 = vsyncpa [#allocation6], 0 }
  0x1c   :  { %37 = vsyncpa [#allocation6 + $0x1], 0 }
  0x1d   :  { %38 = vsyncpa [#allocation9], 0 }
  0x1e   :  { %40 = vsyncpa [#allocation9 + $0x1], 0 }
  0x1f   :  { %41 = vsyncpa [#allocation12], 0 }
  0x20   :  { %42 = vsyncpa [#allocation15], 0 }
  0x21   :  { %43 = vsyncpa [#allocation18], 0 }
  0x22   :  { %44 = vsyncpa [#allocation21], 0 }
  0x23   :  { %45 = vsyncpa [#allocation4], 0 }
  0x24   :  { %47 = vsyncpa [#allocation4 + $0x1], 0 }
  0x25   :  { %48 = vsyncpa [#allocation24], 0 }
  0x26   :  { %50 = vsyncpa [#allocation24 + $0x1], 0  ;;  %s8507_s27 = smov 0   ;;  %s8509_s3 = smov 0  }
  0x27   :  { %s8511_s7 = smov 0   ;;  %s8513_s28 = smov 0  }
  0x28 LB: > { %10230 = sst [smem:[#allocation36_spill]] %s8328_s27  ;;  %s8342_s8 = smov [#allocation10]   ;;  %s8340_s28 = sphi %s8513_s28, %s10339_s28   ;;  %s8336_s7 = sphi %s8511_s7, %s10342_s7   ;;  %s8332_s3 = sphi %s8509_s3, %s10341_s3   ;;  %s8328_s27 = sphi %s8507_s27, %s10340_s27  }
  0x29   : > { %10231 = sst [smem:[#allocation37_spill]] %s8332_s3  ;;  %s676_s4 = sshll.u32 %s8342_s8, 4  ;;  %s677_s4 = int_to_ptr.vmem [resolvable:$true] %s676_s4 }
  0x2a   : > { %10232 = sst [smem:[#allocation38_spill]] %s8336_s7  ;;  %s8528_s29 = sadd.s32 4294967295, %s8340_s28  }
  0x2b   : > { %10233 = sst [smem:[#allocation39_spill]] %s8528_s29  ;;  %p6275_p0 = scmp.ge.s32.totalorder %s8340_s28, 1 }
  0x2c   : > { %p10151_p1 = scmp.eq.s32.totalorder %s8528_s29, 0  ;;  %p663_p2 = scmp.lt.s32.totalorder %s8340_s28, 3 }
  0x2d   : > { %s8343_s9 = smov [#allocation11]   ;;  %s8344_s5 = smov [#allocation14]  }
  0x2e   : > { %p8533_p3 = pnand %p6275_p0, %p663_p2  ;;  %s689_s30 = sshll.u32 %s8343_s9, 4  ;;  %s8540_s30 = int_to_ptr.vmem [resolvable:$true] %s689_s30 }
  0x2f   : > { %s8548_s10 = sshll.u32 %s8344_s5, 4  ;;  %s10237_s8 = sld [smem:[#allocation60_spill]]  ;;  %s728_s10 = int_to_ptr.vmem [resolvable:$true] %s8548_s10 }
  0x30   : > { %s10234_s0 = scalar_select %p8533_p3, 1, 0 }
  0x31   : > { %p7045_p5 = pneg %p8533_p3 }
  0x32   : > { %10235 = sst [smem:[#allocation40_spill]] %s10234_s0 }
  0x33   : > { %p8544_p6 = pnand %p7045_p5, %p10151_p1 }
  0x35   : > { %s10236_s2 = scalar_select %p8544_p6, 1, 0 }
  0x36   : > { %s7842_s24 = scalar_lea.hbm %s10237_s8, 32  ;;  %p8558_p8 = pneg %p8544_p6 }
  0x37   : > { %p7843_p7 = scmp.ne.s32.totalorder %s10237_s8, %s7842_s24  ;;  %p7849_p11 = scmp.lt.u32.totalorder %s7842_s24, %s10237_s8 }
  0x38   : > { %s10238_s9 = scalar_select %p8558_p8, 1, 0 }
  0x39   : > { %p7845_p9 = pnand %p8558_p8, %p7843_p7 }
  0x3b   : > { %p7846_p10 = pneg %p7845_p9 }
  0x3d   : > { %p7851_p12 = pnand %p7849_p11, %p7846_p10 }
  0x3f   : > { %7854 = shalt.err (!%p7851_p12)
}
  0x40   : > { %s7855_s6 = scalar_lea.vmem %s677_s4, 32  ;;  %p7863_p5 = scmp.lt.s32.totalorder %s677_s4, %s677_s4 }
  0x41   : > { %p7856_p13 = scmp.ne.s32.totalorder %s677_s4, %s7855_s6  ;;  %p7864_p4 = scmp.lt.s32.totalorder %s7855_s6, %s7855_s6 }
  0x43   : > { %p7858_p0 = pnand %p7856_p13, %p8558_p8  ;;  %p7865_p1 = por %p7864_p4, %p7863_p5 }
  0x45   : > { %p7859_p2 = pneg %p7858_p0 }
  0x47   : > { %p7866_p3 = pnand %p7865_p1, %p7859_p2 }
  0x49   : > { %7869 = shalt.err (!%p7866_p3)
}
  0x4a   : > { %7048 = dma.hbm_to_vmem [thread:$0]  (!%p8544_p6), %s10237_s8, 32, %s677_s4, [#allocation9]  }
  0x4b   : > { %s10239_s1 = sld [smem:[#allocation62_spill]] }
  0x51   : > { %s7870_s5 = scalar_lea.hbm %s10239_s1, 12288 }
  0x52   : > { %p7871_p7 = scmp.ne.s32.totalorder %s10239_s1, %s7870_s5  ;;  %p7877_p1 = scmp.lt.u32.totalorder %s7870_s5, %s10239_s1 }
  0x54   : > { %p7873_p9 = pnand %p7871_p7, %p8558_p8 }
  0x56   : > { %p7874_p4 = pneg %p7873_p9 }
  0x58   : > { %p7879_p3 = pnand %p7877_p1, %p7874_p4 }
  0x5a   : > { %7882 = shalt.err (!%p7879_p3)
}
  0x5b   : > { %s7883_s4 = scalar_lea.vmem %s8540_s30, 12288  ;;  %p7891_p13 = scmp.lt.s32.totalorder %s8540_s30, %s8540_s30 }
  0x5c   : > { %p7884_p10 = scmp.ne.s32.totalorder %s8540_s30, %s7883_s4  ;;  %p7892_p0 = scmp.lt.s32.totalorder %s7883_s4, %s7883_s4 }
  0x5e   : > { %p7886_p11 = pnand %p7884_p10, %p8558_p8  ;;  %p7893_p2 = por %p7892_p0, %p7891_p13 }
  0x60   : > { %p7887_p12 = pneg %p7886_p11 }
  0x62   : > { %p7894_p5 = pnand %p7893_p2, %p7887_p12 }
  0x64   : > { %7897 = shalt.err (!%p7894_p5)
}
  0x65   : > { %s8345_s19 = smov 384   ;;  %s8346_s18 = smov 24  }
  0x66   : > { %7051 = dma.hbm_to_vmem [thread:$0]  (!%p8544_p6), %s10239_s1, 12288, %s8540_s30, [#allocation12], %s8345_s19, %s8345_s19, %s8346_s18  }
  0x67   : > { %s10240_s12 = sld [smem:[#allocation68_spill]] }
  0x6d   : > { %s7898_s25 = scalar_lea.hbm %s10240_s12, 4096 }
  0x6e   : > { %p7899_p7 = scmp.ne.s32.totalorder %s10240_s12, %s7898_s25  ;;  %p7905_p1 = scmp.lt.u32.totalorder %s7898_s25, %s10240_s12 }
  0x70   : > { %p7901_p9 = pnand %p7899_p7, %p8558_p8 }
  0x72   : > { %p7902_p4 = pneg %p7901_p9 }
  0x74   : > { %p7907_p3 = pnand %p7905_p1, %p7902_p4 }
  0x76   : > { %7910 = shalt.err (!%p7907_p3)
}
  0x77   : > { %s7911_s21 = scalar_lea.vmem %s728_s10, 4096  ;;  %p7919_p13 = scmp.lt.s32.totalorder %s728_s10, %s728_s10 }
  0x78   : > { %p7912_p10 = scmp.ne.s32.totalorder %s728_s10, %s7911_s21  ;;  %p7920_p0 = scmp.lt.s32.totalorder %s7911_s21, %s7911_s21 }
  0x7a   : > { %p7914_p11 = pnand %p7912_p10, %p8558_p8  ;;  %p7921_p2 = por %p7920_p0, %p7919_p13 }
  0x7c   : > { %p7915_p12 = pneg %p7914_p11 }
  0x7e   : > { %p7922_p5 = pnand %p7921_p2, %p7915_p12 }
  0x80   : > { %7925 = shalt.err (!%p7922_p5)
}
  0x81   : > { %s10156_s30 = smov 128   ;;  %s10158_s19 = smov 8  }
  0x82   : > { %7057 = dma.hbm_to_vmem [thread:$0]  (!%p8544_p6), %s10240_s12, 4096, %s728_s10, [#allocation15], %s10156_s30, %s10156_s30, %s10158_s19  }
  0x83   : > { %s8349_s23 = smov [#allocation17]   ;;  %s10241_s16 = sld [smem:[#allocation71_spill]] }
  0x84   : > { %s759_s26 = sshll.u32 %s8349_s23, 4  ;;  %s760_s26 = int_to_ptr.vmem [resolvable:$true] %s759_s26 }
  0x89   : > { %s7926_s5 = scalar_lea.hbm %s10241_s16, 4096 }
  0x8a   : > { %p7927_p7 = scmp.ne.s32.totalorder %s10241_s16, %s7926_s5  ;;  %p7933_p1 = scmp.lt.u32.totalorder %s7926_s5, %s10241_s16 }
  0x8c   : > { %p7929_p9 = pnand %p7927_p7, %p8558_p8 }
  0x8e   : > { %p7930_p4 = pneg %p7929_p9 }
  0x90   : > { %p7935_p3 = pnand %p7933_p1, %p7930_p4 }
  0x92   : > { %7938 = shalt.err (!%p7935_p3)
}
  0x93   : > { %s7939_s10 = scalar_lea.vmem %s760_s26, 4096  ;;  %p7947_p13 = scmp.lt.s32.totalorder %s760_s26, %s760_s26 }
  0x94   : > { %p7940_p10 = scmp.ne.s32.totalorder %s760_s26, %s7939_s10  ;;  %p7948_p0 = scmp.lt.s32.totalorder %s7939_s10, %s7939_s10 }
  0x96   : > { %p7942_p11 = pnand %p7940_p10, %p8558_p8  ;;  %p7949_p2 = por %p7948_p0, %p7947_p13 }
  0x98   : > { %p7943_p12 = pneg %p7942_p11 }
  0x9a   : > { %p7950_p5 = pnand %p7949_p2, %p7943_p12 }
  0x9c   : > { %7953 = shalt.err (!%p7950_p5)
}
  0x9d   : > { %7063 = dma.hbm_to_vmem [thread:$0]  (!%p8544_p6), %s10241_s16, 4096, %s760_s26, [#allocation18], %s10156_s30, %s10156_s30, %s10158_s19  }
  0x9e   : > { %s10155_s18 = sadd.s32 4294967294, %s8340_s28   ;;  %s8642_s23 = sadd.s32 1, %s8340_s28  }
  0x9f   : > { %10242 = sst [smem:[#allocation41_spill]] %s8642_s23  ;;  %s60_s24 = ssub.s32 %s8340_s28, %s8642_s23 }
  0xa0   : > { %s63_s25 = sadd.s32 1, %s8336_s7  ;;  %p61_p7 = scmp.eq.s32.totalorder %s60_s24, 0 }
  0xa1   : > { %p70_p9 = scmp.ne.s32.totalorder %s8336_s7, %s8332_s3  ;;  %p71_p4 = scmp.eq.s32.totalorder %s8340_s28, 0 }
  0xa2   : > { %p76_p1 = scmp.ne.s32.totalorder %s8332_s3, %s8328_s27  ;;  %p10244_p10 = scmp.eq.s32.totalorder %s8528_s29, 0 }
  0xa3   : > { %s8653_s5 = scalar_select %p61_p7, %s8336_s7, %s63_s25  }
  0xa4   : > { %p72_p3 = por %p71_p4, %p70_p9  ;;  %p8657_p11 = por %p10244_p10, %p76_p1 }
  0xa5   : > { %10243 = sst [smem:[#allocation42_spill]] %s8653_s5  ;;  %p598_p12 = scmp.eq.s32.totalorder %s8528_s29, 1 }
  0xa6   : > { %s10245_s26 = scalar_select %p8657_p11, 1, 0 }
  0xa7   : > { %p604_p13 = scmp.eq.s32.totalorder %s10155_s18, 1  ;;  %p7101_p0 = scmp.lt.s32.totalorder %s8340_s28, 2 }
  0xa8   : > { %10246 = sst [smem:[#allocation43_spill]] %s10245_s26  ;;  %s8666_s6 = sand.u32 1, %s8336_s7  }
  0xa9   : > { %p8668_p2 = por %p598_p12, %p70_p9  ;;  %p8672_p5 = por %p604_p13, %p76_p1 }
  0xaa   : > { %p8676_p7 = pnand %p7101_p0, %p72_p3  ;;  %s10166_s1 = sand.u32 1, %s8340_s28  }
  0xab   : > { %s10247_s4 = scalar_select %p8668_p2, 1, 0 }
  0xac   : > { %s10249_s21 = scalar_select %p8672_p5, 1, 0 }
  0xad   : > { %10248 = sst [smem:[#allocation44_spill]] %s10247_s4  ;;  %s10161_s8 = sshll.u32 %s8666_s6, 4 }
  0xae   : > { %10250 = sst [smem:[#allocation45_spill]] %s10249_s21  ;;  %s10162_s24 = sshll.u32 %s8340_s28, 8 }
  0xaf   : > { %s10251_s10 = scalar_select %p8676_p7, 1, 0 }
  0xb0   : > { %s840_s25 = scalar_lea.vmem [#allocation5], %s10161_s8  ;;  %s10252_s12 = sld [smem:[#allocation57_spill]] }
  0xb1   : > { %s848_s18 = sshll.u32 %s840_s25, 4  ;;  %s8696_s5 = scalar_lea.sflag [#allocation6], %s10166_s1  ;;  %s8692_s18 = int_to_ptr.vmem [resolvable:$true] %s848_s18 }
  0xb2   : > { %p8702_p4 = pneg %p8676_p7 }
  0xb4   : > { %s10253_s25 = scalar_select %p8702_p4, 1, 0 }
  0xb6   : > { %s8690_s16 = scalar_lea.hbm %s10252_s12, %s10162_s24  ;;  %s7959_s8 = scalar_lea.hbm %s10252_s12, 512 }
  0xb7   : > { %s7954_s7 = scalar_lea.hbm %s8690_s16, 256  ;;  %p7960_p10 = scmp.lt.u32.totalorder %s8690_s16, %s10252_s12 }
  0xb8   : > { %p7955_p9 = scmp.ne.s32.totalorder %s8690_s16, %s7954_s7  ;;  %p7961_p12 = scmp.lt.u32.totalorder %s7959_s8, %s7954_s7 }
  0xb9   : > { %p7963_p0 = scmp.lt.u32.totalorder %s7954_s7, %s8690_s16 }
  0xba   : > { %p7957_p1 = pnand %p8702_p4, %p7955_p9  ;;  %p7962_p13 = por %p7961_p12, %p7960_p10 }
  0xbc   : > { %p7958_p3 = pneg %p7957_p1  ;;  %p7964_p5 = por %p7963_p0, %p7962_p13 }
  0xbe   : > { %p7965_p2 = pnand %p7964_p5, %p7958_p3 }
  0xc0   : > { %7968 = shalt.err (!%p7965_p2)
}
  0xc1   : > { %s7969_s1 = scalar_lea.vmem %s8692_s18, 256  ;;  %s8350_s30 = smov [#allocation5]  }
  0xc2   : > { %p7970_p9 = scmp.ne.s32.totalorder %s8692_s18, %s7969_s1  ;;  %s7974_s19 = sshll.u32 %s8350_s30, 4  ;;  %s7975_s19 = int_to_ptr.vmem [resolvable:$false] %s7974_s19 }
  0xc3   : > { %s7976_s23 = scalar_lea.vmem %s7975_s19, 512  ;;  %p7977_p6 = scmp.lt.s32.totalorder %s8692_s18, %s7975_s19 }
  0xc4   : > { %p7972_p1 = pnand %p7970_p9, %p8702_p4  ;;  %p7978_p8 = scmp.lt.s32.totalorder %s7976_s23, %s7969_s1 }
  0xc6   : > { %p7973_p11 = pneg %p7972_p1  ;;  %p7979_p10 = por %p7978_p8, %p7977_p6 }
  0xc8   : > { %p7980_p12 = pnand %p7979_p10, %p7973_p11 }
  0xca   : > { %7983 = shalt.err (!%p7980_p12)
}
  0xcb   : > { %s10181_s7 = smov 64   ;;  %s10186_s8 = smov 4  }
  0xcc   : > { %7076 = dma.hbm_to_vmem [thread:$0]  (!%p8676_p7), %s8690_s16, 256, %s8692_s18, %s8696_s5, %s10181_s7, %s10181_s7, %s10186_s8  }
  0xcd   : > { %s10254_s24 = sshll.u32 %s8340_s28, 8  ;;  %s10255_s19 = sld [smem:[#allocation59_spill]] }
  0xce   : > { %s10256_s12 = sshll.u32 %s8666_s6, 4  ;;  %s8353_s4 = smov [#allocation13]  }
  0xcf   : > { %s884_s21 = scalar_lea.vmem [#allocation8], %s10256_s12  ;;  %s705_s17 = sshll.u32 %s8353_s4, 4  ;;  %s706_s17 = int_to_ptr.vmem [resolvable:$true] %s705_s17 }
  0xd0   : > { %s892_s27 = sshll.u32 %s884_s21, 4  ;;  %s8354_s15 = smov [#allocation16]   ;;  %s8738_s27 = int_to_ptr.vmem [resolvable:$true] %s892_s27 }
  0xd1   : > { %s743_s13 = sshll.u32 %s8354_s15, 4  ;;  %s10257_s26 = sld [smem:[#allocation64_spill]]  ;;  %s744_s13 = int_to_ptr.vmem [resolvable:$true] %s743_s13 }
  0xd2   : > { %p10258_p8 = scmp.ne.s32.totalorder %s10238_s9, 0 }
  0xd3   : > { %s8734_s23 = scalar_lea.hbm %s10255_s19, %s10254_s24 }
  0xd7   : > { %s7984_s16 = scalar_lea.hbm %s10257_s26, 4096 }
  0xd8   : > { %p7985_p6 = scmp.ne.s32.totalorder %s10257_s26, %s7984_s16  ;;  %p7991_p5 = scmp.lt.u32.totalorder %s7984_s16, %s10257_s26 }
  0xda   : > { %p7987_p11 = pnand %p7985_p6, %p10258_p8 }
  0xdc   : > { %p7988_p2 = pneg %p7987_p11 }
  0xde   : > { %p7993_p3 = pnand %p7991_p5, %p7988_p2 }
  0xe0   : > { %7996 = shalt.err (!%p7993_p3)
}
  0xe1   : > { %s7997_s4 = scalar_lea.vmem %s706_s17, 4096  ;;  %p8005_p1 = scmp.lt.s32.totalorder %s706_s17, %s706_s17 }
  0xe2   : > { %p7998_p13 = scmp.ne.s32.totalorder %s706_s17, %s7997_s4  ;;  %p8006_p10 = scmp.lt.s32.totalorder %s7997_s4, %s7997_s4 }
  0xe4   : > { %p8000_p0 = pnand %p7998_p13, %p10258_p8  ;;  %p8007_p12 = por %p8006_p10, %p8005_p1 }
  0xe6   : > { %p8001_p9 = pneg %p8000_p0 }
  0xe8   : > { %p8008_p7 = pnand %p8007_p12, %p8001_p9 }
  0xea   : > { %8011 = shalt.err (!%p8008_p7)
}
  0xeb   : > { %p10259_p6 = scmp.ne.s32.totalorder %s10236_s2, 0  ;;  %s10260_s11 = smov 8  }
  0xec   : > { %s10261_s15 = smov 128   ;;  %s8012_s1 = scalar_lea.hbm %s10128_s14, 8192 }
  0xed   : > { %7054 = dma.hbm_to_vmem [thread:$0]  (!%p10259_p6), %s10257_s26, 4096, %s706_s17, [#allocation12], %s10261_s15, %s10261_s15, %s10260_s11  }
  0xee   : > { %p8013_p11 = scmp.ne.s32.totalorder %s10128_s14, %s8012_s1  ;;  %p8019_p5 = scmp.lt.u32.totalorder %s8012_s1, %s10128_s14 }
  0xf0   : > { %p8015_p7 = pnand %p8013_p11, %p10258_p8 }
  0xf2   : > { %p8016_p2 = pneg %p8015_p7 }
  0xf4   : > { %p8021_p3 = pnand %p8019_p5, %p8016_p2 }
  0xf6   : > { %8024 = shalt.err (!%p8021_p3)
}
  0xf7   : > { %s8025_s4 = scalar_lea.vmem %s744_s13, 8192  ;;  %p8033_p1 = scmp.lt.s32.totalorder %s744_s13, %s744_s13 }
  0xf8   : > { %p8026_p13 = scmp.ne.s32.totalorder %s744_s13, %s8025_s4  ;;  %p8034_p10 = scmp.lt.s32.totalorder %s8025_s4, %s8025_s4 }
  0xfa   : > { %p8028_p0 = pnand %p8026_p13, %p10258_p8  ;;  %p8035_p12 = por %p8034_p10, %p8033_p1 }
  0xfc   : > { %p8029_p9 = pneg %p8028_p0 }
  0xfe   : > { %p8036_p4 = pnand %p8035_p12, %p8029_p9 }
 0x100   : > { %8039 = shalt.err (!%p8036_p4)
}
 0x101   : > { %s8355_s17 = smov 256   ;;  %s8356_s29 = smov 16  }
 0x102   : > { %7060 = dma.hbm_to_vmem [thread:$0]  (!%p10259_p6), %s10128_s14, 8192, %s744_s13, [#allocation15], %s8355_s17, %s8355_s17, %s8356_s29  }
 0x103   : > { %s8357_s30 = smov [#allocation19]   ;;  %s8358_s16 = smov [#allocation20]  }
 0x104   : > { %s781_s1 = sshll.u32 %s8357_s30, 4  ;;  %s797_s18 = sshll.u32 %s8358_s16, 4  ;;  %s782_s1 = int_to_ptr.vmem [resolvable:$true] %s781_s1  ;;  %s798_s18 = int_to_ptr.vmem [resolvable:$true] %s797_s18 }
 0x105   : > { %s8040_s4 = scalar_lea.hbm %s10134_s20, 8192 }
 0x106   : > { %p8041_p4 = scmp.ne.s32.totalorder %s10134_s20, %s8040_s4  ;;  %p8047_p2 = scmp.lt.u32.totalorder %s8040_s4, %s10134_s20 }
 0x108   : > { %p8043_p11 = pnand %p8041_p4, %p10258_p8 }
 0x10a   : > { %p8044_p7 = pneg %p8043_p11 }
 0x10c   : > { %p8049_p5 = pnand %p8047_p2, %p8044_p7 }
 0x10e   : > { %8052 = shalt.err (!%p8049_p5)
}
 0x10f   : > { %s8053_s13 = scalar_lea.vmem %s782_s1, 8192  ;;  %p8061_p9 = scmp.lt.s32.totalorder %s782_s1, %s782_s1 }
 0x110   : > { %p8054_p3 = scmp.ne.s32.totalorder %s782_s1, %s8053_s13  ;;  %p8062_p1 = scmp.lt.s32.totalorder %s8053_s13, %s8053_s13 }
 0x112   : > { %p8056_p13 = pnand %p8054_p3, %p10258_p8  ;;  %p8063_p10 = por %p8062_p1, %p8061_p9 }
 0x114   : > { %p8057_p0 = pneg %p8056_p13 }
 0x116   : > { %p8064_p12 = pnand %p8063_p10, %p8057_p0 }
 0x118   : > { %8067 = shalt.err (!%p8064_p12)
}
 0x119   : > { %7066 = dma.hbm_to_vmem [thread:$0]  (!%p10259_p6), %s10134_s20, 8192, %s782_s1, [#allocation18], %s8355_s17, %s8355_s17, %s8356_s29  }
 0x11a   : > { %s8068_s7 = scalar_lea.hbm %s10136_s22, 8192 }
 0x11b   : > { %p8069_p4 = scmp.ne.s32.totalorder %s10136_s22, %s8068_s7  ;;  %p8075_p2 = scmp.lt.u32.totalorder %s8068_s7, %s10136_s22 }
 0x11d   : > { %p8071_p11 = pnand %p8069_p4, %p10258_p8 }
 0x11f   : > { %p8072_p7 = pneg %p8071_p11 }
 0x121   : > { %p8077_p5 = pnand %p8075_p2, %p8072_p7 }
 0x123   : > { %8080 = shalt.err (!%p8077_p5)
}
 0x124   : > { %s8081_s21 = scalar_lea.vmem %s798_s18, 8192  ;;  %p8089_p9 = scmp.lt.s32.totalorder %s798_s18, %s798_s18 }
 0x125   : > { %p8082_p3 = scmp.ne.s32.totalorder %s798_s18, %s8081_s21  ;;  %p8090_p1 = scmp.lt.s32.totalorder %s8081_s21, %s8081_s21 }
 0x127   : > { %p8084_p13 = pnand %p8082_p3, %p10258_p8  ;;  %p8091_p10 = por %p8090_p1, %p8089_p9 }
 0x129   : > { %p8085_p0 = pneg %p8084_p13 }
 0x12b   : > { %p8092_p12 = pnand %p8091_p10, %p8085_p0 }
 0x12d   : > { %8095 = shalt.err (!%p8092_p12)
}
 0x12e   : > { %7069 = dma.hbm_to_vmem [thread:$0]  (!%p10259_p6), %s10136_s22, 8192, %s798_s18, [#allocation21], %s10261_s15, %s10261_s15, %s10260_s11  }
 0x12f   : > { %s6285_s9 = sshll.u32 %s8666_s6, 5  ;;  %s6768_s1 = sshll.u32 %s8340_s28, 9 }
 0x130   : > { %s10262_s26 = sld [smem:[#allocation56_spill]]  ;;  %s818_s2 = scalar_lea.vmem [#allocation2], %s6285_s9 }
 0x131   : > { %s826_s3 = sshll.u32 %s818_s2, 4  ;;  %s6293_s0 = sshll.u32 %s8666_s6, 6  ;;  %s8826_s3 = int_to_ptr.vmem [resolvable:$true] %s826_s3 }
 0x132   : > { %s815_s7 = scalar_lea.sflag [#allocation3], %s8666_s6  ;;  %p10263_p6 = scmp.ne.s32.totalorder %s10253_s25, 0 }
 0x136   : > { %s8823_s8 = scalar_lea.hbm %s10262_s26, %s6768_s1  ;;  %s8101_s16 = scalar_lea.hbm %s10262_s26, 1024 }
 0x137   : > { %s8096_s24 = scalar_lea.hbm %s8823_s8, 512  ;;  %p8102_p7 = scmp.lt.u32.totalorder %s8823_s8, %s10262_s26 }
 0x138   : > { %p8097_p8 = scmp.ne.s32.totalorder %s8823_s8, %s8096_s24  ;;  %p8103_p2 = scmp.lt.u32.totalorder %s8101_s16, %s8096_s24 }
 0x139   : > { %p8105_p3 = scmp.lt.u32.totalorder %s8096_s24, %s8823_s8 }
 0x13a   : > { %p8099_p4 = pnand %p8097_p8, %p10263_p6  ;;  %p8104_p5 = por %p8103_p2, %p8102_p7 }
 0x13c   : > { %p8100_p11 = pneg %p8099_p4  ;;  %p8106_p13 = por %p8105_p3, %p8104_p5 }
 0x13e   : > { %p8107_p0 = pnand %p8106_p13, %p8100_p11 }
 0x140   : > { %8110 = shalt.err (!%p8107_p0)
}
 0x141   : > { %s8111_s17 = scalar_lea.vmem %s8826_s3, 512  ;;  %s8359_s29 = smov [#allocation2]  }
 0x142   : > { %p8112_p9 = scmp.ne.s32.totalorder %s8826_s3, %s8111_s17  ;;  %s8116_s9 = sshll.u32 %s8359_s29, 4  ;;  %s8117_s9 = int_to_ptr.vmem [resolvable:$false] %s8116_s9 }
 0x143   : > { %s8118_s1 = scalar_lea.vmem %s8117_s9, 1024  ;;  %p8119_p12 = scmp.lt.s32.totalorder %s8826_s3, %s8117_s9 }
 0x144   : > { %p8114_p1 = pnand %p8112_p9, %p10263_p6  ;;  %p8120_p8 = scmp.lt.s32.totalorder %s8118_s1, %s8111_s17 }
 0x146   : > { %p8115_p10 = pneg %p8114_p1  ;;  %p8121_p4 = por %p8120_p8, %p8119_p12 }
 0x148   : > { %p8122_p7 = pnand %p8121_p4, %p8115_p10 }
 0x14a   : > { %8125 = shalt.err (!%p8122_p7)
}
 0x14b   : > { %p10264_p11 = scmp.ne.s32.totalorder %s10251_s10, 0  ;;  %s6772_s4 = sshll.u32 %s8340_s28, 10 }
 0x14c   : > { %s862_s13 = scalar_lea.vmem [#allocation7], %s6293_s0  ;;  %s10265_s30 = sld [smem:[#allocation58_spill]] }
 0x14d   : > { %7073 = dma.hbm_to_vmem [thread:$0]  (!%p10264_p11), %s8823_s8, 512, %s8826_s3, %s815_s7, %s10261_s15, %s10261_s15, %s10260_s11  }
 0x14e   : > { %s870_s2 = sshll.u32 %s862_s13, 4  ;;  %s8863_s2 = int_to_ptr.vmem [resolvable:$true] %s870_s2 }
 0x152   : > { %s8861_s16 = scalar_lea.hbm %s10265_s30, %s6772_s4  ;;  %s8131_s3 = scalar_lea.hbm %s10265_s30, 2048 }
 0x153   : > { %s8126_s12 = scalar_lea.hbm %s8861_s16, 1024  ;;  %p8132_p13 = scmp.lt.u32.totalorder %s8861_s16, %s10265_s30 }
 0x154   : > { %p8127_p2 = scmp.ne.s32.totalorder %s8861_s16, %s8126_s12  ;;  %p8133_p0 = scmp.lt.u32.totalorder %s8131_s3, %s8126_s12 }
 0x155   : > { %p8135_p1 = scmp.lt.u32.totalorder %s8126_s12, %s8861_s16 }
 0x156   : > { %p8129_p5 = pnand %p8127_p2, %p10263_p6  ;;  %p8134_p9 = por %p8133_p0, %p8132_p13 }
 0x158   : > { %p8130_p3 = pneg %p8129_p5  ;;  %p8136_p10 = por %p8135_p1, %p8134_p9 }
 0x15a   : > { %p8137_p12 = pnand %p8136_p10, %p8130_p3 }
 0x15c   : > { %8140 = shalt.err (!%p8137_p12)
}
 0x15d   : > { %s8141_s21 = scalar_lea.vmem %s8863_s2, 1024  ;;  %s8360_s17 = smov [#allocation7]  }
 0x15e   : > { %p8142_p8 = scmp.ne.s32.totalorder %s8863_s2, %s8141_s21  ;;  %s8146_s29 = sshll.u32 %s8360_s17, 4  ;;  %s8147_s29 = int_to_ptr.vmem [resolvable:$false] %s8146_s29 }
 0x15f   : > { %s8148_s9 = scalar_lea.vmem %s8147_s29, 2048  ;;  %p8149_p2 = scmp.lt.s32.totalorder %s8863_s2, %s8147_s29 }
 0x160   : > { %p8144_p4 = pnand %p8142_p8, %p10263_p6  ;;  %p8150_p5 = scmp.lt.s32.totalorder %s8148_s9, %s8141_s21 }
 0x162   : > { %p8145_p7 = pneg %p8144_p4  ;;  %p8151_p13 = por %p8150_p5, %p8149_p2 }
 0x164   : > { %p8152_p0 = pnand %p8151_p13, %p8145_p7 }
 0x166   : > { %8155 = shalt.err (!%p8152_p0)
}
 0x167   : > { %7079 = dma.hbm_to_vmem [thread:$0]  (!%p10264_p11), %s8861_s16, 1024, %s8863_s2, %s8696_s5, %s10261_s15, %s10261_s15, %s10260_s11  }
 0x168   : > { %s10266_s1 = sand.u32 1, %s8340_s28   ;;  %s8156_s13 = scalar_lea.hbm %s8734_s23, 256 }
 0x169   : > { %s8892_s4 = scalar_lea.sflag [#allocation9], %s10266_s1  ;;  %p8157_p3 = scmp.ne.s32.totalorder %s8734_s23, %s8156_s13 }
 0x16a   : > { %s8161_s12 = scalar_lea.hbm %s10255_s19, 512  ;;  %p8162_p10 = scmp.lt.u32.totalorder %s8734_s23, %s10255_s19 }
 0x16b   : > { %p8159_p9 = pnand %p8157_p3, %p10263_p6  ;;  %p8163_p12 = scmp.lt.u32.totalorder %s8161_s12, %s8156_s13 }
 0x16c   : > { %p8165_p4 = scmp.lt.u32.totalorder %s8156_s13, %s8734_s23 }
 0x16d   : > { %p8160_p1 = pneg %p8159_p9  ;;  %p8164_p8 = por %p8163_p12, %p8162_p10 }
 0x16f   : > { %p8166_p7 = por %p8165_p4, %p8164_p8 }
 0x171   : > { %p8167_p2 = pnand %p8166_p7, %p8160_p1 }
 0x173   : > { %8170 = shalt.err (!%p8167_p2)
}
 0x174   : > { %s8171_s5 = scalar_lea.vmem %s8738_s27, 256  ;;  %s8361_s11 = smov [#allocation8]  }
 0x175   : > { %p8172_p5 = scmp.ne.s32.totalorder %s8738_s27, %s8171_s5  ;;  %s8176_s15 = sshll.u32 %s8361_s11, 4  ;;  %s8177_s15 = int_to_ptr.vmem [resolvable:$false] %s8176_s15 }
 0x176   : > { %s8178_s2 = scalar_lea.vmem %s8177_s15, 512  ;;  %p8179_p3 = scmp.lt.s32.totalorder %s8738_s27, %s8177_s15 }
 0x177   : > { %p8174_p13 = pnand %p8172_p5, %p10263_p6  ;;  %p8180_p9 = scmp.lt.s32.totalorder %s8178_s2, %s8171_s5 }
 0x179   : > { %p8175_p0 = pneg %p8174_p13  ;;  %p8181_p10 = por %p8180_p9, %p8179_p3 }
 0x17b   : > { %p8182_p12 = pnand %p8181_p10, %p8175_p0 }
 0x17d   : > { %8185 = shalt.err (!%p8182_p12)
}
 0x17e   : > { %s10267_s16 = smov 4   ;;  %s10268_s3 = smov 64  }
 0x17f   : > { %7082 = dma.hbm_to_vmem [thread:$0]  (!%p10264_p11), %s8734_s23, 256, %s8738_s27, %s8892_s4, %s10268_s3, %s10268_s3, %s10267_s16  }
 0x180   : > { %s10269_s25 = sld [smem:[#allocation40_spill]] }
 0x186   : > { %p10270_p6 = scmp.ne.s32.totalorder %s10269_s25, 0 }
 0x188   : > { %904 = sbr.rel (%p10270_p6) target bundleno = 6517 (0x1975), region = 116 }
 0x18f   : > { %s10271_s0 = sld [smem:[#allocation37_spill]]  ;;  %s10272_s7 = sld [smem:[#allocation43_spill]] }
 0x195   : > { %s8922_s21 = sand.u32 1, %s10271_s0   ;;  %p10273_p1 = scmp.ne.s32.totalorder %s10272_s7, 0 }
 0x196   : > { %s8925_s17 = sshll.u32 %s8922_s21, 5  ;;  %s907_s10 = scalar_lea.sflag [#allocation3], %s8922_s21 }
 0x197   : > { %s8929_s29 = scalar_lea.vmem [#allocation2], %s8925_s17 }
 0x198   : > { %8287 = dma.done.wait (%p10273_p1), %s907_s10, 512  }
 0x199   : > { %8289 = vsyncadd (%p10273_p1), %s907_s10, 4294966784  ;;  %s10274_s27 = sld [smem:[#allocation39_spill]]  ;;  %s6303_s9 = sshll.u32 %s8922_s21, 4 }
 0x19a   : > { %s8940_s4 = scalar_lea.vmem [#allocation5], %s6303_s9 }
 0x19f   : > { %s8936_s23 = sand.u32 1, %s10274_s27  }
 0x1a0   : > { %s916_s1 = scalar_lea.sflag [#allocation6], %s8936_s23 }
 0x1a1   : > { %8291 = dma.done.wait (%p10273_p1), %s916_s1, 1280  }
 0x1a2   : > { %8293 = vsyncadd (%p10273_p1), %s916_s1, 4294966016  ;;  %s6304_s13 = sshll.u32 %s8922_s21, 6  ;;  %s934_s18 = scalar_lea.sflag [#allocation9], %s8936_s23 }
 0x1a3   : > { %s8949_s24 = scalar_lea.vmem [#allocation7], %s6304_s13  ;;  %s8952_s12 = scalar_lea.vmem [#allocation8], %s6303_s9 }
 0x1a4   : > { %8295 = dma.done.wait (%p10273_p1), %s934_s18, 256  }
 0x1a5   : > { %8297 = vsyncadd (%p10273_p1), %s934_s18, 4294967040  ;;  %p10275_p11 = scmp.eq.s32.totalorder %s10274_s27, 0 }
 0x1a7   : > { %8299 = dma.done.wait (%p10275_p11), [#allocation9], 32   ;;  %p10276_p8 = pmov %p10275_p11 }
 0x1a9   : > { %8301 = vsyncadd (%p10276_p8), [#allocation9], 4294967264  ;;  %p10277_p4 = pmov %p10276_p8 }
 0x1ab   : > { %8303 = dma.done.wait (%p10277_p4), [#allocation12], 16384   ;;  %p10278_p7 = pmov %p10277_p4 }
 0x1ac   : > { %p10279_p2 = pmov %p10277_p4 }
 0x1ad   : > { %8305 = vsyncadd (%p10278_p7), [#allocation12], 4294950912 }
 0x1ae   : > { %8307 = dma.done.wait (%p10279_p2), [#allocation15], 12288   ;;  %p10280_p5 = pmov %p10279_p2 }
 0x1af   : > { %p10281_p13 = pmov %p10279_p2 }
 0x1b0   : > { %8309 = vsyncadd (%p10280_p5), [#allocation15], 4294955008 }
 0x1b1   : > { %8311 = dma.done.wait (%p10281_p13), [#allocation18], 12288   ;;  %p10282_p0 = pmov %p10279_p2 }
 0x1b3   : > { %8313 = vsyncadd (%p10282_p0), [#allocation18], 4294955008  ;;  %p10283_p3 = pmov %p10282_p0 }
 0x1b4   : > { %p10284_p9 = pmov %p10282_p0 }
 0x1b5   : > { %8315 = dma.done.wait (%p10283_p3), [#allocation21], 8192  }
 0x1b6   : > { %8317 = vsyncadd (%p10284_p9), [#allocation21], 4294959104  ;;  %v1071_v0 = vld [vmem:[%s8929_s29] sm:$0xff]  ;;  %v1072_v1 = vld [vmem:[%s8929_s29 + $0x8] sm:$0xff]  ;;  %s10289_s5 = sld [smem:[#allocation61_spill]]  ;;  %vm8363_vm0 = vmmov 0  }
 0x1b7   : > { %v8980_v2 = vunpack.c.l.bf16 %v1071_v0  ;;  %v8982_v3 = vunpack.c.h.bf16 %v1071_v0  ;;  %v8984_v4 = vunpack.c.l.bf16 %v1072_v1  ;;  %v8986_v5 = vunpack.c.h.bf16 %v1072_v1  ;;  %v1073_v6 = vld [vmem:[%s8929_s29 + $0x10] sm:$0xff]  ;;  %v1074_v7 = vld [vmem:[%s8929_s29 + $0x18] sm:$0xff]  ;;  %v7171_v14 = vld [vmem:[#allocation11 + $0x8] ss:$24 sps:$4 sm:$0xff]   ;;  %s10290_s2 = sld [smem:[#allocation63_spill]]  ;;  %s9150_s16 = scalar_lea.vmem [#allocation23], %s8925_s17 }
 0x1b8   : > { %v7166_v8 = vld [vmem:[#allocation11 + $0x4] ss:$24 sps:$4 sm:$0xff]   ;;  %v7168_v9 = vld [vmem:[#allocation11] ss:$24 sps:$4 sm:$0xff]   ;;  %v7172_v17 = vld [vmem:[#allocation11 + $0x34] ss:$24 sps:$4 sm:$0xff]   ;;  %v9002_v20 = vunpack.c.l.bf16 %v1073_v6  ;;  %v9004_v21 = vunpack.c.h.bf16 %v1073_v6  ;;  %v9006_v25 = vunpack.c.l.bf16 %v1074_v7  ;;  %v9008_v26 = vunpack.c.h.bf16 %v1074_v7 }
 0x1b9   : > { %v1085_v10 = vadd.f32 %v8982_v3, %v8980_v2  ;;  %v1101_v11 = vmul.f32 %v8980_v2, %v8980_v2  ;;  %v1102_v12 = vmul.f32 %v8982_v3, %v8982_v3  ;;  %v7169_v13 = vld [vmem:[#allocation11 + $0xc] ss:$24 sps:$4 sm:$0xff]   ;;  %v1103_v15 = vmul.f32 %v8984_v4, %v8984_v4  ;;  %1811 = vmatprep.subr.bf16.mxu0 %v7166_v8  ;;  %v7174_v22 = vld [vmem:[#allocation11 + $0x30] ss:$24 sps:$4 sm:$0xff]   ;;  %v7175_v23 = vld [vmem:[#allocation11 + $0x3c] ss:$24 sps:$4 sm:$0xff]  }
 0x1ba   : > { %v1104_v16 = vmul.f32 %v8986_v5, %v8986_v5  ;;  %v1088_v19 = vadd.f32 %v8986_v5, %v8984_v4  ;;  %10285 = vst [vmem:[#allocation46_spill] sm:$0xff] %v9002_v20  ;;  %10286 = vst [vmem:[#allocation47_spill] sm:$0xff] %v9004_v21  ;;  %1812 = vmatpush1.bf16.msra.mxu0 %v7168_v9  ;;  %1864 = vmatprep.subr.bf16.mxu1 %v7169_v13  ;;  %v7177_v27 = vld [vmem:[#allocation11 + $0x38] ss:$24 sps:$4 sm:$0xff]   ;;  %v7178_v28 = vld [vmem:[#allocation11 + $0x64] ss:$24 sps:$4 sm:$0xff]  }
 0x1bb   : > { %1086 = vadd.xlane.f32.xlu0 %v1085_v10  ;;  %v1109_v18 = vadd.f32 %v1102_v12, %v1101_v11  ;;  %10287 = vst [vmem:[#allocation48_spill] sm:$0xff] %v9006_v25  ;;  %10288 = vst [vmem:[#allocation49_spill] sm:$0xff] %v9008_v26  ;;  %1865 = vmatpush1.bf16.msra.mxu1 %v7171_v14  ;;  %v7181_v29 = vld [vmem:[#allocation11 + $0x6c] ss:$24 sps:$4 sm:$0xff]   ;;  %v1091_v30 = vadd.f32 %v9004_v21, %v9002_v20  ;;  %v7180_v33 = vld [vmem:[#allocation11 + $0x60] ss:$24 sps:$4 sm:$0xff]  }
 0x1bc   : > { %v1112_v24 = vadd.f32 %v1104_v16, %v1103_v15  ;;  %1813 = vmatprep.subr.bf16.mxu0 %v7172_v17  ;;  %1866 = vmatprep.subr.bf16.mxu1 %v7175_v23  ;;  %v1105_v31 = vmul.f32 %v9002_v20, %v9002_v20  ;;  %v1106_v32 = vmul.f32 %v9004_v21, %v9004_v21  ;;  %v7183_v37 = vld [vmem:[#allocation11 + $0x68] ss:$24 sps:$4 sm:$0xff]   ;;  %v7184_v38 = vld [vmem:[#allocation11 + $0x94] ss:$24 sps:$4 sm:$0xff]   ;;  %v7189_v43 = vld [vmem:[#allocation11 + $0x98] ss:$24 sps:$4 sm:$0xff]  }
 0x1bd   : > { %1110 = vadd.xlane.f32.xlu1 %v1109_v18  ;;  %v1094_v34 = vadd.f32 %v9008_v26, %v9006_v25  ;;  %v1107_v35 = vmul.f32 %v9006_v25, %v9006_v25  ;;  %v1108_v36 = vmul.f32 %v9008_v26, %v9008_v26  ;;  %v7187_v39 = vld [vmem:[#allocation11 + $0x9c] ss:$24 sps:$4 sm:$0xff]   ;;  %v7186_v41 = vld [vmem:[#allocation11 + $0x90] ss:$24 sps:$4 sm:$0xff]   ;;  %v7193_v45 = vld [vmem:[#allocation11 + $0xcc] ss:$24 sps:$4 sm:$0xff]  }
 0x1be   : > { %1814 = vmatpush1.bf16.msra.mxu0 %v7174_v22  ;;  %v1115_v40 = vadd.f32 %v1106_v32, %v1105_v31  ;;  %v7190_v44 = vld [vmem:[#allocation11 + $0xc4] ss:$24 sps:$4 sm:$0xff]   ;;  %v7192_v46 = vld [vmem:[#allocation11 + $0xc0] ss:$24 sps:$4 sm:$0xff]   ;;  %v7196_v48 = vld [vmem:[#allocation11 + $0xf4] ss:$24 sps:$4 sm:$0xff]  }
 0x1bf   : > { %1089 = vadd.xlane.f32.xlu0 %v1088_v19  ;;  %1867 = vmatpush1.bf16.msra.mxu1 %v7177_v27  ;;  %v1118_v42 = vadd.f32 %v1108_v36, %v1107_v35  ;;  %v7195_v47 = vld [vmem:[#allocation11 + $0xc8] ss:$24 sps:$4 sm:$0xff]   ;;  %v7199_v49 = vld [vmem:[#allocation11 + $0xfc] ss:$24 sps:$4 sm:$0xff]   ;;  %v7201_v51 = vld [vmem:[#allocation11 + $0xf8] ss:$24 sps:$4 sm:$0xff]  }
 0x1c0   : > { %1815 = vmatprep.subr.bf16.mxu0 %v7178_v28  ;;  %1868 = vmatprep.subr.bf16.mxu1 %v7181_v29  ;;  %v7198_v50 = vld [vmem:[#allocation11 + $0xf0] ss:$24 sps:$4 sm:$0xff]   ;;  %v7202_v52 = vld [vmem:[#allocation11 + $0x124] ss:$24 sps:$4 sm:$0xff]   ;;  %v7204_v54 = vld [vmem:[#allocation11 + $0x120] ss:$24 sps:$4 sm:$0xff]  }
 0x1c1   : > { %1113 = vadd.xlane.f32.xlu1 %v1112_v24  ;;  %v7205_v53 = vld [vmem:[#allocation11 + $0x12c] ss:$24 sps:$4 sm:$0xff]   ;;  %v7207_v55 = vld [vmem:[#allocation11 + $0x128] ss:$24 sps:$4 sm:$0xff]   ;;  %v7211_v57 = vld [vmem:[#allocation11 + $0x15c] ss:$24 sps:$4 sm:$0xff]  }
 0x1c2   : > { %1816 = vmatpush1.bf16.msra.mxu0 %v7180_v33  ;;  %v7208_v56 = vld [vmem:[#allocation11 + $0x154] ss:$24 sps:$4 sm:$0xff]   ;;  %v7210_v58 = vld [vmem:[#allocation11 + $0x150] ss:$24 sps:$4 sm:$0xff]   ;;  %v7214_v60 = vld [vmem:[#allocation11 + $0x184] ss:$24 sps:$4 sm:$0xff]  }
 0x1c3   : > { %1092 = vadd.xlane.f32.xlu0 %v1091_v30  ;;  %1869 = vmatpush1.bf16.msra.mxu1 %v7183_v37  ;;  %v7213_v59 = vld [vmem:[#allocation11 + $0x158] ss:$24 sps:$4 sm:$0xff]   ;;  %v7217_v62 = vld [vmem:[#allocation11 + $0x18c] ss:$24 sps:$4 sm:$0xff]   ;;  %v7219_v63 = vld [vmem:[#allocation11 + $0x188] ss:$24 sps:$4 sm:$0xff]  }
 0x1c4   : > { %1817 = vmatprep.subr.bf16.mxu0 %v7184_v38  ;;  %1870 = vmatprep.subr.bf16.mxu1 %v7187_v39  ;;  %v7216_v61 = vld [vmem:[#allocation11 + $0x180] ss:$24 sps:$4 sm:$0xff]   ;;  %v7220_v0 = vld [vmem:[#allocation11 + $0x1b4] ss:$24 sps:$4 sm:$0xff]   ;;  %v7222_v1 = vld [vmem:[#allocation11 + $0x1b0] ss:$24 sps:$4 sm:$0xff]  }
 0x1c5   : > { %1095 = vadd.xlane.f32.xlu1 %v1094_v34  ;;  %v7223_v6 = vld [vmem:[#allocation11 + $0x1bc] ss:$24 sps:$4 sm:$0xff]   ;;  %v7225_v7 = vld [vmem:[#allocation11 + $0x1b8] ss:$24 sps:$4 sm:$0xff]   ;;  %v7229_v9 = vld [vmem:[#allocation11 + $0x1ec] ss:$24 sps:$4 sm:$0xff]  }
 0x1c6   : > { %1818 = vmatpush1.bf16.msra.mxu0 %v7186_v41  ;;  %v7226_v8 = vld [vmem:[#allocation11 + $0x1e4] ss:$24 sps:$4 sm:$0xff]   ;;  %v7228_v10 = vld [vmem:[#allocation11 + $0x1e0] ss:$24 sps:$4 sm:$0xff]   ;;  %v7232_v12 = vld [vmem:[#allocation11 + $0x214] ss:$24 sps:$4 sm:$0xff]  }
 0x1c7   : > { %1116 = vadd.xlane.f32.xlu0 %v1115_v40  ;;  %1871 = vmatpush1.bf16.msra.mxu1 %v7189_v43  ;;  %v7231_v11 = vld [vmem:[#allocation11 + $0x1e8] ss:$24 sps:$4 sm:$0xff]   ;;  %v7235_v14 = vld [vmem:[#allocation11 + $0x21c] ss:$24 sps:$4 sm:$0xff]   ;;  %v7237_v15 = vld [vmem:[#allocation11 + $0x218] ss:$24 sps:$4 sm:$0xff]  }
 0x1c8   : > { %1819 = vmatprep.subr.bf16.mxu0 %v7190_v44  ;;  %1872 = vmatprep.subr.bf16.mxu1 %v7193_v45  ;;  %v7234_v13 = vld [vmem:[#allocation11 + $0x210] ss:$24 sps:$4 sm:$0xff]   ;;  %v7238_v16 = vld [vmem:[#allocation11 + $0x244] ss:$24 sps:$4 sm:$0xff]   ;;  %v7240_v18 = vld [vmem:[#allocation11 + $0x240] ss:$24 sps:$4 sm:$0xff]  }
 0x1c9   : > { %1119 = vadd.xlane.f32.xlu1 %v1118_v42  ;;  %v7241_v17 = vld [vmem:[#allocation11 + $0x24c] ss:$24 sps:$4 sm:$0xff]   ;;  %v7243_v19 = vld [vmem:[#allocation11 + $0x248] ss:$24 sps:$4 sm:$0xff]   ;;  %v7247_v24 = vld [vmem:[#allocation11 + $0x27c] ss:$24 sps:$4 sm:$0xff]  }
 0x1ca   : > { %1820 = vmatpush1.bf16.msra.mxu0 %v7192_v46  ;;  %v7244_v22 = vld [vmem:[#allocation11 + $0x274] ss:$24 sps:$4 sm:$0xff]   ;;  %v7246_v23 = vld [vmem:[#allocation11 + $0x270] ss:$24 sps:$4 sm:$0xff]   ;;  %v7250_v28 = vld [vmem:[#allocation11 + $0x2a4] ss:$24 sps:$4 sm:$0xff]  }
 0x1cb   : > { %1873 = vmatpush1.bf16.msra.mxu1 %v7195_v47  ;;  %1821 = vmatprep.subr.bf16.mxu0 %v7196_v48  ;;  %v7249_v27 = vld [vmem:[#allocation11 + $0x278] ss:$24 sps:$4 sm:$0xff]   ;;  %v7253_v29 = vld [vmem:[#allocation11 + $0x2ac] ss:$24 sps:$4 sm:$0xff]   ;;  %v7255_v31 = vld [vmem:[#allocation11 + $0x2a8] ss:$24 sps:$4 sm:$0xff]  }
 0x1cc   : > { %1874 = vmatprep.subr.bf16.mxu1 %v7199_v49  ;;  %v7252_v30 = vld [vmem:[#allocation11 + $0x2a0] ss:$24 sps:$4 sm:$0xff]   ;;  %v7256_v32 = vld [vmem:[#allocation11 + $0x2d4] ss:$24 sps:$4 sm:$0xff]   ;;  %v7258_v33 = vld [vmem:[#allocation11 + $0x2d0] ss:$24 sps:$4 sm:$0xff]  }
 0x1cd   : > { %v7259_v34 = vld [vmem:[#allocation11 + $0x2dc] ss:$24 sps:$4 sm:$0xff]   ;;  %v7261_v35 = vld [vmem:[#allocation11 + $0x2d8] ss:$24 sps:$4 sm:$0xff]   ;;  %vm2080_vm1 = vcmask 130048   ;;  %vm2111_vm2 = vcmask 125952  }
 0x1ce   : > { %1822 = vmatpush1.bf16.msra.mxu0 %v7198_v50  ;;  %v7264_v36 = vld [vmem:[#allocation11 + $0x14] ss:$24 sps:$4 sm:$0xff]   ;;  %s10304_s0 = sld [smem:[#allocation65_spill]]  ;;  %s10306_s29 = sld [smem:[#allocation66_spill]]  ;;  %vm3970_vm3 = vcmask 261120   ;;  %vm4001_vm4 = vcmask 257024  }
 0x1cf   : > { %1875 = vmatpush1.bf16.msra.mxu1 %v7201_v51  ;;  %1823 = vmatprep.subr.bf16.mxu0 %v7202_v52  ;;  %s10308_s6 = sld [smem:[#allocation69_spill]]  ;;  %s10317_s11 = sld [smem:[#allocation70_spill]] }
 0x1d0   : > { %1876 = vmatprep.subr.bf16.mxu1 %v7205_v53  ;;  %s9676_s15 = scalar_lea.vmem [#allocation25], %s8925_s17  ;;  %s10327_s18 = sld [smem:[#allocation44_spill]] }
 0x1d1   : > { %s6794_s8 = sshll.u32 %s10274_s27, 9  ;;  %s5981_s17 = sshll.u32 %s9150_s16, 4  ;;  %s9982_s17 = int_to_ptr.vmem [resolvable:$true] %s5981_s17 }
 0x1d2   : > { %1824 = vmatpush1.bf16.msra.mxu0 %v7204_v54  ;;  %v1162_v54 = vlaneseq  ;;  %s8365_s3 = smov [#allocation23]  }
 0x1d3   : > { %1877 = vmatpush1.bf16.msra.mxu1 %v7207_v55  ;;  %1825 = vmatprep.subr.bf16.mxu0 %v7208_v56  ;;  %s8190_s25 = sshll.u32 %s8365_s3, 4  ;;  %s8191_s25 = int_to_ptr.vmem [resolvable:$false] %s8190_s25 }
 0x1d4   : > { %1878 = vmatprep.subr.bf16.mxu1 %v7211_v57  ;;  %p8193_p11 = scmp.lt.s32.totalorder %s9982_s17, %s8191_s25 }
 0x1d6   : > { %1826 = vmatpush1.bf16.msra.mxu0 %v7210_v58  ;;  %p10329_p12 = scmp.ne.s32.totalorder %s10327_s18, 0 }
 0x1d7   : > { %1879 = vmatpush1.bf16.msra.mxu1 %v7213_v59  ;;  %1827 = vmatprep.subr.bf16.mxu0 %v7214_v60 }
 0x1d8   : > { %1880 = vmatprep.subr.bf16.mxu1 %v7217_v62 }
 0x1da   : > { %1828 = vmatpush1.bf16.msra.mxu0 %v7216_v61 }
 0x1db   : > { %1881 = vmatpush1.bf16.msra.mxu1 %v7219_v63  ;;  %1829 = vmatprep.subr.bf16.mxu0 %v7220_v0  ;;  %v9022_v63 = vshrl.u32 %v1162_v54, 7 }
 0x1dc   : > { %1882 = vmatprep.subr.bf16.mxu1 %v7223_v6 }
 0x1de   : > { %1830 = vmatpush1.bf16.msra.mxu0 %v7222_v1 }
 0x1df   : > { %1883 = vmatpush1.bf16.msra.mxu1 %v7225_v7  ;;  %1831 = vmatprep.subr.bf16.mxu0 %v7226_v8  ;;  %v9025_v8 = vsub.s32 1, %v9022_v63 }
 0x1e0   : > { %1884 = vmatprep.subr.bf16.mxu1 %v7229_v9 }
 0x1e2   : > { %1832 = vmatpush1.bf16.msra.mxu0 %v7228_v10 }
 0x1e3   : > { %1885 = vmatpush1.bf16.msra.mxu1 %v7231_v11  ;;  %1833 = vmatprep.subr.bf16.mxu0 %v7232_v12  ;;  %v1083_v11 = vld [vmem:[#allocation10] sm:$0x3]  ;;  %v9028_v12 = vsub.s32 0, %v9022_v63 }
 0x1e4   : > { %1886 = vmatprep.subr.bf16.mxu1 %v7235_v14 }
 0x1e6   : > { %1834 = vmatpush1.bf16.msra.mxu0 %v7234_v13 }
 0x1e7   : > { %1887 = vmatpush1.bf16.msra.mxu1 %v7237_v15  ;;  %1835 = vmatprep.subr.bf16.mxu0 %v7238_v16 }
 0x1e8   : > { %1888 = vmatprep.subr.bf16.mxu1 %v7241_v17  ;;  %v1169_v17 = vrot.slane %v1083_v11, %v9025_v8 }
 0x1ea   : > { %1836 = vmatpush1.bf16.msra.mxu0 %v7240_v18  ;;  %v1084_v18 = vld [vmem:[%s10289_s5] sm:$0x3]  ;;  %s10328_s5 = sld [smem:[#allocation78_spill]] }
 0x1eb   : > { %1889 = vmatpush1.bf16.msra.mxu1 %v7243_v19  ;;  %1837 = vmatprep.subr.bf16.mxu0 %v7244_v22 }
 0x1ec   : > { %1890 = vmatprep.subr.bf16.mxu1 %v7247_v24 }
 0x1ee   : > { %1838 = vmatpush1.bf16.msra.mxu0 %v7246_v23  ;;  %v1165_v23 = vrot.slane %v1083_v11, %v9028_v12  ;;  %v7271_v11 = vld [vmem:[#allocation11 + $0xa0] ss:$24 sps:$4 sm:$0xff]  }
 0x1ef   : > { %1891 = vmatpush1.bf16.msra.mxu1 %v7249_v27  ;;  %1839 = vmatprep.subr.bf16.mxu0 %v7250_v28 }
 0x1f0   : > { %1892 = vmatprep.subr.bf16.mxu1 %v7253_v29  ;;  %v1188_v29 = vrot.slane %v1084_v18, %v9025_v8 }
 0x1f2   : > { %1840 = vmatpush1.bf16.msra.mxu0 %v7252_v30  ;;  %v1184_v30 = vrot.slane %v1084_v18, %v9028_v12  ;;  %v7280_v18 = vld [vmem:[#allocation11 + $0x130] ss:$24 sps:$4 sm:$0xff]  }
 0x1f3   : > { %1893 = vmatpush1.bf16.msra.mxu1 %v7255_v31  ;;  %1841 = vmatprep.subr.bf16.mxu0 %v7256_v32 }
 0x1f4   : > { %1894 = vmatprep.subr.bf16.mxu1 %v7259_v34 }
 0x1f6   : > { %1842 = vmatpush1.bf16.msra.mxu0 %v7258_v33 }
 0x1f7   : > { %1895 = vmatpush1.bf16.msra.mxu1 %v7261_v35  ;;  %1917 = vmatprep.subr.bf16.mxu0 %v7264_v36 }
 0x248   : > { %v1087_v37 = vpop.xlane.xlu0 %1086 }
 0x249   : > { %v1097_v38 = vmul.f32 0.00390625, %v1087_v37 }
 0x24a   : > { %v1111_v39 = vpop.xlane.xlu1 %1110 }
 0x24b   : > { %v1121_v40 = vmul.f32 0.00390625, %v1111_v39  ;;  %v1125_v41 = vmul.f32 %v1097_v38, %v1097_v38  ;;  %v1137_v14 = vsub.f32 %v8980_v2, %v1097_v38  ;;  %v1138_v15 = vsub.f32 %v8982_v3, %v1097_v38 }
 0x24c   : > { %v1090_v42 = vpop.xlane.xlu0 %1089 }
 0x24d   : > { %v1129_v43 = vsub.f32 %v1121_v40, %v1125_v41  ;;  %v1098_v44 = vmul.f32 0.00390625, %v1090_v42 }
 0x24e   : > { %v1114_v45 = vpop.xlane.xlu1 %1113 }
 0x24f   : > { %v1133_v46 = vmax.f32 %v1129_v43, 0.0  ;;  %v1122_v47 = vmul.f32 0.00390625, %v1114_v45  ;;  %v1126_v48 = vmul.f32 %v1098_v44, %v1098_v44  ;;  %v1139_v24 = vsub.f32 %v8984_v4, %v1098_v44 }
 0x250   : > { %v1093_v49 = vpop.xlane.xlu0 %1092  ;;  %v1140_v27 = vsub.f32 %v8986_v5, %v1098_v44 }
 0x251   : > { %v1145_v50 = vadd.f32 1e-12, %v1133_v46  ;;  %v1099_v51 = vmul.f32 0.00390625, %v1093_v49  ;;  %v1130_v52 = vsub.f32 %v1122_v47, %v1126_v48 }
 0x252   : > { %v1096_v53 = vpop.xlane.xlu1 %1095 }
 0x253   : > { %7754 = vrsqrt.f32 %v1145_v50  ;;  %v1100_v55 = vmul.f32 0.00390625, %v1096_v53  ;;  %v1134_v56 = vmax.f32 %v1130_v52, 0.0  ;;  %v1127_v57 = vmul.f32 %v1099_v51, %v1099_v51  ;;  %v7262_v50 = vld [vmem:[#allocation11 + $0x10] ss:$24 sps:$4 sm:$0xff]   ;;  %v7267_v53 = vld [vmem:[#allocation11 + $0x44] ss:$24 sps:$4 sm:$0xff]  }
 0x254   : > { %v1117_v58 = vpop.xlane.xlu0 %1116  ;;  %v1141_v35 = vsub.f32 %v9002_v20, %v1099_v51  ;;  %v1142_v36 = vsub.f32 %v9004_v21, %v1099_v51 }
 0x255   : > { %v1128_v59 = vmul.f32 %v1100_v55, %v1100_v55  ;;  %v1123_v60 = vmul.f32 0.00390625, %v1117_v58  ;;  %v1146_v61 = vadd.f32 1e-12, %v1134_v56  ;;  %v1143_v39 = vsub.f32 %v9006_v25, %v1100_v55 }
 0x256   : > { %v1120_v62 = vpop.xlane.xlu1 %1119  ;;  %v1144_v40 = vsub.f32 %v9008_v26, %v1100_v55 }
 0x257   : > { %v1124_v0 = vmul.f32 0.00390625, %v1120_v62  ;;  %v1131_v1 = vsub.f32 %v1123_v60, %v1127_v57  ;;  %7756 = vrsqrt.f32 %v1146_v61  ;;  %v7265_v60 = vld [vmem:[#allocation11 + $0x40] ss:$24 sps:$4 sm:$0xff]  }
 0x259   : > { %v1132_v6 = vsub.f32 %v1124_v0, %v1128_v59  ;;  %v1135_v7 = vmax.f32 %v1131_v1, 0.0  ;;  %v7270_v0 = vld [vmem:[#allocation11 + $0x74] ss:$24 sps:$4 sm:$0xff]  }
 0x25b   : > { %v1136_v9 = vmax.f32 %v1132_v6, 0.0  ;;  %v1147_v10 = vadd.f32 1e-12, %v1135_v7 }
 0x25d   : > { %v7755_v13 = vpop.eup %7754  ;;  %v1148_v16 = vadd.f32 1e-12, %v1136_v9  ;;  %7758 = vrsqrt.f32 %v1147_v10  ;;  %v7268_v9 = vld [vmem:[#allocation11 + $0x70] ss:$24 sps:$4 sm:$0xff]   ;;  %v7273_v10 = vld [vmem:[#allocation11 + $0xa4] ss:$24 sps:$4 sm:$0xff]  }
 0x25e   : > { %v1154_v19 = vmul.f32 %v7755_v13, %v1138_v15  ;;  %v1153_v22 = vmul.f32 %v7755_v13, %v1137_v14  ;;  %v7276_v13 = vld [vmem:[#allocation11 + $0xd4] ss:$24 sps:$4 sm:$0xff]   ;;  %v7274_v14 = vld [vmem:[#allocation11 + $0xd0] ss:$24 sps:$4 sm:$0xff]   ;;  %v7279_v15 = vld [vmem:[#allocation11 + $0x104] ss:$24 sps:$4 sm:$0xff]  }
 0x25f   : > { %7760 = vrsqrt.f32 %v1148_v16  ;;  %v7277_v16 = vld [vmem:[#allocation11 + $0x100] ss:$24 sps:$4 sm:$0xff]  }
 0x260   : > { %v1173_v32 = vmul.f32 %v1169_v17, %v1154_v19  ;;  %v1172_v34 = vmul.f32 %v1165_v23, %v1153_v22  ;;  %v7285_v19 = vld [vmem:[#allocation11 + $0x164] ss:$24 sps:$4 sm:$0xff]   ;;  %v7283_v22 = vld [vmem:[#allocation11 + $0x160] ss:$24 sps:$4 sm:$0xff]  }
 0x261   : > { %v7757_v28 = vpop.eup %7756 }
 0x262   : > { %v1156_v31 = vmul.f32 %v7757_v28, %v1140_v27  ;;  %v1155_v33 = vmul.f32 %v7757_v28, %v1139_v24  ;;  %v1192_v42 = vadd.f32 %v1188_v29, %v1173_v32  ;;  %v1191_v44 = vadd.f32 %v1184_v30, %v1172_v34  ;;  %v7286_v24 = vld [vmem:[#allocation11 + $0x190] ss:$24 sps:$4 sm:$0xff]   ;;  %v7291_v27 = vld [vmem:[#allocation11 + $0x1c4] ss:$24 sps:$4 sm:$0xff]   ;;  %v7289_v28 = vld [vmem:[#allocation11 + $0x1c0] ss:$24 sps:$4 sm:$0xff]  }
 0x263   : > { %v7295_v32 = vld [vmem:[#allocation11 + $0x220] ss:$24 sps:$4 sm:$0xff]   ;;  %v7298_v34 = vld [vmem:[#allocation11 + $0x250] ss:$24 sps:$4 sm:$0xff]  }
 0x264   : > { %v1175_v37 = vmul.f32 %v1169_v17, %v1156_v31  ;;  %v1174_v38 = vmul.f32 %v1165_v23, %v1155_v33  ;;  %v7297_v31 = vld [vmem:[#allocation11 + $0x224] ss:$24 sps:$4 sm:$0xff]   ;;  %v7300_v33 = vld [vmem:[#allocation11 + $0x254] ss:$24 sps:$4 sm:$0xff]  }
 0x266   : > { %v1194_v43 = vadd.f32 %v1188_v29, %v1175_v37  ;;  %v1193_v45 = vadd.f32 %v1184_v30, %v1174_v38  ;;  %v7306_v37 = vld [vmem:[#allocation11 + $0x2b4] ss:$24 sps:$4 sm:$0xff]   ;;  %v7304_v38 = vld [vmem:[#allocation11 + $0x2b0] ss:$24 sps:$4 sm:$0xff]  }
 0x267   : > { %v7759_v41 = vpop.eup %7758 }
 0x268   : > { %v1158_v46 = vmul.f32 %v7759_v41, %v1142_v36  ;;  %v1157_v47 = vmul.f32 %v7759_v41, %v1141_v35  ;;  %v1200_v49 = vpack.c.bf16 %v1194_v43, %v1192_v42  ;;  %v9045_v52 = vpack.c.bf16 %v1193_v45, %v1191_v44  ;;  %v7303_v35 = vld [vmem:[#allocation11 + $0x284] ss:$24 sps:$4 sm:$0xff]   ;;  %v7301_v36 = vld [vmem:[#allocation11 + $0x280] ss:$24 sps:$4 sm:$0xff]  }
 0x269   : > { %v7761_v48 = vpop.eup %7760  ;;  %v10192_v41 = vmov 0.0   ;;  %v9066_v42 = vld [vmem:[%s10290_s2] sm:$0x3f]  ;;  %v9069_v43 = vsub.s32 2, %v9022_v63  ;;  %v9072_v44 = vsub.s32 3, %v9022_v63  ;;  %s10323_s2 = sld [smem:[#allocation72_spill]] }
 0x26a   : > { %v1160_v51 = vmul.f32 %v7761_v48, %v1144_v40  ;;  %v1177_v54 = vmul.f32 %v1169_v17, %v1158_v46  ;;  %v1159_v56 = vmul.f32 %v7761_v48, %v1143_v39  ;;  %v1176_v57 = vmul.f32 %v1165_v23, %v1157_v47  ;;  %1843 = vmatprep.mubr.bf16.mxu0 %v1200_v49  ;;  %v7309_v39 = vld [vmem:[#allocation11 + $0x2e4] ss:$24 sps:$4 sm:$0xff]   ;;  %v7307_v40 = vld [vmem:[#allocation11 + $0x2e0] ss:$24 sps:$4 sm:$0xff]  }
 0x26b   : > { %1896 = vmatprep.mubr.bf16.mxu1 %v1200_v49  ;;  %1844 = vmatmul.mubr.bf16.vlgmr.msra.gmra.mrb[0].mxu0 %v9045_v52  ;;  %10291 = vst [vmem:[#allocation50_spill] sm:$0xff] %v9069_v43  ;;  %10292 = vst [vmem:[#allocation51_spill] sm:$0xff] %v9072_v44  ;;  %v1304_v45 = vrot.slane %v9066_v42, %v9028_v12  ;;  %v1308_v46 = vrot.slane %v9066_v42, %v9025_v8 }
 0x26c   : > { %1897 = vmatmul.mubr.bf16.vlgmr.msra.gmra.mrb[0].mxu1 %v9045_v52  ;;  %v1179_v55 = vmul.f32 %v1169_v17, %v1160_v51  ;;  %v1196_v58 = vadd.f32 %v1188_v29, %v1177_v54  ;;  %v1178_v59 = vmul.f32 %v1165_v23, %v1159_v56  ;;  %1918 = vmatpush1.bf16.msra.mxu0 %v7262_v50  ;;  %v7282_v17 = vld [vmem:[#allocation11 + $0x134] ss:$24 sps:$4 sm:$0xff]  }
 0x26d   : > { %v1195_v61 = vadd.f32 %v1184_v30, %v1176_v57  ;;  %1919 = vmatprep.subr.bf16.mxu0 %v7267_v53  ;;  %v7288_v23 = vld [vmem:[#allocation11 + $0x194] ss:$24 sps:$4 sm:$0xff]   ;;  %6855 = vmatprep.subr.bf16.mxu1 %v10192_v41  ;;  %v1312_v47 = vrot.slane %v9066_v42, %v9069_v43  ;;  %v1316_v50 = vrot.slane %v9066_v42, %v9072_v44  ;;  %v10298_v43 = vmov 0.0  }
 0x26e   : > { %v1198_v62 = vadd.f32 %v1188_v29, %v1179_v55  ;;  %v1197_v1 = vadd.f32 %v1184_v30, %v1178_v59  ;;  %v7294_v29 = vld [vmem:[#allocation11 + $0x1f4] ss:$24 sps:$4 sm:$0xff]   ;;  %v7292_v30 = vld [vmem:[#allocation11 + $0x1f0] ss:$24 sps:$4 sm:$0xff]  }
 0x270   : > { %v9049_v6 = vpack.c.bf16 %v1198_v62, %v1196_v58  ;;  %v9051_v7 = vpack.c.bf16 %v1197_v1, %v1195_v61  ;;  %1920 = vmatpush1.bf16.msra.mxu0 %v7265_v60 }
 0x271   : > { %1921 = vmatprep.subr.bf16.mxu0 %v7270_v0 }
 0x272   : > { %1853 = vmatprep.mubr.bf16.mxu0 %v9049_v6  ;;  %1906 = vmatprep.mubr.bf16.mxu1 %v9049_v6 }
 0x273   : > { %1854 = vmatmul.mubr.bf16.gmra.mrb[4].mxu0 %v9051_v7 }
 0x274   : > { %1907 = vmatmul.mubr.bf16.gmra.mrb[4].mxu1 %v9051_v7  ;;  %1922 = vmatpush1.bf16.msra.mxu0 %v7268_v9 }
 0x275   : > { %1949 = vmatprep.mubr.bf16.mxu0 %v1200_v49  ;;  %1923 = vmatprep.subr.bf16.mxu0 %v7273_v10 }
 0x276   : > { %6857 = vmatprep.mubr.msk.bf16.mxu1 %vm8363_vm0, %v10192_v41 }
 0x278   : > { %1924 = vmatpush1.bf16.msra.mxu0 %v7271_v11 }
 0x279   : > { %1925 = vmatprep.subr.bf16.mxu0 %v7276_v13 }
 0x27c   : > { %1926 = vmatpush1.bf16.msra.mxu0 %v7274_v14 }
 0x27d   : > { %1927 = vmatprep.subr.bf16.mxu0 %v7279_v15 }
 0x280   : > { %1928 = vmatpush1.bf16.msra.mxu0 %v7277_v16 }
 0x281   : > { %1929 = vmatprep.subr.bf16.mxu0 %v7282_v17 }
 0x284   : > { %1930 = vmatpush1.bf16.msra.mxu0 %v7280_v18 }
 0x285   : > { %1931 = vmatprep.subr.bf16.mxu0 %v7285_v19 }
 0x288   : > { %1932 = vmatpush1.bf16.msra.mxu0 %v7283_v22 }
 0x289   : > { %1933 = vmatprep.subr.bf16.mxu0 %v7288_v23 }
 0x28c   : > { %1934 = vmatpush1.bf16.msra.mxu0 %v7286_v24 }
 0x28d   : > { %1935 = vmatprep.subr.bf16.mxu0 %v7291_v27 }
 0x290   : > { %1936 = vmatpush1.bf16.msra.mxu0 %v7289_v28 }
 0x291   : > { %1937 = vmatprep.subr.bf16.mxu0 %v7294_v29 }
 0x294   : > { %1938 = vmatpush1.bf16.msra.mxu0 %v7292_v30 }
 0x295   : > { %1939 = vmatprep.subr.bf16.mxu0 %v7297_v31 }
 0x298   : > { %1940 = vmatpush1.bf16.msra.mxu0 %v7295_v32 }
 0x299   : > { %1941 = vmatprep.subr.bf16.mxu0 %v7300_v33 }
 0x29c   : > { %1942 = vmatpush1.bf16.msra.mxu0 %v7298_v34 }
 0x29d   : > { %1943 = vmatprep.subr.bf16.mxu0 %v7303_v35 }
 0x2a0   : > { %1944 = vmatpush1.bf16.msra.mxu0 %v7301_v36 }
 0x2a1   : > { %1945 = vmatprep.subr.bf16.mxu0 %v7306_v37 }
 0x2a4   : > { %1946 = vmatpush1.bf16.msra.mxu0 %v7304_v38 }
 0x2a5   : > { %1947 = vmatprep.subr.bf16.mxu0 %v7309_v39 }
 0x2a8   : > { %1948 = vmatpush1.bf16.msra.mxu0 %v7307_v40 }
 0x2ab   : > { %1950 = vmatmul.mubr.bf16.vlgmr.msra.gmra.mrb[8].mxu0 %v9045_v52 }
 0x2ac   : > { %1959 = vmatprep.mubr.bf16.mxu0 %v9049_v6 }
 0x2b3   : > { %1960 = vmatmul.mubr.bf16.gmra.mrb[12].mxu0 %v9051_v7 }
 0x33e   : > { %v1845_v48 = vpop.f32.mrb[0].mxu0 }
 0x33f   : > { %v1898_v49 = vpop.f32.mrb[0].mxu1  ;;  %v1846_v52 = vadd.f32 %v1845_v48, %v1304_v45  ;;  %v1847_v53 = vpop.f32.mrb[1].mxu0  ;;  %v1319_v48 = vsub.s32 4, %v9022_v63 }
 0x340   : > { %v1900_v51 = vpop.f32.mrb[1].mxu1  ;;  %v1848_v54 = vadd.f32 %v1847_v53, %v1308_v46  ;;  %v1849_v56 = vpop.f32.mrb[2].mxu0  ;;  %v1899_v55 = vadd.f32 %v1898_v49, %v1312_v47  ;;  %v1323_v49 = vsub.s32 5, %v9022_v63 }
 0x341   : > { %v1902_v57 = vpop.f32.mrb[2].mxu1  ;;  %v1850_v58 = vadd.f32 %v1849_v56, %v1304_v45  ;;  %v1851_v60 = vpop.f32.mrb[3].mxu0  ;;  %v9082_v62 = vadd.f32 %v1900_v51, %v1316_v50  ;;  %v1970_v6 = vmul.f32 0.088388346, %v1846_v52 }
 0x342   : > { %v1903_v59 = vadd.f32 %v1902_v57, %v1312_v47  ;;  %v1904_v61 = vpop.f32.mrb[3].mxu1  ;;  %v1852_v0 = vadd.f32 %v1851_v60, %v1308_v46  ;;  %v9086_v10 = vmul.f32 0.088388346, %v1848_v54  ;;  %v1324_v53 = vrot.slane %v9066_v42, %v1323_v49 }
 0x343   : > { %v9084_v1 = vadd.f32 %v1904_v61, %v1316_v50  ;;  %v1972_v7 = vmul.f32 0.088388346, %v1850_v58 }
 0x344   : > { %v2031_v9 = vpack.c.bf16 %v1903_v59, %v1899_v55  ;;  %v9088_v11 = vmul.f32 0.088388346, %v1852_v0 }
 0x345   : > { %v2032_v13 = vpack.c.bf16 %v9084_v1, %v9082_v62  ;;  %v2027_v14 = vpack.c.bf16 %v1972_v7, %v1970_v6 }
 0x346   : > { %6856 = vmatpush3.bf16.xpose.msra.mxu1 %v2031_v9  ;;  %v2028_v15 = vpack.c.bf16 %v9088_v11, %v9086_v10  ;;  %v1855_v16 = vpop.f32.mrb[4].mxu0 }
 0x347   : > { %6861 = vmatprep.subr.bf16.mxu1 %v10192_v41  ;;  %v1908_v17 = vpop.f32.mrb[4].mxu1  ;;  %v1856_v18 = vadd.f32 %v1855_v16, %v1304_v45  ;;  %v1857_v19 = vpop.f32.mrb[5].mxu0 }
 0x348   : > { %v9095_v22 = vadd.f32 %v1908_v17, %v1312_v47  ;;  %v1910_v23 = vpop.f32.mrb[5].mxu1  ;;  %v1858_v24 = vadd.f32 %v1857_v19, %v1308_v46  ;;  %v1859_v27 = vpop.f32.mrb[6].mxu0  ;;  %v6798_v19 = vld [vmem:[%s8940_s4] sm:$0xff]  }
 0x349   : > { %v9097_v28 = vadd.f32 %v1910_v23, %v1316_v50  ;;  %v1912_v29 = vpop.f32.mrb[6].mxu1  ;;  %v9099_v30 = vmul.f32 0.088388346, %v1856_v18  ;;  %v1860_v31 = vadd.f32 %v1859_v27, %v1304_v45  ;;  %v1861_v32 = vpop.f32.mrb[7].mxu0  ;;  %v6799_v23 = vunpack.c.l.bf16 %v6798_v19  ;;  %v9238_v18 = vld [vmem:[#allocation13 + $0x14] ss:$8 sps:$4 sm:$0xff]  }
 0x34a   : > { %v9101_v33 = vadd.f32 %v1912_v29, %v1312_v47  ;;  %v1914_v34 = vpop.f32.mrb[7].mxu1  ;;  %v9103_v35 = vmul.f32 0.088388346, %v1858_v24  ;;  %v1862_v36 = vadd.f32 %v1861_v32, %v1308_v46  ;;  %v6800_v24 = vunpack.c.h.bf16 %v6798_v19  ;;  %v9281_v46 = vld [vmem:[#allocation13 + $0x70] ss:$8 sps:$4 sm:$0xff]  }
 0x34b   : > { %v9105_v37 = vadd.f32 %v1914_v34, %v1316_v50  ;;  %v9107_v38 = vmul.f32 0.088388346, %v1860_v31  ;;  %v1320_v50 = vrot.slane %v9066_v42, %v1319_v48  ;;  %v6413_v27 = vadd.f32 -1.0, %v6799_v23  ;;  %10296 = vst [vmem:[#allocation55_spill] sm:$0xff] %v9281_v46 }
 0x34c   : > { %v9111_v40 = vmul.f32 0.088388346, %v1862_v36  ;;  %v6414_v29 = vadd.f32 -1.0, %v6800_v24  ;;  %v10297_v44 = vpack.c.bf16 %v9101_v33, %v9095_v22 }
 0x34d   : > { %6858 = vmatmul.mubr.bf16.vlgmr.msra.gmra.mrb[8].mxu1 %v2027_v14  ;;  %v1990_v31 = vmul.f32 1e+09, %v6413_v27 }
 0x34e   : > { %6863 = vmatprep.mubr.msk.bf16.mxu1 %vm8363_vm0, %v10192_v41  ;;  %v1991_v32 = vmul.f32 1e+09, %v6414_v29 }
 0x37e   : > { %v1951_v52 = vpop.f32.mrb[8].mxu0 }
 0x37f   : > { %v1953_v51 = vpop.f32.mrb[9].mxu0  ;;  %v1952_v56 = vadd.f32 %v1951_v52, %v1320_v50 }
 0x380   : > { %v1955_v54 = vpop.f32.mrb[10].mxu0  ;;  %v9125_v58 = vadd.f32 %v1953_v51, %v1324_v53 }
 0x381   : > { %v1956_v57 = vadd.f32 %v1955_v54, %v1320_v50  ;;  %v1957_v55 = vpop.f32.mrb[11].mxu0 }
 0x382   : > { %v9127_v59 = vadd.f32 %v1957_v55, %v1324_v53 }
 0x383   : > { %v2035_v60 = vpack.c.bf16 %v1956_v57, %v1952_v56 }
 0x384   : > { %v2036_v61 = vpack.c.bf16 %v9127_v59, %v9125_v58 }
 0x385   : > { %6862 = vmatpush3.bf16.msra.mxu1 %v2035_v60 }
 0x386   : > { %v1961_v63 = vpop.f32.mrb[12].mxu0  ;;  %6867 = vmatprep.subr.bf16.mxu1 %v10192_v41 }
 0x387   : > { %v9132_v0 = vadd.f32 %v1961_v63, %v1320_v50  ;;  %v1963_v42 = vpop.f32.mrb[13].mxu0 }
 0x388   : > { %v9134_v6 = vadd.f32 %v1963_v42, %v1324_v53  ;;  %v1965_v7 = vpop.f32.mrb[14].mxu0 }
 0x389   : > { %v9136_v9 = vadd.f32 %v1965_v7, %v1320_v50  ;;  %v1967_v14 = vpop.f32.mrb[15].mxu0 }
 0x38a   : > { %v9138_v16 = vadd.f32 %v1967_v14, %v1324_v53 }
 0x420   : > { %v2073_v34 = vpop.f32.mrb[8].mxu1 }
 0x421   : > { %v2074_v36 = vadd.f32 %v2073_v34, %v1990_v31  ;;  %v6859_v48 = vpop.f32.mrb[9].mxu1 }
 0x422   : > { %v2076_v49 = vpop.f32.mrb[10].mxu1 }
 0x423   : > { %v2077_v50 = vadd.f32 %v2076_v49, %v1991_v32  ;;  %v6860_v52 = vpop.f32.mrb[11].mxu1  ;;  %v2081_v53 = vsel %vm2080_vm1, %v2074_v36, -inf }
 0x424   : > { %2082 = vmax.xlane.f32.xlu0 %v2081_v53 }
 0x425   : > { %v2084_v51 = vsel %vm2080_vm1, %v2077_v50, -inf }
 0x426   : > { %2085 = vmax.xlane.f32.xlu1 %v2084_v51 }
 0x4b1   : > { %v2083_v54 = vpop.xlane.xlu0 %2082 }
 0x4b2   : > { %v2087_v56 = vsub.f32 %v2074_v36, %v2083_v54 }
 0x4b3   : > { %v2086_v57 = vpop.xlane.xlu1 %2085 }
 0x4b4   : > { %v2089_v55 = vmul.f32 1.442695, %v2087_v56  ;;  %v2088_v60 = vsub.f32 %v2077_v50, %v2086_v57 }
 0x4b6   : > { %7762 = vpow2.f32 %v2089_v55  ;;  %v2091_v63 = vmul.f32 1.442695, %v2088_v60 }
 0x4b8   : > { %7764 = vpow2.f32 %v2091_v63 }
 0x4c0   : > { %v7763_v42 = vpop.eup %7762 }
 0x4c1   : > { %v2093_v7 = vsel %vm2080_vm1, %v7763_v42, 0.0 }
 0x4c2   : > { %v7765_v14 = vpop.eup %7764  ;;  %2094 = vadd.xlane.f32.xlu0 %v2093_v7 }
 0x4c3   : > { %v2096_v19 = vsel %vm2080_vm1, %v7765_v14, 0.0 }
 0x4c4   : > { %2097 = vadd.xlane.f32.xlu1 %v2096_v19  ;;  %v9181_v19 = vld [vmem:[#allocation13 + $0x4] ss:$8 sps:$4 sm:$0xff]  }
 0x54f   : > { %v2095_v23 = vpop.xlane.xlu0 %2094 }
 0x550   : > { %7766 = vrcp.f32 %v2095_v23  ;;  %v10190_v23 = vmov 0  }
 0x551   : > { %v2098_v24 = vpop.xlane.xlu1 %2097  ;;  %2390 = vmatprep.mubr.bf16.mxu0 %v10190_v23 }
 0x552   : > { %7768 = vrcp.f32 %v2098_v24  ;;  %v9185_v24 = vld [vmem:[#allocation13 + $0x80] ss:$8 sps:$4 sm:$0xff]  }
 0x55a   : > { %v7767_v27 = vpop.eup %7766 }
 0x55b   : > { %v2101_v29 = vmul.f32 %v7767_v27, %v7763_v42  ;;  %v9187_v27 = vld [vmem:[#allocation13 + $0x84] ss:$8 sps:$4 sm:$0xff]  }
 0x55c   : > { %v7769_v34 = vpop.eup %7768  ;;  %2358 = vmatprep.subr.bf16.mxu0 %v9187_v27 }
 0x55d   : > { %v6775_v36 = vpack.c.bf16 %v2101_v29, %v2101_v29  ;;  %v2102_v48 = vmul.f32 %v7769_v34, %v7765_v14  ;;  %2359 = vmatpush1.bf16.msra.mxu0 %v9185_v24  ;;  %v9193_v34 = vld [vmem:[#allocation13 + $0x90] ss:$8 sps:$4 sm:$0xff]  }
 0x55f   : > { %2112 = vst.msk [vmem:[%s9150_s16] sm:$0xf] %vm2111_vm2, %v6775_v36  ;;  %v6776_v49 = vpack.c.bf16 %v2102_v48, %v2102_v48  ;;  %v2103_v50 = vpack.c.bf16 %v2102_v48, %v2101_v29  ;;  %v9189_v29 = vld [vmem:[#allocation13 + $0x94] ss:$8 sps:$4 sm:$0xff]   ;;  %v9196_v36 = vld [vmem:[#allocation13 + $0xa4] ss:$8 sps:$4 sm:$0xff]  }
 0x560   : > { %2360 = vmatprep.subr.bf16.mxu0 %v9189_v29  ;;  %v9199_v48 = vld [vmem:[#allocation13 + $0xa0] ss:$8 sps:$4 sm:$0xff]  }
 0x561   : > { %2113 = vst.msk [vmem:[%s9150_s16 + $0x4] sm:$0xf] %vm2111_vm2, %v6776_v49  ;;  %6864 = vmatmul.mubr.msk.bf16.vlgmr.msra.gmra.mrb[12].mxu1 %vm2080_vm1, %v2103_v50  ;;  %2361 = vmatpush1.bf16.msra.mxu0 %v9193_v34  ;;  %v9202_v49 = vld [vmem:[#allocation13 + $0xb4] ss:$8 sps:$4 sm:$0xff]   ;;  %v9205_v50 = vld [vmem:[#allocation13 + $0xb0] ss:$8 sps:$4 sm:$0xff]  }
 0x562   : > { %6868 = vmatpush3.bf16.xpose.msra.mxu1 %v2032_v13  ;;  %6869 = vmatprep.mubr.msk.bf16.mxu1 %vm8363_vm0, %v10192_v41 }
 0x563   : > { %6873 = vmatprep.subr.bf16.mxu1 %v10192_v41  ;;  %2362 = vmatprep.subr.bf16.mxu0 %v9196_v36 }
 0x565   : > { %2363 = vmatpush1.bf16.msra.mxu0 %v9199_v48 }
 0x566   : > { %2364 = vmatprep.subr.bf16.mxu0 %v9202_v49 }
 0x569   : > { %6870 = vmatmul.mubr.bf16.vlgmr.msra.gmra.mrb[16].mxu1 %v2028_v15  ;;  %2365 = vmatpush1.bf16.msra.mxu0 %v9205_v50 }
 0x56a   : > { %6874 = vmatpush3.bf16.msra.mxu1 %v2036_v61  ;;  %6875 = vmatprep.mubr.msk.bf16.mxu1 %vm8363_vm0, %v10192_v41 }
 0x56b   : > { %2481 = vmatprep.subr.bf16.mxu1 %v9181_v19 }
 0x634   : > { %v9171_v52 = vpop.f32.mrb[12].mxu1 }
 0x635   : > { %v6865_v62 = vpop.f32.mrb[13].mxu1 }
 0x636   : > { %v9173_v1 = vpop.f32.mrb[14].mxu1  ;;  %v9208_v62 = vld [vmem:[#allocation13 + $0xc4] ss:$8 sps:$4 sm:$0xff]  }
 0x637   : > { %v2158_v13 = vpack.c.bf16 %v9173_v1, %v9171_v52  ;;  %v6866_v53 = vpop.f32.mrb[15].mxu1  ;;  %2366 = vmatprep.subr.bf16.mxu0 %v9208_v62  ;;  %v10299_v52 = vpack.c.bf16 %v9107_v38, %v9099_v30 }
 0x638   : > { %v9211_v53 = vld [vmem:[#allocation13 + $0xc0] ss:$8 sps:$4 sm:$0xff]  }
 0x639   : > { %2367 = vmatpush1.bf16.msra.mxu0 %v9211_v53 }
 0x63c   : > { %v2193_v51 = vpop.f32.mrb[16].mxu1 }
 0x63d   : > { %v2194_v54 = vadd.f32 %v2193_v51, %v1990_v31  ;;  %v6871_v10 = vpop.f32.mrb[17].mxu1  ;;  %v9214_v51 = vld [vmem:[#allocation13 + $0xd4] ss:$8 sps:$4 sm:$0xff]  }
 0x63e   : > { %v2196_v11 = vpop.f32.mrb[18].mxu1  ;;  %2368 = vmatprep.subr.bf16.mxu0 %v9214_v51  ;;  %v9220_v10 = vld [vmem:[#allocation13 + $0xe4] ss:$8 sps:$4 sm:$0xff]  }
 0x63f   : > { %v2197_v15 = vadd.f32 %v2196_v11, %v1991_v32  ;;  %v6872_v56 = vpop.f32.mrb[19].mxu1  ;;  %v2200_v58 = vsel %vm2080_vm1, %v2194_v54, -inf  ;;  %v9223_v11 = vld [vmem:[#allocation13 + $0xe0] ss:$8 sps:$4 sm:$0xff]  }
 0x640   : > { %2201 = vmax.xlane.f32.xlu0 %v2200_v58  ;;  %v9229_v56 = vld [vmem:[#allocation13 + $0xf0] ss:$8 sps:$4 sm:$0xff]  }
 0x641   : > { %v2203_v59 = vsel %vm2080_vm1, %v2197_v15, -inf }
 0x642   : > { %2204 = vmax.xlane.f32.xlu1 %v2203_v59 }
 0x6cd   : > { %v2202_v61 = vpop.xlane.xlu0 %2201 }
 0x6ce   : > { %v2206_v57 = vsub.f32 %v2194_v54, %v2202_v61  ;;  %v9217_v54 = vld [vmem:[#allocation13 + $0xd0] ss:$8 sps:$4 sm:$0xff]  }
 0x6cf   : > { %v2205_v55 = vpop.xlane.xlu1 %2204  ;;  %2369 = vmatpush1.bf16.msra.mxu0 %v9217_v54 }
 0x6d0   : > { %v2208_v60 = vmul.f32 1.442695, %v2206_v57  ;;  %v2207_v63 = vsub.f32 %v2197_v15, %v2205_v55  ;;  %2370 = vmatprep.subr.bf16.mxu0 %v9220_v10  ;;  %v9226_v15 = vld [vmem:[#allocation13 + $0xf4] ss:$8 sps:$4 sm:$0xff]  }
 0x6d2   : > { %7770 = vpow2.f32 %v2208_v60  ;;  %v2210_v42 = vmul.f32 1.442695, %v2207_v63 }
 0x6d3   : > { %2371 = vmatpush1.bf16.msra.mxu0 %v9223_v11 }
 0x6d4   : > { %7772 = vpow2.f32 %v2210_v42  ;;  %2372 = vmatprep.subr.bf16.mxu0 %v9226_v15  ;;  %v9234_v42 = vld [vmem:[#allocation13] ss:$8 sps:$4 sm:$0xff]  }
 0x6d7   : > { %2373 = vmatpush1.bf16.msra.mxu0 %v9229_v56 }
 0x6d8   : > { %6879 = vmatprep.subr.bf16.mxu0 %v10192_v41 }
 0x6dc   : > { %v7771_v7 = vpop.eup %7770 }
 0x6dd   : > { %v2212_v31 = vsel %vm2080_vm1, %v7771_v7, 0.0 }
 0x6de   : > { %v7773_v14 = vpop.eup %7772  ;;  %2213 = vadd.xlane.f32.xlu0 %v2212_v31 }
 0x6df   : > { %v2215_v32 = vsel %vm2080_vm1, %v7773_v14, 0.0 }
 0x6e0   : > { %2216 = vadd.xlane.f32.xlu1 %v2215_v32 }
 0x76b   : > { %v2214_v58 = vpop.xlane.xlu0 %2213 }
 0x76c   : > { %7774 = vrcp.f32 %v2214_v58  ;;  %v9244_v58 = vld [vmem:[#allocation13 + $0x10] ss:$8 sps:$4 sm:$0xff]  }
 0x76d   : > { %v2217_v59 = vpop.xlane.xlu1 %2216 }
 0x76e   : > { %7776 = vrcp.f32 %v2217_v59  ;;  %v9254_v59 = vld [vmem:[#allocation13 + $0x34] ss:$8 sps:$4 sm:$0xff]  }
 0x776   : > { %v7775_v61 = vpop.eup %7774 }
 0x777   : > { %v2220_v57 = vmul.f32 %v7775_v61, %v7771_v7  ;;  %v9248_v7 = vld [vmem:[#allocation13 + $0x24] ss:$8 sps:$4 sm:$0xff]   ;;  %v9257_v61 = vld [vmem:[#allocation13 + $0x30] ss:$8 sps:$4 sm:$0xff]  }
 0x778   : > { %v7777_v55 = vpop.eup %7776 }
 0x779   : > { %v6777_v60 = vpack.c.bf16 %v2220_v57, %v2220_v57  ;;  %v2221_v63 = vmul.f32 %v7777_v55, %v7773_v14  ;;  %v9251_v14 = vld [vmem:[#allocation13 + $0x20] ss:$8 sps:$4 sm:$0xff]  }
 0x77a   : > { %v9263_v55 = vld [vmem:[#allocation13 + $0x40] ss:$8 sps:$4 sm:$0xff]  }
 0x77b   : > { %6422 = vst.msk [vmem:[%s9150_s16 + $0x8] sm:$0xf] %vm2111_vm2, %v6777_v60  ;;  %v6778_v31 = vpack.c.bf16 %v2221_v63, %v2221_v63  ;;  %v2222_v32 = vpack.c.bf16 %v2221_v63, %v2220_v57  ;;  %v9260_v57 = vld [vmem:[#allocation13 + $0x44] ss:$8 sps:$4 sm:$0xff]   ;;  %v9266_v60 = vld [vmem:[#allocation13 + $0x54] ss:$8 sps:$4 sm:$0xff]  }
 0x77c   : > { %v9269_v63 = vld [vmem:[#allocation13 + $0x50] ss:$8 sps:$4 sm:$0xff]  }
 0x77d   : > { %6423 = vst.msk [vmem:[%s9150_s16 + $0xc] sm:$0xf] %vm2111_vm2, %v6778_v31  ;;  %6876 = vmatmul.mubr.msk.bf16.vlgmr.msra.gmra.mrb[20].mxu1 %vm2080_vm1, %v2222_v32  ;;  %v9272_v31 = vld [vmem:[#allocation13 + $0x64] ss:$8 sps:$4 sm:$0xff]   ;;  %v9275_v32 = vld [vmem:[#allocation13 + $0x60] ss:$8 sps:$4 sm:$0xff]  }
 0x77e   : > { %2482 = vmatpush1.bf16.msra.mxu1 %v9234_v42  ;;  %2513 = vmatprep.mubr.bf16.mxu1 %v10190_v23  ;;  %10293 = vst [vmem:[#allocation52_spill] sm:$0xff] %v9272_v31  ;;  %10294 = vst [vmem:[#allocation53_spill] sm:$0xff] %v9275_v32  ;;  %v9278_v23 = vld [vmem:[#allocation13 + $0x74] ss:$8 sps:$4 sm:$0xff]  }
 0x77f   : > { %2483 = vmatprep.subr.bf16.mxu1 %v9238_v18  ;;  %10295 = vst [vmem:[#allocation54_spill] sm:$0xff] %v9278_v23 }
 0x782   : > { %2484 = vmatpush1.bf16.msra.mxu1 %v9244_v58 }
 0x783   : > { %2485 = vmatprep.subr.bf16.mxu1 %v9248_v7 }
 0x786   : > { %2486 = vmatpush1.bf16.msra.mxu1 %v9251_v14 }
 0x787   : > { %2487 = vmatprep.subr.bf16.mxu1 %v9254_v59 }
 0x78a   : > { %2488 = vmatpush1.bf16.msra.mxu1 %v9257_v61 }
 0x78b   : > { %2489 = vmatprep.subr.bf16.mxu1 %v9260_v57 }
 0x78e   : > { %2490 = vmatpush1.bf16.msra.mxu1 %v9263_v55 }
 0x78f   : > { %2491 = vmatprep.subr.bf16.mxu1 %v9266_v60 }
 0x792   : > { %2492 = vmatpush1.bf16.msra.mxu1 %v9269_v63 }
 0x793   : > { %2493 = vmatprep.subr.bf16.mxu1 %v9272_v31 }
 0x796   : > { %2494 = vmatpush1.bf16.msra.mxu1 %v9275_v32 }
 0x797   : > { %2495 = vmatprep.subr.bf16.mxu1 %v9278_v23 }
 0x79a   : > { %2496 = vmatpush1.bf16.msra.mxu1 %v9281_v46 }
 0x79d   : > { %2514 = vmatmul.mubr.bf16.vlgmr.msra.gmra.mrb[24].mxu1 %v2158_v13 }
 0x850   : > { %v2270_v45 = vpop.f32.mrb[20].mxu1 }
 0x851   : > { %v6877_v17 = vpop.f32.mrb[21].mxu1 }
 0x852   : > { %v2273_v47 = vpop.f32.mrb[22].mxu1  ;;  %v10300_v17 = vpack.c.bf16 %v9136_v9, %v9132_v0 }
 0x853   : > { %v2277_v41 = vpack.c.bf16 %v2273_v47, %v2270_v45  ;;  %v6878_v39 = vpop.f32.mrb[23].mxu1 }
 0x854   : > { %v6813_v39 = vld [vmem:[%s8940_s4 + $0x8] sm:$0xff]   ;;  %s10307_s4 = sld [smem:[#allocation67_spill]] }
 0x855   : > { %2391 = vmatmul.mubr.bf16.vlgmr.msra.gmra.mrb[16].mxu0 %v2277_v41  ;;  %v6803_v45 = vunpack.c.l.bf16 %v6813_v39  ;;  %v6804_v47 = vunpack.c.h.bf16 %v6813_v39 }
 0x856   : > { %6880 = vmatpush3.bf16.xpose.msra.mxu0 %v10297_v44  ;;  %6881 = vmatprep.mubr.msk.bf16.mxu0 %vm8363_vm0, %v10298_v43 }
 0x857   : > { %6885 = vmatprep.subr.bf16.mxu0 %v10298_v43  ;;  %v6415_v38 = vadd.f32 -1.0, %v6803_v45  ;;  %v6416_v26 = vadd.f32 -1.0, %v6804_v47 }
 0x859   : > { %v1992_v21 = vmul.f32 1e+09, %v6415_v38  ;;  %v1993_v20 = vmul.f32 1e+09, %v6416_v26 }
 0x85d   : > { %6882 = vmatmul.mubr.bf16.vlgmr.msra.gmra.mrb[20].mxu0 %v10299_v52 }
 0x85e   : > { %6886 = vmatpush3.bf16.msra.mxu0 %v10300_v17  ;;  %6887 = vmatprep.mubr.msk.bf16.mxu0 %vm8363_vm0, %v10298_v43 }
 0x85f   : > { %6891 = vmatprep.subr.bf16.mxu0 %v10298_v43 }
 0x870   : > { %v2515_v41 = vpop.f32.mrb[24].mxu1 }
 0x871   : > { %v2517_v44 = vpop.f32.mrb[25].mxu1 }
 0x872   : > { %v2519_v22 = vpop.f32.mrb[26].mxu1 }
 0x873   : > { %v2521_v33 = vpop.f32.mrb[27].mxu1 }
 0x928   : > { %v2392_v1 = vpop.f32.mrb[16].mxu0 }
 0x929   : > { %v9304_v13 = vadd.f32 %v2515_v41, %v2392_v1  ;;  %v2394_v30 = vpop.f32.mrb[17].mxu0 }
 0x92a   : > { %v9306_v52 = vadd.f32 %v2517_v44, %v2394_v30  ;;  %v2396_v0 = vpop.f32.mrb[18].mxu0 }
 0x92b   : > { %v9308_v9 = vadd.f32 %v2519_v22, %v2396_v0  ;;  %v2398_v17 = vpop.f32.mrb[19].mxu0 }
 0x92c   : > { %v9310_v25 = vadd.f32 %v2521_v33, %v2398_v17 }
 0x930   : > { %v2558_v46 = vpop.f32.mrb[20].mxu0 }
 0x931   : > { %v2559_v23 = vadd.f32 %v2558_v46, %v1992_v21  ;;  %v6883_v32 = vpop.f32.mrb[21].mxu0 }
 0x932   : > { %v2561_v39 = vpop.f32.mrb[22].mxu0 }
 0x933   : > { %v2562_v31 = vadd.f32 %v2561_v39, %v1993_v20  ;;  %v6884_v41 = vpop.f32.mrb[23].mxu0  ;;  %v2565_v1 = vsel %vm2080_vm1, %v2559_v23, -inf }
 0x934   : > { %2566 = vmax.xlane.f32.xlu0 %v2565_v1 }
 0x935   : > { %v2568_v44 = vsel %vm2080_vm1, %v2562_v31, -inf }
 0x936   : > { %2569 = vmax.xlane.f32.xlu1 %v2568_v44 }
 0x9c1   : > { %v2567_v22 = vpop.xlane.xlu0 %2566 }
 0x9c2   : > { %v2571_v45 = vsub.f32 %v2559_v23, %v2567_v22 }
 0x9c3   : > { %v2570_v30 = vpop.xlane.xlu1 %2569 }
 0x9c4   : > { %v2573_v47 = vmul.f32 1.442695, %v2571_v45  ;;  %v2572_v33 = vsub.f32 %v2562_v31, %v2570_v30  ;;  %v10301_v30 = vpack.c.bf16 %v9105_v37, %v9097_v28 }
 0x9c6   : > { %7778 = vpow2.f32 %v2573_v47  ;;  %v2575_v38 = vmul.f32 1.442695, %v2572_v33  ;;  %v10302_v47 = vpack.c.bf16 %v9111_v40, %v9103_v35  ;;  %v10303_v33 = vpack.c.bf16 %v9138_v16, %v9134_v6 }
 0x9c8   : > { %7780 = vpow2.f32 %v2575_v38 }
 0x9d0   : > { %v7779_v26 = vpop.eup %7778 }
 0x9d1   : > { %v2577_v46 = vsel %vm2080_vm1, %v7779_v26, 0.0 }
 0x9d2   : > { %v7781_v32 = vpop.eup %7780  ;;  %2578 = vadd.xlane.f32.xlu0 %v2577_v46 }
 0x9d3   : > { %v2580_v0 = vsel %vm2080_vm1, %v7781_v32, 0.0 }
 0x9d4   : > { %2581 = vadd.xlane.f32.xlu1 %v2580_v0 }
 0xa5f   : > { %v2579_v17 = vpop.xlane.xlu0 %2578 }
 0xa60   : > { %7782 = vrcp.f32 %v2579_v17 }
 0xa61   : > { %v2582_v39 = vpop.xlane.xlu1 %2581 }
 0xa62   : > { %7784 = vrcp.f32 %v2582_v39  ;;  %v7358_v39 = vld [vmem:[#allocation14] ss:$8 sps:$4 sm:$0xff]  }
 0xa6a   : > { %v7783_v23 = vpop.eup %7782 }
 0xa6b   : > { %v2585_v41 = vmul.f32 %v7783_v23, %v7779_v26  ;;  %v7360_v23 = vld [vmem:[#allocation14 + $0x4] ss:$8 sps:$4 sm:$0xff]  }
 0xa6c   : > { %v7785_v31 = vpop.eup %7784  ;;  %3199 = vmatprep.subr.bf16.mxu1 %v7360_v23 }
 0xa6d   : > { %v6779_v1 = vpack.c.bf16 %v2585_v41, %v2585_v41  ;;  %v2586_v44 = vmul.f32 %v7785_v31, %v7781_v32  ;;  %3200 = vmatpush1.bf16.msra.mxu1 %v7358_v39  ;;  %v7361_v31 = vld [vmem:[#allocation14 + $0x10] ss:$8 sps:$4 sm:$0xff]  }
 0xa6f   : > { %6459 = vst.msk [vmem:[%s9150_s16 + $0x10] sm:$0xf] %vm2111_vm2, %v6779_v1  ;;  %v6780_v22 = vpack.c.bf16 %v2586_v44, %v2586_v44  ;;  %v2587_v45 = vpack.c.bf16 %v2586_v44, %v2585_v41  ;;  %v7363_v41 = vld [vmem:[#allocation14 + $0x14] ss:$8 sps:$4 sm:$0xff]   ;;  %v7366_v1 = vld [vmem:[#allocation14 + $0x24] ss:$8 sps:$4 sm:$0xff]  }
 0xa70   : > { %3201 = vmatprep.subr.bf16.mxu1 %v7363_v41  ;;  %v7369_v44 = vld [vmem:[#allocation14 + $0x34] ss:$8 sps:$4 sm:$0xff]  }
 0xa71   : > { %6460 = vst.msk [vmem:[%s9150_s16 + $0x14] sm:$0xf] %vm2111_vm2, %v6780_v22  ;;  %6888 = vmatmul.mubr.msk.bf16.vlgmr.msra.gmra.mrb[24].mxu0 %vm2080_vm1, %v2587_v45  ;;  %3202 = vmatpush1.bf16.msra.mxu1 %v7361_v31  ;;  %v7372_v22 = vld [vmem:[#allocation14 + $0x44] ss:$8 sps:$4 sm:$0xff]   ;;  %v7370_v45 = vld [vmem:[#allocation14 + $0x40] ss:$8 sps:$4 sm:$0xff]  }
 0xa72   : > { %6892 = vmatpush3.bf16.xpose.msra.mxu0 %v10301_v30  ;;  %6893 = vmatprep.mubr.msk.bf16.mxu0 %vm8363_vm0, %v10298_v43  ;;  %v7375_v30 = vld [vmem:[#allocation14 + $0x54] ss:$8 sps:$4 sm:$0xff]  }
 0xa73   : > { %6897 = vmatprep.subr.bf16.mxu0 %v10298_v43  ;;  %3203 = vmatprep.subr.bf16.mxu1 %v7366_v1 }
 0xa79   : > { %6894 = vmatmul.mubr.bf16.vlgmr.msra.gmra.mrb[28].mxu0 %v10302_v47  ;;  %v7373_v47 = vld [vmem:[#allocation14 + $0x50] ss:$8 sps:$4 sm:$0xff]  }
 0xa7a   : > { %6898 = vmatpush3.bf16.msra.mxu0 %v10303_v33  ;;  %6899 = vmatprep.mubr.msk.bf16.mxu0 %vm8363_vm0, %v10298_v43  ;;  %v7378_v33 = vld [vmem:[#allocation14 + $0x64] ss:$8 sps:$4 sm:$0xff]  }
 0xa7b   : > { %2762 = vmatprep.subr.bf16.mxu0 %v9187_v27 }
 0xb44   : > { %v9336_v28 = vpop.f32.mrb[24].mxu0 }
 0xb45   : > { %v6889_v37 = vpop.f32.mrb[25].mxu0 }
 0xb46   : > { %v9338_v38 = vpop.f32.mrb[26].mxu0  ;;  %v7376_v37 = vld [vmem:[#allocation14 + $0x60] ss:$8 sps:$4 sm:$0xff]  }
 0xb47   : > { %v2642_v26 = vpack.c.bf16 %v9338_v38, %v9336_v28  ;;  %v6890_v46 = vpop.f32.mrb[27].mxu0  ;;  %v7421_v28 = vld [vmem:[#allocation16 + $0xa0] ss:$16 sps:$4 sm:$0xff]   ;;  %v7426_v38 = vld [vmem:[#allocation16 + $0xc4] ss:$16 sps:$4 sm:$0xff]  }
 0xb4c   : > { %v2677_v35 = vpop.f32.mrb[28].mxu0 }
 0xb4d   : > { %v2678_v40 = vadd.f32 %v2677_v35, %v1992_v21  ;;  %v6895_v32 = vpop.f32.mrb[29].mxu0  ;;  %v7364_v21 = vld [vmem:[#allocation14 + $0x20] ss:$8 sps:$4 sm:$0xff]  }
 0xb4e   : > { %v2680_v0 = vpop.f32.mrb[30].mxu0  ;;  %3204 = vmatpush1.bf16.msra.mxu1 %v7364_v21 }
 0xb4f   : > { %v2681_v6 = vadd.f32 %v2680_v0, %v1993_v20  ;;  %v6896_v16 = vpop.f32.mrb[31].mxu0  ;;  %v2684_v17 = vsel %vm2080_vm1, %v2678_v40, -inf  ;;  %v7367_v20 = vld [vmem:[#allocation14 + $0x30] ss:$8 sps:$4 sm:$0xff]   ;;  %3205 = vmatprep.subr.bf16.mxu1 %v7369_v44 }
 0xb50   : > { %2685 = vmax.xlane.f32.xlu0 %v2684_v17  ;;  %v2026_v17 = vld [vmem:[%s10304_s0] sm:$0x3]  ;;  %s10324_s0 = sld [smem:[#allocation73_spill]] }
 0xb51   : > { %v2687_v27 = vsel %vm2080_vm1, %v2681_v6, -inf  ;;  %v9348_v39 = vrot.slane %v2026_v17, %v9028_v12  ;;  %v9351_v23 = vrot.slane %v2026_v17, %v9025_v8  ;;  %v7388_v17 = vld [vmem:[#allocation14 + $0xa0] ss:$8 sps:$4 sm:$0xff]  }
 0xb52   : > { %2688 = vmax.xlane.f32.xlu1 %v2687_v27  ;;  %3206 = vmatpush1.bf16.msra.mxu1 %v7367_v20 }
 0xb53   : > { %3207 = vmatprep.subr.bf16.mxu1 %v7372_v22  ;;  %v2859_v41 = vadd.f32 %v9348_v39, %v9304_v13  ;;  %v2862_v31 = vadd.f32 %v9351_v23, %v9310_v25 }
 0xb55   : > { %v9364_v21 = vadd.f32 %v2859_v41, %v8980_v2  ;;  %v7391_v41 = vld [vmem:[#allocation14 + $0xb0] ss:$8 sps:$4 sm:$0xff]  }
 0xb56   : > { %3208 = vmatpush1.bf16.msra.mxu1 %v7370_v45 }
 0xb57   : > { %3209 = vmatprep.subr.bf16.mxu1 %v7375_v30 }
 0xb5a   : > { %3210 = vmatpush1.bf16.msra.mxu1 %v7373_v47 }
 0xb5b   : > { %3211 = vmatprep.subr.bf16.mxu1 %v7378_v33  ;;  %v7381_v33 = vld [vmem:[#allocation14 + $0x74] ss:$8 sps:$4 sm:$0xff]  }
 0xb5e   : > { %3212 = vmatpush1.bf16.msra.mxu1 %v7376_v37  ;;  %v7379_v37 = vld [vmem:[#allocation14 + $0x70] ss:$8 sps:$4 sm:$0xff]  }
 0xb5f   : > { %3213 = vmatprep.subr.bf16.mxu1 %v7381_v33 }
 0xb62   : > { %3214 = vmatpush1.bf16.msra.mxu1 %v7379_v37 }
 0xbdd   : > { %v2686_v46 = vpop.xlane.xlu0 %2685 }
 0xbde   : > { %v2690_v35 = vsub.f32 %v2678_v40, %v2686_v46  ;;  %v2860_v40 = vadd.f32 %v9351_v23, %v9306_v52  ;;  %v7384_v46 = vld [vmem:[#allocation14 + $0x84] ss:$8 sps:$4 sm:$0xff]  }
 0xbdf   : > { %v2689_v32 = vpop.xlane.xlu1 %2688  ;;  %3215 = vmatprep.subr.bf16.mxu1 %v7384_v46 }
 0xbe0   : > { %v2692_v0 = vmul.f32 1.442695, %v2690_v35  ;;  %v2691_v16 = vsub.f32 %v2681_v6, %v2689_v32  ;;  %v2861_v6 = vadd.f32 %v9348_v39, %v9308_v9  ;;  %v9367_v44 = vadd.f32 %v2860_v40, %v8982_v3  ;;  %v7382_v35 = vld [vmem:[#allocation14 + $0x80] ss:$8 sps:$4 sm:$0xff]   ;;  %v7387_v32 = vld [vmem:[#allocation14 + $0x94] ss:$8 sps:$4 sm:$0xff]  }
 0xbe1   : > { %v9377_v9 = vadd.f32 %v2862_v31, %v8986_v5  ;;  %v2893_v3 = vmul.f32 %v9364_v21, %v9364_v21  ;;  %3216 = vmatpush1.bf16.msra.mxu1 %v7382_v35  ;;  %v7396_v40 = vld [vmem:[#allocation14 + $0xc4] ss:$8 sps:$4 sm:$0xff]   ;;  %v7399_v31 = vld [vmem:[#allocation14 + $0xd4] ss:$8 sps:$4 sm:$0xff]  }
 0xbe2   : > { %7786 = vpow2.f32 %v2692_v0  ;;  %v2694_v27 = vmul.f32 1.442695, %v2691_v16  ;;  %v9374_v52 = vadd.f32 %v2861_v6, %v8984_v4  ;;  %v2877_v2 = vadd.f32 %v9367_v44, %v9364_v21  ;;  %v7385_v0 = vld [vmem:[#allocation14 + $0x90] ss:$8 sps:$4 sm:$0xff]   ;;  %3217 = vmatprep.subr.bf16.mxu1 %v7387_v32  ;;  %v7390_v16 = vld [vmem:[#allocation14 + $0xa4] ss:$8 sps:$4 sm:$0xff]  }
 0xbe3   : > { %v2894_v22 = vmul.f32 %v9367_v44, %v9367_v44  ;;  %v2896_v45 = vmul.f32 %v9377_v9, %v9377_v9  ;;  %v7394_v6 = vld [vmem:[#allocation14 + $0xc0] ss:$8 sps:$4 sm:$0xff]  }
 0xbe4   : > { %7788 = vpow2.f32 %v2694_v27  ;;  %v2880_v4 = vadd.f32 %v9377_v9, %v9374_v52  ;;  %v2895_v5 = vmul.f32 %v9374_v52, %v9374_v52  ;;  %v7393_v27 = vld [vmem:[#allocation14 + $0xb4] ss:$8 sps:$4 sm:$0xff]  }
 0xbe5   : > { %v2901_v30 = vadd.f32 %v2894_v22, %v2893_v3  ;;  %3218 = vmatpush1.bf16.msra.mxu1 %v7385_v0  ;;  %v7405_v3 = vld [vmem:[#allocation14 + $0xf4] ss:$8 sps:$4 sm:$0xff]   ;;  %v7403_v22 = vld [vmem:[#allocation14 + $0xf0] ss:$8 sps:$4 sm:$0xff]  }
 0xbe6   : > { %v2904_v47 = vadd.f32 %v2896_v45, %v2895_v5  ;;  %3219 = vmatprep.subr.bf16.mxu1 %v7390_v16 }
 0xbe9   : > { %3220 = vmatpush1.bf16.msra.mxu1 %v7388_v17 }
 0xbea   : > { %3221 = vmatprep.subr.bf16.mxu1 %v7393_v27 }
 0xbec   : > { %v9361_v1 = vpop.eup %7786 }
 0xbed   : > { %v2696_v13 = vsel %vm2080_vm1, %v9361_v1, 0.0  ;;  %3222 = vmatpush1.bf16.msra.mxu1 %v7391_v41 }
 0xbee   : > { %v9371_v20 = vpop.eup %7788  ;;  %2697 = vadd.xlane.f32.xlu0 %v2696_v13  ;;  %3223 = vmatprep.subr.bf16.mxu1 %v7396_v40  ;;  %v7397_v13 = vld [vmem:[#allocation14 + $0xd0] ss:$8 sps:$4 sm:$0xff]  }
 0xbef   : > { %v2699_v25 = vsel %vm2080_vm1, %v9371_v20, 0.0 }
 0xbf0   : > { %2700 = vadd.xlane.f32.xlu1 %v2699_v25  ;;  %v7402_v25 = vld [vmem:[#allocation14 + $0xe4] ss:$8 sps:$4 sm:$0xff]  }
 0xbf1   : > { %3224 = vmatpush1.bf16.msra.mxu1 %v7394_v6 }
 0xbf2   : > { %2878 = vadd.xlane.f32.xlu0 %v2877_v2  ;;  %3225 = vmatprep.subr.bf16.mxu1 %v7399_v31  ;;  %v7400_v2 = vld [vmem:[#allocation14 + $0xe0] ss:$8 sps:$4 sm:$0xff]  }
 0xbf4   : > { %2881 = vadd.xlane.f32.xlu1 %v2880_v4 }
 0xbf5   : > { %3226 = vmatpush1.bf16.msra.mxu1 %v7397_v13 }
 0xbf6   : > { %2902 = vadd.xlane.f32.xlu0 %v2901_v30  ;;  %3227 = vmatprep.subr.bf16.mxu1 %v7402_v25 }
 0xbf8   : > { %2905 = vadd.xlane.f32.xlu1 %v2904_v47 }
 0xbf9   : > { %3228 = vmatpush1.bf16.msra.mxu1 %v7400_v2 }
 0xbfa   : > { %3229 = vmatprep.subr.bf16.mxu1 %v7405_v3 }
 0xbfd   : > { %3230 = vmatpush1.bf16.msra.mxu1 %v7403_v22 }
 0xc7b   : > { %v2698_v4 = vpop.xlane.xlu0 %2697 }
 0xc7c   : > { %7790 = vrcp.f32 %v2698_v4 }
 0xc7d   : > { %v2701_v5 = vpop.xlane.xlu1 %2700 }
 0xc7e   : > { %7792 = vrcp.f32 %v2701_v5 }
 0xc7f   : > { %v2879_v45 = vpop.xlane.xlu0 %2878 }
 0xc80   : > { %v2889_v30 = vmul.f32 0.00390625, %v2879_v45 }
 0xc81   : > { %v2882_v47 = vpop.xlane.xlu1 %2881 }
 0xc82   : > { %v2890_v33 = vmul.f32 0.00390625, %v2882_v47  ;;  %v2917_v46 = vmul.f32 %v2889_v30, %v2889_v30  ;;  %v2929_v45 = vsub.f32 %v9364_v21, %v2889_v30  ;;  %v2930_v47 = vsub.f32 %v9367_v44, %v2889_v30 }
 0xc83   : > { %v2903_v37 = vpop.xlane.xlu0 %2902 }
 0xc84   : > { %v2913_v35 = vmul.f32 0.00390625, %v2903_v37  ;;  %v2918_v17 = vmul.f32 %v2890_v33, %v2890_v33 }
 0xc85   : > { %v2906_v32 = vpop.xlane.xlu1 %2905 }
 0xc86   : > { %v7791_v0 = vpop.eup %7790  ;;  %v2921_v16 = vsub.f32 %v2913_v35, %v2917_v46  ;;  %v2914_v27 = vmul.f32 0.00390625, %v2906_v32 }
 0xc87   : > { %v2704_v41 = vmul.f32 %v7791_v0, %v9361_v1  ;;  %v10305_v1 = vmov 0  }
 0xc88   : > { %v7793_v40 = vpop.eup %7792  ;;  %v2925_v6 = vmax.f32 %v2921_v16, 0.0  ;;  %v2922_v31 = vsub.f32 %v2914_v27, %v2918_v17 }
 0xc89   : > { %v6781_v13 = vpack.c.bf16 %v2704_v41, %v2704_v41  ;;  %v2705_v25 = vmul.f32 %v7793_v40, %v9371_v20  ;;  %v2875_v20 = vld [vmem:[%s10306_s29] sm:$0x3]  ;;  %s10325_s29 = sld [smem:[#allocation74_spill]] }
 0xc8a   : > { %v2937_v2 = vadd.f32 1e-12, %v2925_v6  ;;  %v2926_v3 = vmax.f32 %v2922_v31, 0.0  ;;  %v9414_v37 = vrot.slane %v2875_v20, %v9028_v12 }
 0xc8b   : > { %6464 = vst.msk [vmem:[%s9150_s16 + $0x18] sm:$0xf] %vm2111_vm2, %v6781_v13  ;;  %v6782_v22 = vpack.c.bf16 %v2705_v25, %v2705_v25  ;;  %v2706_v4 = vpack.c.bf16 %v2705_v25, %v2704_v41 }
 0xc8c   : > { %7794 = vrsqrt.f32 %v2937_v2  ;;  %v2938_v5 = vadd.f32 1e-12, %v2926_v3 }
 0xc8d   : > { %6465 = vst.msk [vmem:[%s9150_s16 + $0x1c] sm:$0xf] %vm2111_vm2, %v6782_v22  ;;  %6900 = vmatmul.mubr.msk.bf16.vlgmr.msra.gmra.mrb[32].mxu0 %vm2080_vm1, %v2706_v4 }
 0xc8e   : > { %7796 = vrsqrt.f32 %v2938_v5  ;;  %2763 = vmatpush1.bf16.msra.mxu0 %v9185_v24  ;;  %2794 = vmatprep.mubr.bf16.mxu0 %v10305_v1  ;;  %v2876_v24 = vld [vmem:[%s10307_s4] sm:$0x3]  ;;  %s10326_s4 = sld [smem:[#allocation75_spill]] }
 0xc8f   : > { %2764 = vmatprep.subr.bf16.mxu0 %v9189_v29  ;;  %v9417_v29 = vrot.slane %v2875_v20, %v9025_v8  ;;  %v9424_v0 = vrot.slane %v2876_v24, %v9028_v12  ;;  %v9427_v16 = vrot.slane %v2876_v24, %v9025_v8  ;;  %v10310_v5 = vld [vmem:[#allocation53_spill] sm:$0xff]  ;;  %v10311_v20 = vld [vmem:[#allocation54_spill] sm:$0xff] }
 0xc90   : > { %v9489_v24 = vld [vmem:[%s8949_s24 + $0x4] ss:$8 sps:$4 sm:$0xff]  }
 0xc92   : > { %2765 = vmatpush1.bf16.msra.mxu0 %v9193_v34  ;;  %v2931_v34 = vsub.f32 %v9374_v52, %v2890_v33 }
 0xc93   : > { %2766 = vmatprep.subr.bf16.mxu0 %v9196_v36  ;;  %v2932_v36 = vsub.f32 %v9377_v9, %v2890_v33 }
 0xc96   : > { %v7795_v46 = vpop.eup %7794  ;;  %2767 = vmatpush1.bf16.msra.mxu0 %v9199_v48 }
 0xc97   : > { %v2946_v35 = vmul.f32 %v7795_v46, %v2930_v47  ;;  %v2945_v32 = vmul.f32 %v7795_v46, %v2929_v45  ;;  %2768 = vmatprep.subr.bf16.mxu0 %v9202_v49  ;;  %v7408_v45 = vld [vmem:[#allocation16 + $0x4] ss:$16 sps:$4 sm:$0xff]   ;;  %v10312_v47 = vld [vmem:[#allocation55_spill] sm:$0xff] }
 0xc98   : > { %v7797_v30 = vpop.eup %7796  ;;  %v7411_v46 = vld [vmem:[#allocation16 + $0x24] ss:$16 sps:$4 sm:$0xff]  }
 0xc99   : > { %v2948_v17 = vmul.f32 %v7797_v30, %v2932_v36  ;;  %v2965_v27 = vmul.f32 %v9417_v29, %v2946_v35  ;;  %v2947_v41 = vmul.f32 %v7797_v30, %v2931_v34  ;;  %v2964_v48 = vmul.f32 %v9414_v37, %v2945_v32  ;;  %v7409_v34 = vld [vmem:[#allocation16 + $0x20] ss:$16 sps:$4 sm:$0xff]   ;;  %v7414_v36 = vld [vmem:[#allocation16 + $0x44] ss:$16 sps:$4 sm:$0xff]  }
 0xc9a   : > { %2769 = vmatpush1.bf16.msra.mxu0 %v9205_v50  ;;  %v7412_v35 = vld [vmem:[#allocation16 + $0x40] ss:$16 sps:$4 sm:$0xff]   ;;  %v7417_v32 = vld [vmem:[#allocation16 + $0x64] ss:$16 sps:$4 sm:$0xff]  }
 0xc9b   : > { %v2967_v33 = vmul.f32 %v9417_v29, %v2948_v17  ;;  %v2966_v40 = vmul.f32 %v9414_v37, %v2947_v41  ;;  %2770 = vmatprep.subr.bf16.mxu0 %v9208_v62  ;;  %v2984_v49 = vadd.f32 %v9427_v16, %v2965_v27  ;;  %v2983_v31 = vadd.f32 %v9424_v0, %v2964_v48  ;;  %v7415_v30 = vld [vmem:[#allocation16 + $0x60] ss:$16 sps:$4 sm:$0xff]   ;;  %v7420_v17 = vld [vmem:[#allocation16 + $0x84] ss:$16 sps:$4 sm:$0xff]  }
 0xc9c   : > { %v7418_v27 = vld [vmem:[#allocation16 + $0x80] ss:$16 sps:$4 sm:$0xff]   ;;  %v7423_v41 = vld [vmem:[#allocation16 + $0xa4] ss:$16 sps:$4 sm:$0xff]  }
 0xc9d   : > { %v2986_v6 = vadd.f32 %v9427_v16, %v2967_v33  ;;  %v2985_v13 = vadd.f32 %v9424_v0, %v2966_v40  ;;  %v7429_v48 = vld [vmem:[#allocation16 + $0xe4] ss:$16 sps:$4 sm:$0xff]   ;;  %v7427_v33 = vld [vmem:[#allocation16 + $0xe0] ss:$16 sps:$4 sm:$0xff]  }
 0xc9e   : > { %2771 = vmatpush1.bf16.msra.mxu0 %v9211_v53  ;;  %v7432_v40 = vld [vmem:[#allocation16 + $0x104] ss:$16 sps:$4 sm:$0xff]  }
 0xc9f   : > { %v2992_v25 = vpack.c.bf16 %v2986_v6, %v2984_v49  ;;  %v2991_v2 = vpack.c.bf16 %v2985_v13, %v2983_v31  ;;  %2772 = vmatprep.subr.bf16.mxu0 %v9214_v51  ;;  %v7430_v49 = vld [vmem:[#allocation16 + $0x100] ss:$16 sps:$4 sm:$0xff]   ;;  %v7435_v6 = vld [vmem:[#allocation16 + $0x124] ss:$16 sps:$4 sm:$0xff]  }
 0xca0   : > { %v7433_v31 = vld [vmem:[#allocation16 + $0x120] ss:$16 sps:$4 sm:$0xff]   ;;  %v7438_v13 = vld [vmem:[#allocation16 + $0x144] ss:$16 sps:$4 sm:$0xff]  }
 0xca1   : > { %3231 = vmatprep.mubr.bf16.mxu1 %v2992_v25  ;;  %v7436_v25 = vld [vmem:[#allocation16 + $0x140] ss:$16 sps:$4 sm:$0xff]  }
 0xca2   : > { %3232 = vmatmul.mubr.bf16.vlgmr.msra.gmra.mrb[28].mxu1 %v2991_v2  ;;  %2773 = vmatpush1.bf16.msra.mxu0 %v9217_v54  ;;  %v7441_v2 = vld [vmem:[#allocation16 + $0x164] ss:$16 sps:$4 sm:$0xff]  }
 0xca3   : > { %2774 = vmatprep.subr.bf16.mxu0 %v9220_v10 }
 0xca6   : > { %2775 = vmatpush1.bf16.msra.mxu0 %v9223_v11 }
 0xca7   : > { %2776 = vmatprep.subr.bf16.mxu0 %v9226_v15 }
 0xcaa   : > { %2777 = vmatpush1.bf16.msra.mxu0 %v9229_v56 }
 0xcab   : > { %2805 = vmatprep.subr.bf16.mxu0 %v9181_v19  ;;  %v3027_v19 = vld [vmem:[%s10308_s6] sm:$0x3] }
 0xcac   : > { %v9459_v51 = vrot.slane %v3027_v19, %v9028_v12 }
 0xd60   : > { %v2754_v50 = vpop.f32.mrb[32].mxu0 }
 0xd61   : > { %v6901_v62 = vpop.f32.mrb[33].mxu0 }
 0xd62   : > { %v2757_v53 = vpop.f32.mrb[34].mxu0  ;;  %v7444_v62 = vld [vmem:[#allocation16 + $0x184] ss:$16 sps:$4 sm:$0xff]  }
 0xd63   : > { %v2761_v3 = vpack.c.bf16 %v2757_v53, %v2754_v50  ;;  %v6902_v22 = vpop.f32.mrb[35].mxu0  ;;  %v7439_v50 = vld [vmem:[#allocation16 + $0x160] ss:$16 sps:$4 sm:$0xff]  }
 0xd64   : > { %v7442_v53 = vld [vmem:[#allocation16 + $0x180] ss:$16 sps:$4 sm:$0xff]  }
 0xd65   : > { %2795 = vmatmul.mubr.bf16.vlgmr.msra.gmra.mrb[36].mxu0 %v2761_v3  ;;  %v7447_v3 = vld [vmem:[#allocation16 + $0x1a4] ss:$16 sps:$4 sm:$0xff]   ;;  %v7445_v22 = vld [vmem:[#allocation16 + $0x1a0] ss:$16 sps:$4 sm:$0xff]  }
 0xd66   : > { %2806 = vmatpush1.bf16.msra.mxu0 %v9234_v42  ;;  %2837 = vmatprep.mubr.bf16.mxu0 %v10305_v1 }
 0xd67   : > { %2807 = vmatprep.subr.bf16.mxu0 %v9238_v18  ;;  %v9463_v18 = vrot.slane %v3027_v19, %v9025_v8  ;;  %v7450_v19 = vld [vmem:[#allocation16 + $0x1c4] ss:$16 sps:$4 sm:$0xff]  }
 0xd6a   : > { %2808 = vmatpush1.bf16.msra.mxu0 %v9244_v58 }
 0xd6b   : > { %2809 = vmatprep.subr.bf16.mxu0 %v9248_v7 }
 0xd6e   : > { %2810 = vmatpush1.bf16.msra.mxu0 %v9251_v14 }
 0xd6f   : > { %2811 = vmatprep.subr.bf16.mxu0 %v9254_v59 }
 0xd72   : > { %2812 = vmatpush1.bf16.msra.mxu0 %v9257_v61 }
 0xd73   : > { %2813 = vmatprep.subr.bf16.mxu0 %v9260_v57 }
 0xd75   : > { %v3233_v54 = vpop.f32.mrb[28].mxu1 }
 0xd76   : > { %2814 = vmatpush1.bf16.msra.mxu0 %v9263_v55  ;;  %v3234_v10 = vadd.f32 %v3233_v54, %v9459_v51  ;;  %v3235_v11 = vpop.f32.mrb[29].mxu1  ;;  %v10309_v55 = vld [vmem:[#allocation52_spill] sm:$0xff] }
 0xd77   : > { %v3236_v15 = vadd.f32 %v3235_v11, %v9463_v18  ;;  %v3237_v56 = vpop.f32.mrb[30].mxu1  ;;  %2815 = vmatprep.subr.bf16.mxu0 %v9266_v60  ;;  %v7448_v54 = vld [vmem:[#allocation16 + $0x1c0] ss:$16 sps:$4 sm:$0xff]  }
 0xd78   : > { %v3238_v42 = vadd.f32 %v3237_v56, %v9459_v51  ;;  %v3239_v58 = vpop.f32.mrb[31].mxu1  ;;  %v9471_v14 = vmul.f32 0.088388346, %v3234_v10  ;;  %v7453_v10 = vld [vmem:[#allocation16 + $0x1e4] ss:$16 sps:$4 sm:$0xff]  }
 0xd79   : > { %v3240_v7 = vadd.f32 %v3239_v58, %v9463_v18  ;;  %v9476_v61 = vmul.f32 0.088388346, %v3236_v15  ;;  %v7451_v11 = vld [vmem:[#allocation16 + $0x1e0] ss:$16 sps:$4 sm:$0xff]  }
 0xd7a   : > { %v9473_v59 = vmul.f32 0.088388346, %v3238_v42  ;;  %2816 = vmatpush1.bf16.msra.mxu0 %v9269_v63  ;;  %v7406_v63 = vld [vmem:[#allocation16] ss:$16 sps:$4 sm:$0xff]  }
 0xd7b   : > { %v9478_v57 = vmul.f32 0.088388346, %v3240_v7  ;;  %2817 = vmatprep.subr.bf16.mxu0 %v10309_v55  ;;  %v9496_v15 = vld [vmem:[%s8949_s24] ss:$8 sps:$4 sm:$0xff]   ;;  %v9499_v56 = vld [vmem:[%s8949_s24 + $0x14] ss:$8 sps:$4 sm:$0xff]  }
 0xd7c   : > { %v3909_v60 = vpack.c.bf16 %v9473_v59, %v9471_v14  ;;  %v9505_v42 = vld [vmem:[%s8949_s24 + $0x10] ss:$8 sps:$4 sm:$0xff]   ;;  %v9509_v58 = vld [vmem:[%s8949_s24 + $0x24] ss:$8 sps:$4 sm:$0xff]   ;;  %v9512_v7 = vld [vmem:[%s8949_s24 + $0x20] ss:$8 sps:$4 sm:$0xff]  }
 0xd7d   : > { %v3910_v4 = vpack.c.bf16 %v9478_v57, %v9476_v61  ;;  %v9517_v55 = vld [vmem:[%s8949_s24 + $0x34] ss:$8 sps:$4 sm:$0xff]  }
 0xd7e   : > { %2818 = vmatpush1.bf16.msra.mxu0 %v10310_v5  ;;  %v9520_v5 = vld [vmem:[%s8949_s24 + $0x30] ss:$8 sps:$4 sm:$0xff]  }
 0xd7f   : > { %2819 = vmatprep.subr.bf16.mxu0 %v10311_v20 }
 0xd82   : > { %2820 = vmatpush1.bf16.msra.mxu0 %v10312_v47 }
 0xd83   : > { %3714 = vmatprep.subr.bf16.mxu0 %v7408_v45 }
 0xd85   : > { %2838 = vmatmul.mubr.bf16.vlgmr.msra.gmra.mrb[36].mxu0 %v2642_v26  ;;  %v7424_v26 = vld [vmem:[#allocation16 + $0xc0] ss:$16 sps:$4 sm:$0xff]  }
 0xd86   : > { %3715 = vmatpush1.bf16.msra.mxu0 %v7406_v63  ;;  %3746 = vmatprep.mubr.bf16.mxu0 %v9489_v24 }
 0xd87   : > { %3716 = vmatprep.subr.bf16.mxu0 %v7411_v46 }
 0xd8a   : > { %3717 = vmatpush1.bf16.msra.mxu0 %v7409_v34  ;;  %v10313_v34 = vld [vmem:[#allocation46_spill] sm:$0xff] }
 0xd8b   : > { %3718 = vmatprep.subr.bf16.mxu0 %v7414_v36 }
 0xd8e   : > { %3719 = vmatpush1.bf16.msra.mxu0 %v7412_v35 }
 0xd8f   : > { %3720 = vmatprep.subr.bf16.mxu0 %v7417_v32 }
 0xd92   : > { %3721 = vmatpush1.bf16.msra.mxu0 %v7415_v30  ;;  %v10314_v30 = vld [vmem:[#allocation47_spill] sm:$0xff] }
 0xd93   : > { %3722 = vmatprep.subr.bf16.mxu0 %v7420_v17 }
 0xd96   : > { %3723 = vmatpush1.bf16.msra.mxu0 %v7418_v27 }
 0xd97   : > { %3724 = vmatprep.subr.bf16.mxu0 %v7423_v41  ;;  %v10315_v41 = vld [vmem:[#allocation48_spill] sm:$0xff] }
 0xd9a   : > { %3725 = vmatpush1.bf16.msra.mxu0 %v7421_v28 }
 0xd9b   : > { %3726 = vmatprep.subr.bf16.mxu0 %v7426_v38  ;;  %v10316_v38 = vld [vmem:[#allocation49_spill] sm:$0xff] }
 0xd9e   : > { %3727 = vmatpush1.bf16.msra.mxu0 %v7424_v26 }
 0xd9f   : > { %3728 = vmatprep.subr.bf16.mxu0 %v7429_v48 }
 0xda2   : > { %3729 = vmatpush1.bf16.msra.mxu0 %v7427_v33 }
 0xda3   : > { %3730 = vmatprep.subr.bf16.mxu0 %v7432_v40 }
 0xda6   : > { %3731 = vmatpush1.bf16.msra.mxu0 %v7430_v49 }
 0xda7   : > { %3732 = vmatprep.subr.bf16.mxu0 %v7435_v6 }
 0xdaa   : > { %3733 = vmatpush1.bf16.msra.mxu0 %v7433_v31 }
 0xdab   : > { %3734 = vmatprep.subr.bf16.mxu0 %v7438_v13  ;;  %v9557_v13 = vld [vmem:[%s10317_s11] sm:$0xf]  ;;  %s9979_s11 = scalar_lea.hbm %s10328_s5, %s6794_s8 }
 0xdae   : > { %3735 = vmatpush1.bf16.msra.mxu0 %v7436_v25  ;;  %v3337_v25 = vrot.slane %v9557_v13, %v9028_v12 }
 0xdaf   : > { %3736 = vmatprep.subr.bf16.mxu0 %v7441_v2  ;;  %v3341_v2 = vrot.slane %v9557_v13, %v9025_v8 }
 0xdb2   : > { %3737 = vmatpush1.bf16.msra.mxu0 %v7439_v50 }
 0xdb3   : > { %3738 = vmatprep.subr.bf16.mxu0 %v7444_v62 }
 0xdb6   : > { %3739 = vmatpush1.bf16.msra.mxu0 %v7442_v53 }
 0xdb7   : > { %3740 = vmatprep.subr.bf16.mxu0 %v7447_v3 }
 0xdba   : > { %3741 = vmatpush1.bf16.msra.mxu0 %v7445_v22 }
 0xdbb   : > { %3742 = vmatprep.subr.bf16.mxu0 %v7450_v19 }
 0xdbe   : > { %3743 = vmatpush1.bf16.msra.mxu0 %v7448_v54 }
 0xdbf   : > { %3744 = vmatprep.subr.bf16.mxu0 %v7453_v10 }
 0xdc2   : > { %3745 = vmatpush1.bf16.msra.mxu0 %v7451_v11 }
 0xdc3   : > { %6903 = vmatprep.subr.bf16.mxu0 %v10298_v43 }
 0xdc5   : > { %3747 = vmatmul.mubr.bf16.vlgmr.msra.gmra.mrb[40].mxu0 %v9496_v15 }
 0xdc6   : > { %3756 = vmatprep.mubr.bf16.mxu0 %v9499_v56 }
 0xdcd   : > { %3757 = vmatmul.mubr.bf16.gmra.mrb[44].mxu0 %v9505_v42 }
 0xdce   : > { %3766 = vmatprep.mubr.bf16.mxu0 %v9509_v58 }
 0xdd5   : > { %3767 = vmatmul.mubr.bf16.gmra.mrb[48].mxu0 %v9512_v7 }
 0xdd6   : > { %3776 = vmatprep.mubr.bf16.mxu0 %v9517_v55 }
 0xddd   : > { %3777 = vmatmul.mubr.bf16.gmra.mrb[52].mxu0 %v9520_v5 }
 0xdde   : > { %6907 = vmatprep.mubr.msk.bf16.mxu0 %vm8363_vm0, %v10298_v43 }
 0xe58   : > { %v2839_v20 = vpop.f32.mrb[36].mxu0 }
 0xe59   : > { %v2863_v45 = vadd.f32 %v9348_v39, %v2839_v20  ;;  %v2841_v47 = vpop.f32.mrb[37].mxu0 }
 0xe5a   : > { %v2864_v63 = vadd.f32 %v9351_v23, %v2841_v47  ;;  %v2843_v46 = vpop.f32.mrb[38].mxu0 }
 0xe5b   : > { %v9529_v36 = vadd.f32 %v2863_v45, %v10313_v34  ;;  %v2865_v35 = vadd.f32 %v9348_v39, %v2843_v46  ;;  %v2845_v32 = vpop.f32.mrb[39].mxu0 }
 0xe5c   : > { %v9533_v17 = vadd.f32 %v2864_v63, %v10314_v30  ;;  %v2866_v27 = vadd.f32 %v9351_v23, %v2845_v32 }
 0xe5d   : > { %v9537_v28 = vadd.f32 %v2865_v35, %v10315_v41  ;;  %v2897_v33 = vmul.f32 %v9529_v36, %v9529_v36 }
 0xe5e   : > { %v9540_v26 = vadd.f32 %v2866_v27, %v10316_v38  ;;  %v2883_v48 = vadd.f32 %v9533_v17, %v9529_v36  ;;  %v2898_v39 = vmul.f32 %v9533_v17, %v9533_v17 }
 0xe5f   : > { %v2899_v23 = vmul.f32 %v9537_v28, %v9537_v28 }
 0xe60   : > { %2884 = vadd.xlane.f32.xlu0 %v2883_v48  ;;  %v2886_v40 = vadd.f32 %v9540_v26, %v9537_v28  ;;  %v2900_v49 = vmul.f32 %v9540_v26, %v9540_v26  ;;  %v2907_v6 = vadd.f32 %v2898_v39, %v2897_v33 }
 0xe62   : > { %2887 = vadd.xlane.f32.xlu1 %v2886_v40  ;;  %v2910_v31 = vadd.f32 %v2900_v49, %v2899_v23 }
 0xe64   : > { %2908 = vadd.xlane.f32.xlu0 %v2907_v6 }
 0xe66   : > { %2911 = vadd.xlane.f32.xlu1 %v2910_v31 }
 0xe98   : > { %v3748_v50 = vpop.f32.mrb[40].mxu0 }
 0xe99   : > { %v3750_v62 = vpop.f32.mrb[41].mxu0  ;;  %v3749_v3 = vadd.f32 %v3748_v50, %v3337_v25 }
 0xe9a   : > { %v3752_v53 = vpop.f32.mrb[42].mxu0  ;;  %v9563_v54 = vadd.f32 %v3750_v62, %v3341_v2 }
 0xe9b   : > { %v3753_v22 = vadd.f32 %v3752_v53, %v3337_v25  ;;  %v3754_v19 = vpop.f32.mrb[43].mxu0 }
 0xe9c   : > { %v9565_v10 = vadd.f32 %v3754_v19, %v3341_v2 }
 0xe9d   : > { %v3913_v11 = vpack.c.bf16 %v3753_v22, %v3749_v3 }
 0xe9e   : > { %v3914_v20 = vpack.c.bf16 %v9565_v10, %v9563_v54 }
 0xe9f   : > { %6904 = vmatpush3.bf16.xpose.msra.mxu0 %v3913_v11 }
 0xea0   : > { %v3758_v45 = vpop.f32.mrb[44].mxu0  ;;  %6905 = vmatprep.subr.bf16.mxu0 %v10298_v43 }
 0xea1   : > { %v3760_v47 = vpop.f32.mrb[45].mxu0  ;;  %v3759_v46 = vadd.f32 %v3758_v45, %v3337_v25 }
 0xea2   : > { %v3762_v63 = vpop.f32.mrb[46].mxu0  ;;  %v9570_v32 = vadd.f32 %v3760_v47, %v3341_v2 }
 0xea3   : > { %v3763_v34 = vadd.f32 %v3762_v63, %v3337_v25  ;;  %v3764_v35 = vpop.f32.mrb[47].mxu0 }
 0xea4   : > { %v9572_v30 = vadd.f32 %v3764_v35, %v3341_v2 }
 0xea5   : > { %v3915_v27 = vpack.c.bf16 %v3763_v34, %v3759_v46 }
 0xea6   : > { %v3916_v41 = vpack.c.bf16 %v9572_v30, %v9570_v32 }
 0xea7   : > { %6906 = vmatpush3.bf16.xpose.msra.mxu0 %v3915_v27 }
 0xea8   : > { %6911 = vmatprep.subr.bf16.mxu0 %v10298_v43  ;;  %v3768_v33 = vpop.f32.mrb[48].mxu0 }
 0xea9   : > { %v9582_v40 = vadd.f32 %v3768_v33, %v3337_v25  ;;  %v3770_v23 = vpop.f32.mrb[49].mxu0 }
 0xeaa   : > { %v3772_v6 = vpop.f32.mrb[50].mxu0  ;;  %v9584_v50 = vadd.f32 %v3770_v23, %v3341_v2 }
 0xeab   : > { %v9586_v62 = vadd.f32 %v3772_v6, %v3337_v25  ;;  %v3774_v53 = vpop.f32.mrb[51].mxu0 }
 0xeac   : > { %v9590_v22 = vadd.f32 %v3774_v53, %v3341_v2 }
 0xead   : > { %v3917_v3 = vpack.c.bf16 %v9586_v62, %v9582_v40  ;;  %v6814_v40 = vld [vmem:[%s8952_s12 + $0x8] sm:$0xff]  }
 0xeae   : > { %6908 = vmatmul.mubr.bf16.vlgmr.msra.gmra.mrb[56].mxu0 %v3909_v60 }
 0xeaf   : > { %6915 = vmatprep.mubr.msk.bf16.mxu0 %vm8363_vm0, %v10298_v43 }
 0xeb0   : > { %v3778_v34 = vpop.f32.mrb[52].mxu0 }
 0xeb1   : > { %v9594_v35 = vadd.f32 %v3778_v34, %v3337_v25  ;;  %v3780_v27 = vpop.f32.mrb[53].mxu0 }
 0xeb2   : > { %v3782_v23 = vpop.f32.mrb[54].mxu0 }
 0xeb3   : > { %v9598_v6 = vadd.f32 %v3782_v23, %v3337_v25 }
 0xeb5   : > { %v10320_v54 = vpack.c.bf16 %v9598_v6, %v9594_v35  ;;  %v6812_v35 = vunpack.c.h.bf16 %v6814_v40 }
 0xeed   : > { %v2885_v38 = vpop.xlane.xlu0 %2884 }
 0xeee   : > { %v2891_v48 = vmul.f32 0.00390625, %v2885_v38 }
 0xeef   : > { %v2888_v39 = vpop.xlane.xlu1 %2887 }
 0xef0   : > { %v2892_v49 = vmul.f32 0.00390625, %v2888_v39  ;;  %v2919_v14 = vmul.f32 %v2891_v48, %v2891_v48  ;;  %v9596_v39 = vadd.f32 %v3780_v27, %v3341_v2 }
 0xef1   : > { %v2909_v31 = vpop.xlane.xlu0 %2908 }
 0xef2   : > { %v2915_v59 = vmul.f32 0.00390625, %v2909_v31  ;;  %v2920_v11 = vmul.f32 %v2892_v49, %v2892_v49  ;;  %v3784_v31 = vpop.f32.mrb[55].mxu0  ;;  %v2935_v25 = vsub.f32 %v9537_v28, %v2892_v49 }
 0xef3   : > { %v2912_v60 = vpop.xlane.xlu1 %2911 }
 0xef4   : > { %v2923_v19 = vsub.f32 %v2915_v59, %v2919_v14  ;;  %v2916_v45 = vmul.f32 0.00390625, %v2912_v60  ;;  %v9600_v14 = vadd.f32 %v3784_v31, %v3341_v2  ;;  %v7466_v31 = vld [vmem:[#allocation16 + $0x8] ss:$16 sps:$4 sm:$0xff]   ;;  %v7471_v60 = vld [vmem:[#allocation16 + $0x2c] ss:$16 sps:$4 sm:$0xff]  }
 0xef5   : > { %v7469_v59 = vld [vmem:[#allocation16 + $0x28] ss:$16 sps:$4 sm:$0xff]  }
 0xef6   : > { %v2927_v63 = vmax.f32 %v2923_v19, 0.0  ;;  %v2924_v46 = vsub.f32 %v2916_v45, %v2920_v11  ;;  %v2933_v19 = vsub.f32 %v9529_v36, %v2891_v48  ;;  %v2934_v11 = vsub.f32 %v9533_v17, %v2891_v48 }
 0xef8   : > { %v2939_v38 = vadd.f32 1e-12, %v2927_v63  ;;  %v2928_v33 = vmax.f32 %v2924_v46, 0.0  ;;  %v2936_v63 = vsub.f32 %v9540_v26, %v2892_v49 }
 0xefa   : > { %7798 = vrsqrt.f32 %v2939_v38  ;;  %v2940_v53 = vadd.f32 1e-12, %v2928_v33 }
 0xefc   : > { %7800 = vrsqrt.f32 %v2940_v53  ;;  %v7468_v53 = vld [vmem:[#allocation16 + $0xc] ss:$16 sps:$4 sm:$0xff]  }
 0xefd   : > { %3787 = vmatprep.subr.bf16.mxu1 %v7468_v53  ;;  %v7498_v53 = vld [vmem:[#allocation16 + $0x14c] ss:$16 sps:$4 sm:$0xff]  }
 0xefe   : > { %3788 = vmatpush1.bf16.msra.mxu1 %v7466_v31  ;;  %v7493_v31 = vld [vmem:[#allocation16 + $0x128] ss:$16 sps:$4 sm:$0xff]  }
 0xeff   : > { %3789 = vmatprep.subr.bf16.mxu1 %v7471_v60  ;;  %v7481_v60 = vld [vmem:[#allocation16 + $0xa8] ss:$16 sps:$4 sm:$0xff]  }
 0xf02   : > { %3790 = vmatpush1.bf16.msra.mxu1 %v7469_v59  ;;  %v7484_v59 = vld [vmem:[#allocation16 + $0xc8] ss:$16 sps:$4 sm:$0xff]  }
 0xf04   : > { %v7799_v45 = vpop.eup %7798 }
 0xf05   : > { %v2950_v46 = vmul.f32 %v7799_v45, %v2934_v11  ;;  %v2949_v34 = vmul.f32 %v7799_v45, %v2933_v19 }
 0xf06   : > { %v7801_v2 = vpop.eup %7800 }
 0xf07   : > { %v2952_v27 = vmul.f32 %v7801_v2, %v2936_v63  ;;  %v2969_v38 = vmul.f32 %v9417_v29, %v2950_v46  ;;  %v2951_v33 = vmul.f32 %v7801_v2, %v2935_v25  ;;  %v2968_v23 = vmul.f32 %v9414_v37, %v2949_v34  ;;  %v7474_v25 = vld [vmem:[#allocation16 + $0x4c] ss:$16 sps:$4 sm:$0xff]   ;;  %v7472_v34 = vld [vmem:[#allocation16 + $0x48] ss:$16 sps:$4 sm:$0xff]  }
 0xf08   : > { %3791 = vmatprep.subr.bf16.mxu1 %v7474_v25  ;;  %v7486_v2 = vld [vmem:[#allocation16 + $0xcc] ss:$16 sps:$4 sm:$0xff]  }
 0xf09   : > { %v2971_v47 = vmul.f32 %v9417_v29, %v2952_v27  ;;  %v2970_v48 = vmul.f32 %v9414_v37, %v2951_v33  ;;  %v2988_v49 = vadd.f32 %v9427_v16, %v2969_v38  ;;  %v2987_v11 = vadd.f32 %v9424_v0, %v2968_v23  ;;  %v7477_v37 = vld [vmem:[#allocation16 + $0x6c] ss:$16 sps:$4 sm:$0xff]   ;;  %3792 = vmatpush1.bf16.msra.mxu1 %v7472_v34  ;;  %v7475_v29 = vld [vmem:[#allocation16 + $0x68] ss:$16 sps:$4 sm:$0xff]  }
 0xf0a   : > { %3793 = vmatprep.subr.bf16.mxu1 %v7477_v37  ;;  %v7489_v27 = vld [vmem:[#allocation16 + $0xec] ss:$16 sps:$4 sm:$0xff]   ;;  %v7487_v38 = vld [vmem:[#allocation16 + $0xe8] ss:$16 sps:$4 sm:$0xff]  }
 0xf0b   : > { %v2990_v19 = vadd.f32 %v9427_v16, %v2971_v47  ;;  %v2989_v45 = vadd.f32 %v9424_v0, %v2970_v48  ;;  %v7480_v16 = vld [vmem:[#allocation16 + $0x8c] ss:$16 sps:$4 sm:$0xff]   ;;  %v7478_v47 = vld [vmem:[#allocation16 + $0x88] ss:$16 sps:$4 sm:$0xff]  }
 0xf0c   : > { %v7483_v0 = vld [vmem:[#allocation16 + $0xac] ss:$16 sps:$4 sm:$0xff]   ;;  %v7490_v33 = vld [vmem:[#allocation16 + $0x108] ss:$16 sps:$4 sm:$0xff]  }
 0xf0d   : > { %v2994_v63 = vpack.c.bf16 %v2990_v19, %v2988_v49  ;;  %v2993_v46 = vpack.c.bf16 %v2989_v45, %v2987_v11  ;;  %3794 = vmatpush1.bf16.msra.mxu1 %v7475_v29  ;;  %v7495_v23 = vld [vmem:[#allocation16 + $0x12c] ss:$16 sps:$4 sm:$0xff]   ;;  %v7496_v48 = vld [vmem:[#allocation16 + $0x148] ss:$16 sps:$4 sm:$0xff]  }
 0xf0e   : > { %3795 = vmatprep.subr.bf16.mxu1 %v7480_v16  ;;  %v7501_v49 = vld [vmem:[#allocation16 + $0x16c] ss:$16 sps:$4 sm:$0xff]   ;;  %v7499_v19 = vld [vmem:[#allocation16 + $0x168] ss:$16 sps:$4 sm:$0xff]  }
 0xf0f   : > { %3241 = vmatprep.mubr.bf16.mxu1 %v2994_v63  ;;  %v7504_v11 = vld [vmem:[#allocation16 + $0x18c] ss:$16 sps:$4 sm:$0xff]   ;;  %v7502_v45 = vld [vmem:[#allocation16 + $0x188] ss:$16 sps:$4 sm:$0xff]  }
 0xf10   : > { %3242 = vmatmul.mubr.bf16.gmra.mrb[32].mxu1 %v2993_v46  ;;  %v7507_v25 = vld [vmem:[#allocation16 + $0x1ac] ss:$16 sps:$4 sm:$0xff]   ;;  %v7505_v63 = vld [vmem:[#allocation16 + $0x1a8] ss:$16 sps:$4 sm:$0xff]  }
 0xf11   : > { %3819 = vmatprep.mubr.bf16.mxu1 %v9489_v24  ;;  %3796 = vmatpush1.bf16.msra.mxu1 %v7478_v47  ;;  %v7492_v24 = vld [vmem:[#allocation16 + $0x10c] ss:$16 sps:$4 sm:$0xff]   ;;  %v7508_v34 = vld [vmem:[#allocation16 + $0x1c8] ss:$16 sps:$4 sm:$0xff]  }
 0xf12   : > { %3797 = vmatprep.subr.bf16.mxu1 %v7483_v0  ;;  %v7510_v46 = vld [vmem:[#allocation16 + $0x1cc] ss:$16 sps:$4 sm:$0xff]   ;;  %v7511_v29 = vld [vmem:[#allocation16 + $0x1e8] ss:$16 sps:$4 sm:$0xff]  }
 0xf13   : > { %v7513_v37 = vld [vmem:[#allocation16 + $0x1ec] ss:$16 sps:$4 sm:$0xff]  }
 0xf14   : > { %v6806_v16 = vld [vmem:[%s8952_s12] sm:$0xff]   ;;  %s5945_s12 = scalar_lea.sflag [#allocation24], %s8936_s23 }
 0xf15   : > { %3798 = vmatpush1.bf16.msra.mxu1 %v7481_v60  ;;  %v6807_v47 = vunpack.c.l.bf16 %v6806_v16  ;;  %v6808_v0 = vunpack.c.h.bf16 %v6806_v16 }
 0xf16   : > { %3799 = vmatprep.subr.bf16.mxu1 %v7486_v2 }
 0xf17   : > { %v6571_v60 = vadd.f32 -1.0, %v6807_v47 }
 0xf19   : > { %3800 = vmatpush1.bf16.msra.mxu1 %v7484_v59  ;;  %v9630_v2 = vmul.f32 1e+09, %v6571_v60 }
 0xf1a   : > { %3801 = vmatprep.subr.bf16.mxu1 %v7489_v27 }
 0xf1d   : > { %3802 = vmatpush1.bf16.msra.mxu1 %v7487_v38 }
 0xf1e   : > { %3803 = vmatprep.subr.bf16.mxu1 %v7492_v24 }
 0xf21   : > { %3804 = vmatpush1.bf16.msra.mxu1 %v7490_v33 }
 0xf22   : > { %3805 = vmatprep.subr.bf16.mxu1 %v7495_v23 }
 0xf25   : > { %3806 = vmatpush1.bf16.msra.mxu1 %v7493_v31 }
 0xf26   : > { %3807 = vmatprep.subr.bf16.mxu1 %v7498_v53 }
 0xf29   : > { %3808 = vmatpush1.bf16.msra.mxu1 %v7496_v48 }
 0xf2a   : > { %3809 = vmatprep.subr.bf16.mxu1 %v7501_v49 }
 0xf2d   : > { %3810 = vmatpush1.bf16.msra.mxu1 %v7499_v19 }
 0xf2e   : > { %3811 = vmatprep.subr.bf16.mxu1 %v7504_v11 }
 0xf31   : > { %3812 = vmatpush1.bf16.msra.mxu1 %v7502_v45 }
 0xf32   : > { %3813 = vmatprep.subr.bf16.mxu1 %v7507_v25 }
 0xf35   : > { %3814 = vmatpush1.bf16.msra.mxu1 %v7505_v63 }
 0xf36   : > { %3815 = vmatprep.subr.bf16.mxu1 %v7510_v46 }
 0xf39   : > { %3816 = vmatpush1.bf16.msra.mxu1 %v7508_v34 }
 0xf3a   : > { %3817 = vmatprep.subr.bf16.mxu1 %v7513_v37 }
 0xf3d   : > { %3818 = vmatpush1.bf16.msra.mxu1 %v7511_v29 }
 0xf3e   : > { %6927 = vmatprep.subr.bf16.mxu1 %v10298_v43 }
 0xf40   : > { %3820 = vmatmul.mubr.bf16.vlgmr.msra.gmra.mrb[36].mxu1 %v9496_v15  ;;  %v6572_v15 = vadd.f32 -1.0, %v6808_v0 }
 0xf41   : > { %3829 = vmatprep.mubr.bf16.mxu1 %v9499_v56 }
 0xf42   : > { %v9632_v56 = vmul.f32 1e+09, %v6572_v15 }
 0xf48   : > { %3830 = vmatmul.mubr.bf16.gmra.mrb[40].mxu1 %v9505_v42 }
 0xf49   : > { %3839 = vmatprep.mubr.bf16.mxu1 %v9509_v58 }
 0xf50   : > { %3840 = vmatmul.mubr.bf16.gmra.mrb[44].mxu1 %v9512_v7 }
 0xf51   : > { %3849 = vmatprep.mubr.bf16.mxu1 %v9517_v55 }
 0xf58   : > { %3850 = vmatmul.mubr.bf16.gmra.mrb[48].mxu1 %v9520_v5 }
 0xf59   : > { %6931 = vmatprep.mubr.msk.bf16.mxu1 %vm8363_vm0, %v10298_v43 }
 0xf81   : > { %v3963_v42 = vpop.f32.mrb[56].mxu0 }
 0xf82   : > { %v3964_v58 = vadd.f32 %v3963_v42, %v9630_v2  ;;  %v6909_v7 = vpop.f32.mrb[57].mxu0 }
 0xf83   : > { %v3966_v55 = vpop.f32.mrb[58].mxu0 }
 0xf84   : > { %v3967_v5 = vadd.f32 %v3966_v55, %v9632_v56  ;;  %v6910_v59 = vpop.f32.mrb[59].mxu0  ;;  %v3971_v27 = vsel %vm3970_vm3, %v3964_v58, -inf }
 0xf85   : > { %3972 = vmax.xlane.f32.xlu0 %v3971_v27  ;;  %v10318_v59 = vld [vmem:[#allocation50_spill] sm:$0xff] }
 0xf86   : > { %v3974_v38 = vsel %vm3970_vm3, %v3967_v5, -inf  ;;  %v9658_v27 = vrot.slane %v9557_v13, %v10318_v59 }
 0xf87   : > { %3975 = vmax.xlane.f32.xlu1 %v3974_v38 }
 0xfe3   : > { %v3243_v24 = vpop.f32.mrb[32].mxu1 }
 0xfe4   : > { %v3244_v33 = vadd.f32 %v3243_v24, %v9459_v51  ;;  %v3245_v23 = vpop.f32.mrb[33].mxu1 }
 0xfe5   : > { %v3246_v31 = vadd.f32 %v3245_v23, %v9463_v18  ;;  %v3247_v53 = vpop.f32.mrb[34].mxu1 }
 0xfe6   : > { %v3248_v48 = vadd.f32 %v3247_v53, %v9459_v51  ;;  %v3249_v49 = vpop.f32.mrb[35].mxu1  ;;  %v9642_v11 = vmul.f32 0.088388346, %v3244_v33 }
 0xfe7   : > { %v3250_v19 = vadd.f32 %v3249_v49, %v9463_v18  ;;  %v9646_v25 = vmul.f32 0.088388346, %v3246_v31 }
 0xfe8   : > { %v9644_v45 = vmul.f32 0.088388346, %v3248_v48 }
 0xfe9   : > { %v9648_v63 = vmul.f32 0.088388346, %v3250_v19 }
 0xfea   : > { %v3911_v46 = vpack.c.bf16 %v9644_v45, %v9642_v11  ;;  %v6574_v11 = vadd.f32 -1.0, %v6812_v35 }
 0xfeb   : > { %v3912_v34 = vpack.c.bf16 %v9648_v63, %v9646_v25 }
0x1012   : > { %v3973_v37 = vpop.xlane.xlu0 %3972 }
0x1013   : > { %v3977_v29 = vsub.f32 %v3964_v58, %v3973_v37  ;;  %v3821_v0 = vpop.f32.mrb[36].mxu1  ;;  %v10319_v58 = vld [vmem:[#allocation51_spill] sm:$0xff] }
0x1014   : > { %v3976_v51 = vpop.xlane.xlu1 %3975  ;;  %v3823_v60 = vpop.f32.mrb[37].mxu1  ;;  %v9662_v38 = vrot.slane %v9557_v13, %v10319_v58 }
0x1015   : > { %v3979_v16 = vmul.f32 1.442695, %v3977_v29  ;;  %v3978_v47 = vsub.f32 %v3967_v5, %v3976_v51  ;;  %v3822_v5 = vadd.f32 %v3821_v0, %v9658_v27  ;;  %v3825_v33 = vpop.f32.mrb[38].mxu1 }
0x1016   : > { %v3824_v24 = vadd.f32 %v3823_v60, %v9662_v38  ;;  %v3827_v23 = vpop.f32.mrb[39].mxu1  ;;  %v3826_v31 = vadd.f32 %v3825_v33, %v9658_v27 }
0x1017   : > { %7802 = vpow2.f32 %v3979_v16  ;;  %v3981_v18 = vmul.f32 1.442695, %v3978_v47  ;;  %v3828_v53 = vadd.f32 %v3827_v23, %v9662_v38 }
0x1018   : > { %v3921_v48 = vpack.c.bf16 %v3826_v31, %v3822_v5 }
0x1019   : > { %7804 = vpow2.f32 %v3981_v18  ;;  %v3922_v49 = vpack.c.bf16 %v3828_v53, %v3824_v24 }
0x101a   : > { %6912 = vmatpush3.bf16.msra.mxu0 %v3921_v48 }
0x101b   : > { %v3831_v19 = vpop.f32.mrb[40].mxu1  ;;  %6928 = vmatpush3.bf16.msra.mxu1 %v3922_v49  ;;  %6913 = vmatprep.subr.bf16.mxu0 %v10298_v43 }
0x101c   : > { %v3833_v37 = vpop.f32.mrb[41].mxu1  ;;  %6929 = vmatprep.subr.bf16.mxu1 %v10298_v43  ;;  %v3832_v29 = vadd.f32 %v3831_v19, %v9658_v27 }
0x101d   : > { %v3835_v13 = vpop.f32.mrb[42].mxu1  ;;  %v3834_v51 = vadd.f32 %v3833_v37, %v9662_v38 }
0x101e   : > { %v3836_v16 = vadd.f32 %v3835_v13, %v9658_v27  ;;  %v3837_v47 = vpop.f32.mrb[43].mxu1 }
0x101f   : > { %v3838_v18 = vadd.f32 %v3837_v47, %v9662_v38 }
0x1020   : > { %v3923_v0 = vpack.c.bf16 %v3836_v16, %v3832_v29 }
0x1021   : > { %v7803_v15 = vpop.eup %7802  ;;  %v3924_v60 = vpack.c.bf16 %v3838_v18, %v3834_v51 }
0x1022   : > { %v3983_v42 = vsel %vm3970_vm3, %v7803_v15, 0.0  ;;  %6914 = vmatpush3.bf16.msra.mxu0 %v3923_v0 }
0x1023   : > { %v7805_v7 = vpop.eup %7804  ;;  %3984 = vadd.xlane.f32.xlu0 %v3983_v42  ;;  %6919 = vmatprep.subr.bf16.mxu0 %v10298_v43  ;;  %v3841_v16 = vpop.f32.mrb[44].mxu1 }
0x1024   : > { %v3986_v55 = vsel %vm3970_vm3, %v7805_v7, 0.0  ;;  %6930 = vmatpush3.bf16.msra.mxu1 %v3924_v60  ;;  %v3842_v47 = vadd.f32 %v3841_v16, %v9658_v27  ;;  %v3843_v18 = vpop.f32.mrb[45].mxu1 }
0x1025   : > { %3987 = vadd.xlane.f32.xlu1 %v3986_v55  ;;  %v3845_v0 = vpop.f32.mrb[46].mxu1 }
0x1026   : > { %v3846_v60 = vadd.f32 %v3845_v0, %v9658_v27  ;;  %v3847_v35 = vpop.f32.mrb[47].mxu1 }
0x10b0   : > { %v3985_v42 = vpop.xlane.xlu0 %3984 }
0x10b1   : > { %7806 = vrcp.f32 %v3985_v42  ;;  %v3925_v42 = vpack.c.bf16 %v3846_v60, %v3842_v47 }
0x10b2   : > { %v3988_v55 = vpop.xlane.xlu1 %3987 }
0x10b3   : > { %7808 = vrcp.f32 %v3988_v55 }
0x10bb   : > { %v7807_v5 = vpop.eup %7806 }
0x10bc   : > { %v3991_v24 = vmul.f32 %v7807_v5, %v7803_v15 }
0x10bd   : > { %v7809_v33 = vpop.eup %7808 }
0x10be   : > { %v6783_v23 = vpack.c.bf16 %v3991_v24, %v3991_v24  ;;  %v3992_v31 = vmul.f32 %v7809_v33, %v7805_v7 }
0x10c0   : > { %4002 = vst.msk [vmem:[%s9676_s15] sm:$0xf] %vm4001_vm4, %v6783_v23  ;;  %v6784_v53 = vpack.c.bf16 %v3992_v31, %v3992_v31  ;;  %v3993_v48 = vpack.c.bf16 %v3992_v31, %v3991_v24 }
0x10c2   : > { %4003 = vst.msk [vmem:[%s9676_s15 + $0x4] sm:$0xf] %vm4001_vm4, %v6784_v53  ;;  %6916 = vmatmul.mubr.msk.bf16.vlgmr.msra.gmra.mrb[60].mxu0 %vm3970_vm3, %v3993_v48 }
0x10c3   : > { %6920 = vmatpush3.bf16.xpose.msra.mxu0 %v3914_v20  ;;  %6923 = vmatprep.mubr.msk.bf16.mxu0 %vm8363_vm0, %v10298_v43 }
0x10c4   : > { %6921 = vmatprep.subr.bf16.mxu0 %v10298_v43 }
0x10cb   : > { %6922 = vmatpush3.bf16.xpose.msra.mxu0 %v3916_v41 }
0x10cc   : > { %6935 = vmatprep.subr.bf16.mxu0 %v10298_v43 }
0x10d2   : > { %6924 = vmatmul.mubr.bf16.vlgmr.msra.gmra.mrb[64].mxu0 %v3910_v4 }
0x10d3   : > { %6936 = vmatpush3.bf16.xpose.msra.mxu0 %v3917_v3  ;;  %6939 = vmatprep.mubr.msk.bf16.mxu0 %vm8363_vm0, %v10298_v43  ;;  %v6811_v3 = vunpack.c.l.bf16 %v6814_v40 }
0x10d4   : > { %6937 = vmatprep.subr.bf16.mxu0 %v10298_v43 }
0x10d5   : > { %v6573_v6 = vadd.f32 -1.0, %v6811_v3  ;;  %v3844_v3 = vadd.f32 %v3843_v18, %v9662_v38 }
0x10d7   : > { %v9718_v45 = vmul.f32 1e+09, %v6573_v6  ;;  %v3851_v6 = vpop.f32.mrb[48].mxu1 }
0x10db   : > { %6938 = vmatpush3.bf16.xpose.msra.mxu0 %v10320_v54 }
0x10dc   : > { %6943 = vmatprep.subr.bf16.mxu0 %v10298_v43 }
0x10e2   : > { %6940 = vmatmul.mubr.bf16.vlgmr.msra.gmra.mrb[68].mxu0 %v3911_v46  ;;  %v9720_v46 = vmul.f32 1e+09, %v6574_v11  ;;  %v3853_v11 = vpop.f32.mrb[49].mxu1 }
0x10e3   : > { %6947 = vmatprep.mubr.msk.bf16.mxu0 %vm8363_vm0, %v10298_v43  ;;  %6944 = vmatpush3.bf16.msra.mxu0 %v3925_v42 }
0x10e4   : > { %6945 = vmatprep.subr.bf16.mxu0 %v10298_v43 }
0x1195   : > { %v9711_v61 = vpop.f32.mrb[60].mxu0 }
0x1196   : > { %v6917_v57 = vpop.f32.mrb[61].mxu0 }
0x1197   : > { %v9713_v4 = vpop.f32.mrb[62].mxu0 }
0x1198   : > { %v4048_v10 = vpack.c.bf16 %v9713_v4, %v9711_v61  ;;  %v6918_v20 = vpop.f32.mrb[63].mxu0  ;;  %v7594_v61 = vld [vmem:[#allocation19 + $0xa4] ss:$16 sps:$4 sm:$0xff]  }
0x11a5   : > { %v4083_v32 = vpop.f32.mrb[64].mxu0 }
0x11a6   : > { %v6925_v30 = vpop.f32.mrb[65].mxu0  ;;  %v4084_v48 = vadd.f32 %v4083_v32, %v9630_v2  ;;  %v3848_v2 = vadd.f32 %v3847_v35, %v9662_v38 }
0x11a7   : > { %v4086_v41 = vpop.f32.mrb[66].mxu0 }
0x11a8   : > { %v6926_v62 = vpop.f32.mrb[67].mxu0  ;;  %v4087_v20 = vadd.f32 %v4086_v41, %v9632_v56  ;;  %v4090_v40 = vsel %vm3970_vm3, %v4084_v48, -inf  ;;  %v3926_v32 = vpack.c.bf16 %v3848_v2, %v3844_v3  ;;  %v3852_v56 = vadd.f32 %v3851_v6, %v9658_v27 }
0x11a9   : > { %v3854_v41 = vadd.f32 %v3853_v11, %v9662_v38 }
0x11aa   : > { %v4093_v62 = vsel %vm3970_vm3, %v4087_v20, -inf }
0x11b5   : > { %v4448_v15 = vpop.f32.mrb[68].mxu0 }
0x11b6   : > { %v4449_v7 = vadd.f32 %v4448_v15, %v9718_v45  ;;  %v6941_v49 = vpop.f32.mrb[69].mxu0  ;;  %v3855_v15 = vpop.f32.mrb[50].mxu1 }
0x11b7   : > { %v4451_v19 = vpop.f32.mrb[70].mxu0  ;;  %v3857_v49 = vpop.f32.mrb[51].mxu1 }
0x11b8   : > { %v4452_v37 = vadd.f32 %v4451_v19, %v9720_v46  ;;  %v6942_v13 = vpop.f32.mrb[71].mxu0  ;;  %v4455_v29 = vsel %vm3970_vm3, %v4449_v7, -inf  ;;  %v3858_v19 = vadd.f32 %v3857_v49, %v9662_v38  ;;  %v10321_v38 = vpack.c.bf16 %v9590_v22, %v9584_v50 }
0x11b9   : > { %4456 = vmax.xlane.f32.xlu0 %v4455_v29 }
0x11ba   : > { %v4458_v51 = vsel %vm3970_vm3, %v4452_v37, -inf  ;;  %v3928_v13 = vpack.c.bf16 %v3858_v19, %v3854_v41 }
0x11bb   : > { %4459 = vmax.xlane.f32.xlu1 %v4458_v51 }
0x1246   : > { %v4457_v55 = vpop.xlane.xlu0 %4456 }
0x1247   : > { %v4461_v5 = vsub.f32 %v4449_v7, %v4457_v55  ;;  %v3856_v7 = vadd.f32 %v3855_v15, %v9658_v27  ;;  %v10322_v55 = vpack.c.bf16 %v9600_v14, %v9596_v39 }
0x1248   : > { %v4460_v24 = vpop.xlane.xlu1 %4459 }
0x1249   : > { %v4463_v33 = vmul.f32 1.442695, %v4461_v5  ;;  %v4462_v23 = vsub.f32 %v4452_v37, %v4460_v24  ;;  %v3927_v37 = vpack.c.bf16 %v3856_v7, %v3852_v56 }
0x124b   : > { %7810 = vpow2.f32 %v4463_v33  ;;  %v4465_v31 = vmul.f32 1.442695, %v4462_v23  ;;  %6946 = vmatpush3.bf16.msra.mxu0 %v3927_v37 }
0x124c   : > { %6951 = vmatprep.subr.bf16.mxu0 %v10298_v43 }
0x124d   : > { %7812 = vpow2.f32 %v4465_v31 }
0x1255   : > { %v7811_v53 = vpop.eup %7810 }
0x1256   : > { %v4467_v54 = vsel %vm3970_vm3, %v7811_v53, 0.0 }
0x1257   : > { %v7813_v57 = vpop.eup %7812  ;;  %4468 = vadd.xlane.f32.xlu0 %v4467_v54 }
0x1258   : > { %v4470_v30 = vsel %vm3970_vm3, %v7813_v57, 0.0 }
0x1259   : > { %4471 = vadd.xlane.f32.xlu1 %v4470_v30 }
0x125b   : > { %4091 = vmax.xlane.f32.xlu0 %v4090_v40 }
0x125d   : > { %4094 = vmax.xlane.f32.xlu1 %v4093_v62 }
0x12e4   : > { %v4469_v29 = vpop.xlane.xlu0 %4468 }
0x12e5   : > { %7814 = vrcp.f32 %v4469_v29 }
0x12e6   : > { %v4472_v51 = vpop.xlane.xlu1 %4471 }
0x12e7   : > { %7816 = vrcp.f32 %v4472_v51 }
0x12e8   : > { %v4092_v50 = vpop.xlane.xlu0 %4091 }
0x12e9   : > { %v4096_v39 = vsub.f32 %v4084_v48, %v4092_v50  ;;  %v7525_v50 = vld [vmem:[#allocation17 + $0xb4] ss:$8 sps:$4 sm:$0xff]  }
0x12ea   : > { %v4095_v5 = vpop.xlane.xlu1 %4094 }
0x12eb   : > { %v4097_v63 = vsub.f32 %v4087_v20, %v4095_v5  ;;  %v7523_v5 = vld [vmem:[#allocation17 + $0xb0] ss:$8 sps:$4 sm:$0xff]  }
0x12ed   : > { %v4100_v23 = vmul.f32 1.442695, %v4097_v63  ;;  %v7529_v63 = vld [vmem:[#allocation17 + $0xd0] ss:$8 sps:$4 sm:$0xff]  }
0x12ef   : > { %v7815_v16 = vpop.eup %7814 }
0x12f0   : > { %v4475_v47 = vmul.f32 %v7815_v16, %v7811_v53 }
0x12f1   : > { %v7817_v18 = vpop.eup %7816 }
0x12f2   : > { %v6787_v0 = vpack.c.bf16 %v4475_v47, %v4475_v47  ;;  %v4476_v60 = vmul.f32 %v7817_v18, %v7813_v57 }
0x12f4   : > { %6617 = vst.msk [vmem:[%s9676_s15 + $0x10] sm:$0xf] %vm4001_vm4, %v6787_v0  ;;  %v6788_v27 = vpack.c.bf16 %v4476_v60, %v4476_v60  ;;  %v4477_v42 = vpack.c.bf16 %v4476_v60, %v4475_v47  ;;  %v7514_v0 = vld [vmem:[#allocation17 + $0x80] ss:$8 sps:$4 sm:$0xff]   ;;  %v7516_v60 = vld [vmem:[#allocation17 + $0x84] ss:$8 sps:$4 sm:$0xff]  }
0x12f5   : > { %4248 = vmatprep.subr.bf16.mxu1 %v7516_v60 }
0x12f6   : > { %6618 = vst.msk [vmem:[%s9676_s15 + $0x14] sm:$0xf] %vm4001_vm4, %v6788_v27  ;;  %6948 = vmatmul.mubr.msk.bf16.vlgmr.msra.gmra.mrb[72].mxu0 %vm3970_vm3, %v4477_v42  ;;  %v7519_v27 = vld [vmem:[#allocation17 + $0x94] ss:$8 sps:$4 sm:$0xff]   ;;  %v7517_v42 = vld [vmem:[#allocation17 + $0x90] ss:$8 sps:$4 sm:$0xff]  }
0x12f7   : > { %6952 = vmatpush3.bf16.xpose.msra.mxu0 %v10321_v38  ;;  %6955 = vmatprep.mubr.msk.bf16.mxu0 %vm8363_vm0, %v10298_v43  ;;  %v7522_v38 = vld [vmem:[#allocation17 + $0xa4] ss:$8 sps:$4 sm:$0xff]  }
0x12f8   : > { %6953 = vmatprep.subr.bf16.mxu0 %v10298_v43 }
0x12ff   : > { %6954 = vmatpush3.bf16.xpose.msra.mxu0 %v10322_v55  ;;  %v7520_v55 = vld [vmem:[#allocation17 + $0xa0] ss:$8 sps:$4 sm:$0xff]  }
0x1300   : > { %6959 = vmatprep.subr.bf16.mxu0 %v10298_v43 }
0x1306   : > { %6956 = vmatmul.mubr.bf16.vlgmr.msra.gmra.mrb[76].mxu0 %v3912_v34  ;;  %v4098_v34 = vmul.f32 1.442695, %v4096_v39  ;;  %v7526_v39 = vld [vmem:[#allocation17 + $0xc0] ss:$8 sps:$4 sm:$0xff]  }
0x1307   : > { %6960 = vmatpush3.bf16.msra.mxu0 %v3926_v32  ;;  %6963 = vmatprep.mubr.msk.bf16.mxu0 %vm8363_vm0, %v10298_v43 }
0x1308   : > { %6961 = vmatprep.subr.bf16.mxu0 %v10298_v43  ;;  %7818 = vpow2.f32 %v4098_v34  ;;  %v7534_v34 = vld [vmem:[#allocation17 + $0xe4] ss:$8 sps:$4 sm:$0xff]  }
0x1309   : > { %7820 = vpow2.f32 %v4100_v23  ;;  %v7532_v23 = vld [vmem:[#allocation17 + $0xe0] ss:$8 sps:$4 sm:$0xff]  }
0x130b   : > { %6962 = vmatpush3.bf16.msra.mxu0 %v3928_v13 }
0x130c   : > { %4652 = vmatprep.subr.bf16.mxu0 %v7516_v60  ;;  %v7562_v60 = vld [vmem:[#allocation19] ss:$16 sps:$4 sm:$0xff]  }
0x1312   : > { %v7819_v40 = vpop.eup %7818 }
0x1313   : > { %v7821_v3 = vpop.eup %7820  ;;  %v4102_v20 = vsel %vm3970_vm3, %v7819_v40, 0.0 }
0x1314   : > { %v4105_v35 = vsel %vm3970_vm3, %v7821_v3, 0.0 }
0x13c9   : > { %v9763_v22 = vpop.f32.mrb[72].mxu0 }
0x13ca   : > { %v6949_v24 = vpop.f32.mrb[73].mxu0 }
0x13cb   : > { %v9765_v14 = vpop.f32.mrb[74].mxu0  ;;  %v7528_v24 = vld [vmem:[#allocation17 + $0xc4] ss:$8 sps:$4 sm:$0xff]  }
0x13cc   : > { %v4532_v33 = vpack.c.bf16 %v9765_v14, %v9763_v22  ;;  %v6950_v25 = vpop.f32.mrb[75].mxu0  ;;  %v7603_v22 = vld [vmem:[#allocation19 + $0xcc] ss:$16 sps:$4 sm:$0xff]   ;;  %v7601_v14 = vld [vmem:[#allocation19 + $0xc8] ss:$16 sps:$4 sm:$0xff]  }
0x13cd   : > { %v7531_v25 = vld [vmem:[#allocation17 + $0xd4] ss:$8 sps:$4 sm:$0xff]  }
0x13d9   : > { %v4567_v31 = vpop.f32.mrb[76].mxu0 }
0x13da   : > { %v4568_v43 = vadd.f32 %v4567_v31, %v9718_v45  ;;  %v6957_v53 = vpop.f32.mrb[77].mxu0  ;;  %v7537_v31 = vld [vmem:[#allocation17 + $0xf4] ss:$8 sps:$4 sm:$0xff]  }
0x13db   : > { %v4570_v54 = vpop.f32.mrb[78].mxu0  ;;  %v7540_v53 = vld [vmem:[#allocation17 + $0x4] ss:$8 sps:$4 sm:$0xff]  }
0x13dc   : > { %v4571_v57 = vadd.f32 %v4570_v54, %v9720_v46  ;;  %v6958_v30 = vpop.f32.mrb[79].mxu0  ;;  %v4574_v48 = vsel %vm3970_vm3, %v4568_v43, -inf }
0x13dd   : > { %4575 = vmax.xlane.f32.xlu0 %v4574_v48 }
0x13de   : > { %v4577_v62 = vsel %vm3970_vm3, %v4571_v57, -inf }
0x13df   : > { %4578 = vmax.xlane.f32.xlu1 %v4577_v62 }
0x13e1   : > { %4103 = vadd.xlane.f32.xlu0 %v4102_v20 }
0x13e3   : > { %4106 = vadd.xlane.f32.xlu1 %v4105_v35 }
0x146a   : > { %v4576_v45 = vpop.xlane.xlu0 %4575 }
0x146b   : > { %v4580_v2 = vsub.f32 %v4568_v43, %v4576_v45  ;;  %v7535_v43 = vld [vmem:[#allocation17 + $0xf0] ss:$8 sps:$4 sm:$0xff]  }
0x146c   : > { %v4579_v32 = vpop.xlane.xlu1 %4578 }
0x146d   : > { %v4582_v6 = vmul.f32 1.442695, %v4580_v2  ;;  %v4581_v46 = vsub.f32 %v4571_v57, %v4579_v32 }
0x146e   : > { %v4104_v11 = vpop.xlane.xlu0 %4103 }
0x146f   : > { %7822 = vpow2.f32 %v4582_v6  ;;  %v4584_v15 = vmul.f32 1.442695, %v4581_v46  ;;  %v9789_v6 = vld [vmem:[#allocation17] ss:$8 sps:$4 sm:$0xff]  }
0x1470   : > { %7824 = vrcp.f32 %v4104_v11  ;;  %v4107_v56 = vpop.xlane.xlu1 %4106 }
0x1471   : > { %7826 = vpow2.f32 %v4584_v15  ;;  %v9791_v15 = vld [vmem:[#allocation17 + $0x14] ss:$8 sps:$4 sm:$0xff]  }
0x1472   : > { %7828 = vrcp.f32 %v4107_v56  ;;  %v9794_v56 = vld [vmem:[#allocation17 + $0x10] ss:$8 sps:$4 sm:$0xff]  }
0x1479   : > { %v7823_v41 = vpop.eup %7822 }
0x147a   : > { %v7825_v7 = vpop.eup %7824  ;;  %v4586_v49 = vsel %vm3970_vm3, %v7823_v41, 0.0 }
0x147b   : > { %v7827_v19 = vpop.eup %7826  ;;  %v4110_v37 = vmul.f32 %v7825_v7, %v7819_v40  ;;  %4587 = vadd.xlane.f32.xlu0 %v4586_v49  ;;  %v9801_v7 = vld [vmem:[#allocation17 + $0x20] ss:$8 sps:$4 sm:$0xff]   ;;  %v9804_v49 = vld [vmem:[#allocation17 + $0x34] ss:$8 sps:$4 sm:$0xff]  }
0x147c   : > { %v7829_v13 = vpop.eup %7828  ;;  %v4589_v29 = vsel %vm3970_vm3, %v7827_v19, 0.0 }
0x147d   : > { %v6785_v51 = vpack.c.bf16 %v4110_v37, %v4110_v37  ;;  %v4111_v16 = vmul.f32 %v7829_v13, %v7821_v3  ;;  %4590 = vadd.xlane.f32.xlu1 %v4589_v29  ;;  %v7550_v13 = vld [vmem:[#allocation17 + $0x40] ss:$8 sps:$4 sm:$0xff]   ;;  %v7555_v29 = vld [vmem:[#allocation17 + $0x54] ss:$8 sps:$4 sm:$0xff]  }
0x147f   : > { %6580 = vst.msk [vmem:[%s9676_s15 + $0x8] sm:$0xf] %vm4001_vm4, %v6785_v51  ;;  %v4112_v47 = vpack.c.bf16 %v4111_v16, %v4110_v37  ;;  %v6786_v18 = vpack.c.bf16 %v4111_v16, %v4111_v16  ;;  %v9810_v37 = vld [vmem:[#allocation17 + $0x44] ss:$8 sps:$4 sm:$0xff]   ;;  %v7553_v51 = vld [vmem:[#allocation17 + $0x50] ss:$8 sps:$4 sm:$0xff]  }
0x1480   : > { %v7558_v16 = vld [vmem:[#allocation17 + $0x64] ss:$8 sps:$4 sm:$0xff]  }
0x1481   : > { %6581 = vst.msk [vmem:[%s9676_s15 + $0xc] sm:$0xf] %vm4001_vm4, %v6786_v18  ;;  %6932 = vmatmul.mubr.msk.bf16.vlgmr.msra.gmra.mrb[52].mxu1 %vm3970_vm3, %v4112_v47  ;;  %v7556_v47 = vld [vmem:[#allocation17 + $0x60] ss:$8 sps:$4 sm:$0xff]   ;;  %v7561_v18 = vld [vmem:[#allocation17 + $0x74] ss:$8 sps:$4 sm:$0xff]  }
0x1482   : > { %4280 = vmatprep.mubr.bf16.mxu1 %v10305_v1  ;;  %4249 = vmatpush1.bf16.msra.mxu1 %v7514_v0 }
0x1483   : > { %4250 = vmatprep.subr.bf16.mxu1 %v7519_v27 }
0x1486   : > { %4251 = vmatpush1.bf16.msra.mxu1 %v7517_v42 }
0x1487   : > { %4252 = vmatprep.subr.bf16.mxu1 %v7522_v38 }
0x148a   : > { %4253 = vmatpush1.bf16.msra.mxu1 %v7520_v55 }
0x148b   : > { %4254 = vmatprep.subr.bf16.mxu1 %v7525_v50 }
0x148e   : > { %4255 = vmatpush1.bf16.msra.mxu1 %v7523_v5 }
0x148f   : > { %4256 = vmatprep.subr.bf16.mxu1 %v7528_v24 }
0x1492   : > { %4257 = vmatpush1.bf16.msra.mxu1 %v7526_v39 }
0x1493   : > { %4258 = vmatprep.subr.bf16.mxu1 %v7531_v25 }
0x1496   : > { %4259 = vmatpush1.bf16.msra.mxu1 %v7529_v63 }
0x1497   : > { %4260 = vmatprep.subr.bf16.mxu1 %v7534_v34 }
0x149a   : > { %4261 = vmatpush1.bf16.msra.mxu1 %v7532_v23 }
0x149b   : > { %4262 = vmatprep.subr.bf16.mxu1 %v7537_v31 }
0x149e   : > { %4263 = vmatpush1.bf16.msra.mxu1 %v7535_v43 }
0x149f   : > { %4371 = vmatprep.subr.bf16.mxu1 %v7540_v53 }
0x1508   : > { %v4588_v54 = vpop.xlane.xlu0 %4587 }
0x1509   : > { %7830 = vrcp.f32 %v4588_v54  ;;  %v7606_v54 = vld [vmem:[#allocation19 + $0xe4] ss:$16 sps:$4 sm:$0xff]  }
0x150a   : > { %v4591_v57 = vpop.xlane.xlu1 %4590 }
0x150b   : > { %7832 = vrcp.f32 %v4591_v57  ;;  %v7604_v57 = vld [vmem:[#allocation19 + $0xe0] ss:$16 sps:$4 sm:$0xff]  }
0x1513   : > { %v7831_v30 = vpop.eup %7830 }
0x1514   : > { %v4594_v48 = vmul.f32 %v7831_v30, %v7823_v41  ;;  %v9798_v41 = vld [vmem:[#allocation17 + $0x24] ss:$8 sps:$4 sm:$0xff]   ;;  %v7565_v30 = vld [vmem:[#allocation19 + $0x8] ss:$16 sps:$4 sm:$0xff]  }
0x1515   : > { %v7833_v40 = vpop.eup %7832 }
0x1516   : > { %v6789_v62 = vpack.c.bf16 %v4594_v48, %v4594_v48  ;;  %v4595_v3 = vmul.f32 %v7833_v40, %v7827_v19  ;;  %v9807_v19 = vld [vmem:[#allocation17 + $0x30] ss:$8 sps:$4 sm:$0xff]  }
0x1517   : > { %v7571_v40 = vld [vmem:[#allocation19 + $0x28] ss:$16 sps:$4 sm:$0xff]  }
0x1518   : > { %6622 = vst.msk [vmem:[%s9676_s15 + $0x18] sm:$0xf] %vm4001_vm4, %v6789_v62  ;;  %v6790_v20 = vpack.c.bf16 %v4595_v3, %v4595_v3  ;;  %v4596_v35 = vpack.c.bf16 %v4595_v3, %v4594_v48  ;;  %v7573_v48 = vld [vmem:[#allocation19 + $0x2c] ss:$16 sps:$4 sm:$0xff]   ;;  %v7577_v3 = vld [vmem:[#allocation19 + $0x48] ss:$16 sps:$4 sm:$0xff]  }
0x1519   : > { %v7579_v62 = vld [vmem:[#allocation19 + $0x4c] ss:$16 sps:$4 sm:$0xff]  }
0x151a   : > { %6623 = vst.msk [vmem:[%s9676_s15 + $0x1c] sm:$0xf] %vm4001_vm4, %v6790_v20  ;;  %6964 = vmatmul.mubr.msk.bf16.vlgmr.msra.gmra.mrb[80].mxu0 %vm3970_vm3, %v4596_v35  ;;  %v7585_v20 = vld [vmem:[#allocation19 + $0x6c] ss:$16 sps:$4 sm:$0xff]   ;;  %v7583_v35 = vld [vmem:[#allocation19 + $0x68] ss:$16 sps:$4 sm:$0xff]  }
0x151b   : > { %4653 = vmatpush1.bf16.msra.mxu0 %v7514_v0  ;;  %4684 = vmatprep.mubr.bf16.mxu0 %v10305_v1  ;;  %v7559_v0 = vld [vmem:[#allocation17 + $0x70] ss:$8 sps:$4 sm:$0xff]  }
0x151c   : > { %4654 = vmatprep.subr.bf16.mxu0 %v7519_v27  ;;  %v7564_v27 = vld [vmem:[#allocation19 + $0x4] ss:$16 sps:$4 sm:$0xff]  }
0x151f   : > { %4655 = vmatpush1.bf16.msra.mxu0 %v7517_v42  ;;  %v7570_v42 = vld [vmem:[#allocation19 + $0x24] ss:$16 sps:$4 sm:$0xff]  }
0x1520   : > { %4656 = vmatprep.subr.bf16.mxu0 %v7522_v38  ;;  %v7568_v38 = vld [vmem:[#allocation19 + $0x20] ss:$16 sps:$4 sm:$0xff]  }
0x1523   : > { %4657 = vmatpush1.bf16.msra.mxu0 %v7520_v55  ;;  %v7576_v55 = vld [vmem:[#allocation19 + $0x44] ss:$16 sps:$4 sm:$0xff]  }
0x1524   : > { %4658 = vmatprep.subr.bf16.mxu0 %v7525_v50  ;;  %v7574_v50 = vld [vmem:[#allocation19 + $0x40] ss:$16 sps:$4 sm:$0xff]  }
0x1527   : > { %4659 = vmatpush1.bf16.msra.mxu0 %v7523_v5  ;;  %v7582_v5 = vld [vmem:[#allocation19 + $0x64] ss:$16 sps:$4 sm:$0xff]  }
0x1528   : > { %4660 = vmatprep.subr.bf16.mxu0 %v7528_v24  ;;  %v7580_v24 = vld [vmem:[#allocation19 + $0x60] ss:$16 sps:$4 sm:$0xff]  }
0x152b   : > { %4661 = vmatpush1.bf16.msra.mxu0 %v7526_v39  ;;  %v7588_v39 = vld [vmem:[#allocation19 + $0x84] ss:$16 sps:$4 sm:$0xff]  }
0x152c   : > { %4662 = vmatprep.subr.bf16.mxu0 %v7531_v25  ;;  %v7586_v25 = vld [vmem:[#allocation19 + $0x80] ss:$16 sps:$4 sm:$0xff]  }
0x152f   : > { %4663 = vmatpush1.bf16.msra.mxu0 %v7529_v63 }
0x1530   : > { %4664 = vmatprep.subr.bf16.mxu0 %v7534_v34  ;;  %v7600_v34 = vld [vmem:[#allocation19 + $0xc4] ss:$16 sps:$4 sm:$0xff]  }
0x1533   : > { %4665 = vmatpush1.bf16.msra.mxu0 %v7532_v23 }
0x1534   : > { %4666 = vmatprep.subr.bf16.mxu0 %v7537_v31 }
0x1537   : > { %4667 = vmatpush1.bf16.msra.mxu0 %v7535_v43 }
0x1538   : > { %4695 = vmatprep.subr.bf16.mxu0 %v7540_v53  ;;  %v7598_v53 = vld [vmem:[#allocation19 + $0xc0] ss:$16 sps:$4 sm:$0xff]  }
0x1554   : > { %v4160_v45 = vpop.f32.mrb[52].mxu1 }
0x1555   : > { %v6933_v2 = vpop.f32.mrb[53].mxu1 }
0x1556   : > { %v4163_v32 = vpop.f32.mrb[54].mxu1  ;;  %v7589_v2 = vld [vmem:[#allocation19 + $0x88] ss:$16 sps:$4 sm:$0xff]  }
0x1557   : > { %v4167_v46 = vpack.c.bf16 %v4163_v32, %v4160_v45  ;;  %v6934_v11 = vpop.f32.mrb[55].mxu1  ;;  %v7591_v45 = vld [vmem:[#allocation19 + $0x8c] ss:$16 sps:$4 sm:$0xff]  }
0x1558   : > { %v7597_v32 = vld [vmem:[#allocation19 + $0xac] ss:$16 sps:$4 sm:$0xff]  }
0x1559   : > { %4281 = vmatmul.mubr.bf16.vlgmr.msra.gmra.mrb[56].mxu1 %v4167_v46  ;;  %v7607_v46 = vld [vmem:[#allocation19 + $0xe8] ss:$16 sps:$4 sm:$0xff]   ;;  %v3908_v11 = vld [vmem:[%s10323_s2] sm:$0x3]  ;;  %s8186_s2 = scalar_lea.vmem %s9982_s17, 512 }
0x155a   : > { %4372 = vmatpush1.bf16.msra.mxu1 %v9789_v6  ;;  %4403 = vmatprep.mubr.bf16.mxu1 %v10305_v1  ;;  %p8187_p10 = scmp.ne.s32.totalorder %s9982_s17, %s8186_s2 }
0x155b   : > { %4373 = vmatprep.subr.bf16.mxu1 %v9791_v15 }
0x155c   : > { %p8188_p6 = pnand %p8187_p10, %p10329_p12 }
0x155e   : > { %4374 = vmatpush1.bf16.msra.mxu1 %v9794_v56  ;;  %p8189_p1 = pneg %p8188_p6 }
0x155f   : > { %4375 = vmatprep.subr.bf16.mxu1 %v9798_v41 }
0x1562   : > { %4376 = vmatpush1.bf16.msra.mxu1 %v9801_v7 }
0x1563   : > { %4377 = vmatprep.subr.bf16.mxu1 %v9804_v49 }
0x1566   : > { %4378 = vmatpush1.bf16.msra.mxu1 %v9807_v19 }
0x1567   : > { %4379 = vmatprep.subr.bf16.mxu1 %v9810_v37 }
0x156a   : > { %4380 = vmatpush1.bf16.msra.mxu1 %v7550_v13 }
0x156b   : > { %4381 = vmatprep.subr.bf16.mxu1 %v7555_v29 }
0x156e   : > { %4382 = vmatpush1.bf16.msra.mxu1 %v7553_v51 }
0x156f   : > { %4383 = vmatprep.subr.bf16.mxu1 %v7558_v16 }
0x1572   : > { %4384 = vmatpush1.bf16.msra.mxu1 %v7556_v47 }
0x1573   : > { %4385 = vmatprep.subr.bf16.mxu1 %v7561_v18 }
0x1576   : > { %4386 = vmatpush1.bf16.msra.mxu1 %v7559_v0 }
0x1577   : > { %5291 = vmatprep.subr.bf16.mxu1 %v7564_v27 }
0x1579   : > { %4404 = vmatmul.mubr.bf16.vlgmr.msra.gmra.mrb[56].mxu1 %v4048_v10  ;;  %v7592_v10 = vld [vmem:[#allocation19 + $0xa0] ss:$16 sps:$4 sm:$0xff]  }
0x157a   : > { %5292 = vmatpush1.bf16.msra.mxu1 %v7562_v60 }
0x157b   : > { %5293 = vmatprep.subr.bf16.mxu1 %v7570_v42 }
0x157e   : > { %5294 = vmatpush1.bf16.msra.mxu1 %v7568_v38 }
0x157f   : > { %5295 = vmatprep.subr.bf16.mxu1 %v7576_v55  ;;  %v7612_v55 = vld [vmem:[#allocation19 + $0x104] ss:$16 sps:$4 sm:$0xff]  }
0x1582   : > { %5296 = vmatpush1.bf16.msra.mxu1 %v7574_v50  ;;  %v7615_v50 = vld [vmem:[#allocation19 + $0x10c] ss:$16 sps:$4 sm:$0xff]  }
0x1583   : > { %5297 = vmatprep.subr.bf16.mxu1 %v7582_v5  ;;  %v7610_v5 = vld [vmem:[#allocation19 + $0x100] ss:$16 sps:$4 sm:$0xff]  }
0x1586   : > { %5298 = vmatpush1.bf16.msra.mxu1 %v7580_v24  ;;  %v7613_v24 = vld [vmem:[#allocation19 + $0x108] ss:$16 sps:$4 sm:$0xff]  }
0x1587   : > { %5299 = vmatprep.subr.bf16.mxu1 %v7588_v39  ;;  %v7618_v39 = vld [vmem:[#allocation19 + $0x124] ss:$16 sps:$4 sm:$0xff]  }
0x158a   : > { %5300 = vmatpush1.bf16.msra.mxu1 %v7586_v25  ;;  %v7621_v25 = vld [vmem:[#allocation19 + $0x12c] ss:$16 sps:$4 sm:$0xff]  }
0x158b   : > { %5301 = vmatprep.subr.bf16.mxu1 %v7594_v61  ;;  %v7616_v61 = vld [vmem:[#allocation19 + $0x120] ss:$16 sps:$4 sm:$0xff]  }
0x158e   : > { %5302 = vmatpush1.bf16.msra.mxu1 %v7592_v10  ;;  %v7624_v10 = vld [vmem:[#allocation19 + $0x144] ss:$16 sps:$4 sm:$0xff]  }
0x158f   : > { %5303 = vmatprep.subr.bf16.mxu1 %v7600_v34  ;;  %v7622_v34 = vld [vmem:[#allocation19 + $0x140] ss:$16 sps:$4 sm:$0xff]  }
0x1592   : > { %5304 = vmatpush1.bf16.msra.mxu1 %v7598_v53  ;;  %v7628_v53 = vld [vmem:[#allocation19 + $0x160] ss:$16 sps:$4 sm:$0xff]  }
0x1593   : > { %5305 = vmatprep.subr.bf16.mxu1 %v7606_v54  ;;  %v7631_v54 = vld [vmem:[#allocation19 + $0x168] ss:$16 sps:$4 sm:$0xff]  }
0x1596   : > { %5306 = vmatpush1.bf16.msra.mxu1 %v7604_v57  ;;  %v7636_v57 = vld [vmem:[#allocation19 + $0x184] ss:$16 sps:$4 sm:$0xff]  }
0x1597   : > { %5307 = vmatprep.subr.bf16.mxu1 %v7612_v55 }
0x159a   : > { %5308 = vmatpush1.bf16.msra.mxu1 %v7610_v5 }
0x159b   : > { %5309 = vmatprep.subr.bf16.mxu1 %v7618_v39 }
0x159e   : > { %5310 = vmatpush1.bf16.msra.mxu1 %v7616_v61 }
0x159f   : > { %5311 = vmatprep.subr.bf16.mxu1 %v7624_v10 }
0x15a2   : > { %5312 = vmatpush1.bf16.msra.mxu1 %v7622_v34 }
0x15ed   : > { %v4644_v4 = vpop.f32.mrb[80].mxu0 }
0x15ee   : > { %v6965_v63 = vpop.f32.mrb[81].mxu0 }
0x15ef   : > { %v4647_v23 = vpop.f32.mrb[82].mxu0  ;;  %v7627_v63 = vld [vmem:[#allocation19 + $0x14c] ss:$16 sps:$4 sm:$0xff]  }
0x15f0   : > { %v4651_v31 = vpack.c.bf16 %v4647_v23, %v4644_v4  ;;  %v6966_v43 = vpop.f32.mrb[83].mxu0  ;;  %v7619_v4 = vld [vmem:[#allocation19 + $0x128] ss:$16 sps:$4 sm:$0xff]  }
0x15f1   : > { %v7625_v23 = vld [vmem:[#allocation19 + $0x148] ss:$16 sps:$4 sm:$0xff]   ;;  %v7633_v43 = vld [vmem:[#allocation19 + $0x16c] ss:$16 sps:$4 sm:$0xff]  }
0x15f2   : > { %4685 = vmatmul.mubr.bf16.vlgmr.msra.gmra.mrb[84].mxu0 %v4651_v31  ;;  %v7630_v31 = vld [vmem:[#allocation19 + $0x164] ss:$16 sps:$4 sm:$0xff]  }
0x15f3   : > { %4696 = vmatpush1.bf16.msra.mxu0 %v9789_v6  ;;  %4727 = vmatprep.mubr.bf16.mxu0 %v10305_v1  ;;  %v7567_v1 = vld [vmem:[#allocation19 + $0xc] ss:$16 sps:$4 sm:$0xff]   ;;  %v7595_v6 = vld [vmem:[#allocation19 + $0xa8] ss:$16 sps:$4 sm:$0xff]  }
0x15f4   : > { %4697 = vmatprep.subr.bf16.mxu0 %v9791_v15  ;;  %v9833_v15 = vrot.slane %v3908_v11, %v9028_v12  ;;  %5313 = vmatprep.subr.bf16.mxu1 %v7630_v31  ;;  %v4765_v31 = vld [vmem:[%s10324_s0] sm:$0x3]  ;;  %s8192_s0 = scalar_lea.vmem %s8191_s25, 1024 }
0x15f5   : > { %5314 = vmatpush1.bf16.msra.mxu1 %v7628_v53  ;;  %p8194_p8 = scmp.lt.s32.totalorder %s8192_s0, %s8186_s2 }
0x15f6   : > { %5315 = vmatprep.subr.bf16.mxu1 %v7636_v57  ;;  %v9903_v57 = vrot.slane %v4765_v31, %v9028_v12 }
0x15f7   : > { %4698 = vmatpush1.bf16.msra.mxu0 %v9794_v56  ;;  %v9836_v56 = vrot.slane %v3908_v11, %v9025_v8  ;;  %p8195_p4 = por %p8194_p8, %p8193_p11 }
0x15f8   : > { %4699 = vmatprep.subr.bf16.mxu0 %v9798_v41 }
0x15f9   : > { %p8196_p7 = pnand %p8195_p4, %p8189_p1 }
0x15fb   : > { %4700 = vmatpush1.bf16.msra.mxu0 %v9801_v7 }
0x15fc   : > { %4701 = vmatprep.subr.bf16.mxu0 %v9804_v49 }
0x15ff   : > { %4702 = vmatpush1.bf16.msra.mxu0 %v9807_v19 }
0x1600   : > { %4703 = vmatprep.subr.bf16.mxu0 %v9810_v37 }
0x1603   : > { %4704 = vmatpush1.bf16.msra.mxu0 %v7550_v13 }
0x1604   : > { %4705 = vmatprep.subr.bf16.mxu0 %v7555_v29 }
0x1607   : > { %4706 = vmatpush1.bf16.msra.mxu0 %v7553_v51 }
0x1608   : > { %4707 = vmatprep.subr.bf16.mxu0 %v7558_v16 }
0x160b   : > { %4708 = vmatpush1.bf16.msra.mxu0 %v7556_v47 }
0x160c   : > { %4709 = vmatprep.subr.bf16.mxu0 %v7561_v18 }
0x160f   : > { %4710 = vmatpush1.bf16.msra.mxu0 %v7559_v0 }
0x1610   : > { %5344 = vmatprep.subr.bf16.mxu0 %v7567_v1  ;;  %v7634_v1 = vld [vmem:[#allocation19 + $0x180] ss:$16 sps:$4 sm:$0xff]  }
0x1611   : > { %5316 = vmatpush1.bf16.msra.mxu1 %v7634_v1  ;;  %v9906_v1 = vrot.slane %v4765_v31, %v9025_v8  ;;  %v7699_v31 = vld [vmem:[#allocation20 + $0xd4] ss:$8 sps:$4 sm:$0xff]  }
0x1612   : > { %4728 = vmatmul.mubr.bf16.vlgmr.msra.gmra.mrb[84].mxu0 %v4532_v33  ;;  %v7609_v33 = vld [vmem:[#allocation19 + $0xec] ss:$16 sps:$4 sm:$0xff]  }
0x1613   : > { %5345 = vmatpush1.bf16.msra.mxu0 %v7565_v30  ;;  %v7637_v30 = vld [vmem:[#allocation19 + $0x188] ss:$16 sps:$4 sm:$0xff]  }
0x1614   : > { %5346 = vmatprep.subr.bf16.mxu0 %v7573_v48  ;;  %v7639_v48 = vld [vmem:[#allocation19 + $0x18c] ss:$16 sps:$4 sm:$0xff]  }
0x1617   : > { %5347 = vmatpush1.bf16.msra.mxu0 %v7571_v40  ;;  %v7642_v40 = vld [vmem:[#allocation19 + $0x1a4] ss:$16 sps:$4 sm:$0xff]  }
0x1618   : > { %5348 = vmatprep.subr.bf16.mxu0 %v7579_v62  ;;  %v7645_v62 = vld [vmem:[#allocation19 + $0x1ac] ss:$16 sps:$4 sm:$0xff]   ;;  %5317 = vmatprep.subr.bf16.mxu1 %v7642_v40 }
0x161b   : > { %5349 = vmatpush1.bf16.msra.mxu0 %v7577_v3  ;;  %v7640_v3 = vld [vmem:[#allocation19 + $0x1a0] ss:$16 sps:$4 sm:$0xff]  }
0x161c   : > { %5350 = vmatprep.subr.bf16.mxu0 %v7585_v20  ;;  %v7643_v20 = vld [vmem:[#allocation19 + $0x1a8] ss:$16 sps:$4 sm:$0xff]   ;;  %5318 = vmatpush1.bf16.msra.mxu1 %v7640_v3 }
0x161f   : > { %5351 = vmatpush1.bf16.msra.mxu0 %v7583_v35  ;;  %v7648_v35 = vld [vmem:[#allocation19 + $0x1c4] ss:$16 sps:$4 sm:$0xff]  }
0x1620   : > { %5352 = vmatprep.subr.bf16.mxu0 %v7591_v45  ;;  %v7651_v45 = vld [vmem:[#allocation19 + $0x1cc] ss:$16 sps:$4 sm:$0xff]   ;;  %5319 = vmatprep.subr.bf16.mxu1 %v7648_v35 }
0x1623   : > { %5353 = vmatpush1.bf16.msra.mxu0 %v7589_v2  ;;  %v7646_v2 = vld [vmem:[#allocation19 + $0x1c0] ss:$16 sps:$4 sm:$0xff]  }
0x1624   : > { %5354 = vmatprep.subr.bf16.mxu0 %v7597_v32  ;;  %v7649_v32 = vld [vmem:[#allocation19 + $0x1c8] ss:$16 sps:$4 sm:$0xff]   ;;  %5320 = vmatpush1.bf16.msra.mxu1 %v7646_v2 }
0x1627   : > { %5355 = vmatpush1.bf16.msra.mxu0 %v7595_v6  ;;  %v7654_v6 = vld [vmem:[#allocation19 + $0x1e4] ss:$16 sps:$4 sm:$0xff]  }
0x1628   : > { %5356 = vmatprep.subr.bf16.mxu0 %v7603_v22  ;;  %v7657_v22 = vld [vmem:[#allocation19 + $0x1ec] ss:$16 sps:$4 sm:$0xff]   ;;  %5321 = vmatprep.subr.bf16.mxu1 %v7654_v6 }
0x162b   : > { %5357 = vmatpush1.bf16.msra.mxu0 %v7601_v14  ;;  %v7652_v14 = vld [vmem:[#allocation19 + $0x1e0] ss:$16 sps:$4 sm:$0xff]  }
0x162c   : > { %5358 = vmatprep.subr.bf16.mxu0 %v7609_v33  ;;  %v7655_v33 = vld [vmem:[#allocation19 + $0x1e8] ss:$16 sps:$4 sm:$0xff]   ;;  %5322 = vmatpush1.bf16.msra.mxu1 %v7652_v14 }
0x162f   : > { %5359 = vmatpush1.bf16.msra.mxu0 %v7607_v46 }
0x1630   : > { %5360 = vmatprep.subr.bf16.mxu0 %v7615_v50 }
0x1633   : > { %5361 = vmatpush1.bf16.msra.mxu0 %v7613_v24 }
0x1634   : > { %5362 = vmatprep.subr.bf16.mxu0 %v7621_v25 }
0x1637   : > { %5363 = vmatpush1.bf16.msra.mxu0 %v7619_v4 }
0x1638   : > { %5364 = vmatprep.subr.bf16.mxu0 %v7627_v63 }
0x163b   : > { %5365 = vmatpush1.bf16.msra.mxu0 %v7625_v23 }
0x163c   : > { %5366 = vmatprep.subr.bf16.mxu0 %v7633_v43 }
0x163f   : > { %5367 = vmatpush1.bf16.msra.mxu0 %v7631_v54  ;;  %v4766_v54 = vld [vmem:[%s10325_s29] sm:$0x3] }
0x1640   : > { %5368 = vmatprep.subr.bf16.mxu0 %v7639_v48  ;;  %v9911_v35 = vrot.slane %v4766_v54, %v9028_v12 }
0x1643   : > { %5369 = vmatpush1.bf16.msra.mxu0 %v7637_v30 }
0x1644   : > { %5370 = vmatprep.subr.bf16.mxu0 %v7645_v62 }
0x1647   : > { %5371 = vmatpush1.bf16.msra.mxu0 %v7643_v20 }
0x1648   : > { %5372 = vmatprep.subr.bf16.mxu0 %v7651_v45  ;;  %v9914_v45 = vrot.slane %v4766_v54, %v9025_v8  ;;  %v7700_v54 = vld [vmem:[#allocation20 + $0xe0] ss:$8 sps:$4 sm:$0xff]  }
0x164b   : > { %5373 = vmatpush1.bf16.msra.mxu0 %v7649_v32 }
0x164c   : > { %v4405_v41 = vpop.f32.mrb[56].mxu1  ;;  %5374 = vmatprep.subr.bf16.mxu0 %v7657_v22 }
0x164d   : > { %v4749_v7 = vadd.f32 %v9833_v15, %v4405_v41  ;;  %v4407_v49 = vpop.f32.mrb[57].mxu1 }
0x164e   : > { %v4750_v19 = vadd.f32 %v9836_v56, %v4407_v49  ;;  %v4409_v37 = vpop.f32.mrb[58].mxu1 }
0x164f   : > { %v9841_v13 = vadd.f32 %v4749_v7, %v9364_v21  ;;  %v4751_v29 = vadd.f32 %v9833_v15, %v4409_v37  ;;  %v4411_v51 = vpop.f32.mrb[59].mxu1  ;;  %5375 = vmatpush1.bf16.msra.mxu0 %v7655_v33 }
0x1650   : > { %v9845_v16 = vadd.f32 %v4750_v19, %v9367_v44  ;;  %v4752_v47 = vadd.f32 %v9836_v56, %v4411_v51 }
0x1651   : > { %v9849_v18 = vadd.f32 %v4751_v29, %v9374_v52  ;;  %v4783_v21 = vmul.f32 %v9841_v13, %v9841_v13 }
0x1652   : > { %v9852_v0 = vadd.f32 %v4752_v47, %v9377_v9  ;;  %v4767_v60 = vadd.f32 %v9845_v16, %v9841_v13  ;;  %v4784_v27 = vmul.f32 %v9845_v16, %v9845_v16 }
0x1653   : > { %v4785_v52 = vmul.f32 %v9849_v18, %v9849_v18 }
0x1654   : > { %4768 = vadd.xlane.f32.xlu0 %v4767_v60  ;;  %v4770_v44 = vadd.f32 %v9852_v0, %v9849_v18  ;;  %v4786_v9 = vmul.f32 %v9852_v0, %v9852_v0  ;;  %v4791_v42 = vadd.f32 %v4784_v27, %v4783_v21 }
0x1656   : > { %4771 = vadd.xlane.f32.xlu1 %v4770_v44  ;;  %v4794_v38 = vadd.f32 %v4786_v9, %v4785_v52 }
0x1658   : > { %4792 = vadd.xlane.f32.xlu0 %v4791_v42 }
0x165a   : > { %4795 = vadd.xlane.f32.xlu1 %v4794_v38 }
0x16e1   : > { %v4769_v46 = vpop.xlane.xlu0 %4768 }
0x16e2   : > { %v4779_v11 = vmul.f32 0.00390625, %v4769_v46 }
0x16e3   : > { %v4772_v41 = vpop.xlane.xlu1 %4771 }
0x16e4   : > { %v4780_v7 = vmul.f32 0.00390625, %v4772_v41  ;;  %v4807_v37 = vmul.f32 %v4779_v11, %v4779_v11  ;;  %v4819_v43 = vsub.f32 %v9841_v13, %v4779_v11  ;;  %v4820_v53 = vsub.f32 %v9845_v16, %v4779_v11 }
0x16e5   : > { %v4793_v49 = vpop.xlane.xlu0 %4792  ;;  %v4729_v19 = vpop.f32.mrb[84].mxu0 }
0x16e6   : > { %v4803_v29 = vmul.f32 0.00390625, %v4793_v49  ;;  %v4753_v51 = vadd.f32 %v9833_v15, %v4729_v19  ;;  %v4731_v47 = vpop.f32.mrb[85].mxu0  ;;  %v4808_v60 = vmul.f32 %v4780_v7, %v4780_v7  ;;  %v4821_v48 = vsub.f32 %v9849_v18, %v4780_v7 }
0x16e7   : > { %v4796_v21 = vpop.xlane.xlu1 %4795  ;;  %v4754_v27 = vadd.f32 %v9836_v56, %v4731_v47  ;;  %v4733_v44 = vpop.f32.mrb[86].mxu0  ;;  %v4822_v40 = vsub.f32 %v9852_v0, %v4780_v7  ;;  %v7661_v47 = vld [vmem:[#allocation20 + $0x10] ss:$8 sps:$4 sm:$0xff]  }
0x16e8   : > { %v4811_v52 = vsub.f32 %v4803_v29, %v4807_v37  ;;  %v9869_v9 = vadd.f32 %v4753_v51, %v9529_v36  ;;  %v4804_v42 = vmul.f32 0.00390625, %v4796_v21  ;;  %v4755_v38 = vadd.f32 %v9833_v15, %v4733_v44  ;;  %v4735_v55 = vpop.f32.mrb[87].mxu0  ;;  %v7658_v37 = vld [vmem:[#allocation20] ss:$8 sps:$4 sm:$0xff]   ;;  %v7660_v29 = vld [vmem:[#allocation20 + $0x4] ss:$8 sps:$4 sm:$0xff]  }
0x16e9   : > { %v9873_v50 = vadd.f32 %v4754_v27, %v9533_v17  ;;  %v4756_v5 = vadd.f32 %v9836_v56, %v4735_v55  ;;  %v7663_v51 = vld [vmem:[#allocation20 + $0x14] ss:$8 sps:$4 sm:$0xff]   ;;  %5817 = vmatprep.subr.bf16.mxu1 %v7660_v29  ;;  %v7664_v21 = vld [vmem:[#allocation20 + $0x20] ss:$8 sps:$4 sm:$0xff]   ;;  %v7667_v44 = vld [vmem:[#allocation20 + $0x30] ss:$8 sps:$4 sm:$0xff]  }
0x16ea   : > { %v4815_v24 = vmax.f32 %v4811_v52, 0.0  ;;  %v4812_v39 = vsub.f32 %v4804_v42, %v4808_v60  ;;  %v9877_v25 = vadd.f32 %v4755_v38, %v9537_v28  ;;  %v4787_v15 = vmul.f32 %v9869_v9, %v9869_v9  ;;  %v7666_v60 = vld [vmem:[#allocation20 + $0x24] ss:$8 sps:$4 sm:$0xff]   ;;  %v7669_v27 = vld [vmem:[#allocation20 + $0x34] ss:$8 sps:$4 sm:$0xff]  }
0x16eb   : > { %v9880_v61 = vadd.f32 %v4756_v5, %v9540_v26  ;;  %v4773_v36 = vadd.f32 %v9873_v50, %v9869_v9  ;;  %v4788_v17 = vmul.f32 %v9873_v50, %v9873_v50  ;;  %v7672_v52 = vld [vmem:[#allocation20 + $0x44] ss:$8 sps:$4 sm:$0xff]   ;;  %v7670_v42 = vld [vmem:[#allocation20 + $0x40] ss:$8 sps:$4 sm:$0xff]   ;;  %v7675_v38 = vld [vmem:[#allocation20 + $0x54] ss:$8 sps:$4 sm:$0xff]  }
0x16ec   : > { %v4827_v4 = vadd.f32 1e-12, %v4815_v24  ;;  %v4816_v10 = vmax.f32 %v4812_v39, 0.0  ;;  %v4789_v28 = vmul.f32 %v9877_v25, %v9877_v25  ;;  %v7673_v55 = vld [vmem:[#allocation20 + $0x50] ss:$8 sps:$4 sm:$0xff]  }
0x16ed   : > { %4774 = vadd.xlane.f32.xlu0 %v4773_v36  ;;  %v4776_v56 = vadd.f32 %v9880_v61, %v9877_v25  ;;  %v4790_v26 = vmul.f32 %v9880_v61, %v9880_v61  ;;  %v4797_v34 = vadd.f32 %v4788_v17, %v4787_v15  ;;  %v7678_v5 = vld [vmem:[#allocation20 + $0x64] ss:$8 sps:$4 sm:$0xff]   ;;  %v7676_v24 = vld [vmem:[#allocation20 + $0x60] ss:$8 sps:$4 sm:$0xff]   ;;  %v7681_v39 = vld [vmem:[#allocation20 + $0x74] ss:$8 sps:$4 sm:$0xff]  }
0x16ee   : > { %7834 = vrsqrt.f32 %v4827_v4  ;;  %v4828_v63 = vadd.f32 1e-12, %v4816_v10  ;;  %v7679_v36 = vld [vmem:[#allocation20 + $0x70] ss:$8 sps:$4 sm:$0xff]   ;;  %v7684_v15 = vld [vmem:[#allocation20 + $0x84] ss:$8 sps:$4 sm:$0xff]  }
0x16ef   : > { %4777 = vadd.xlane.f32.xlu1 %v4776_v56  ;;  %v4800_v23 = vadd.f32 %v4790_v26, %v4789_v28  ;;  %v7682_v17 = vld [vmem:[#allocation20 + $0x80] ss:$8 sps:$4 sm:$0xff]   ;;  %v7687_v4 = vld [vmem:[#allocation20 + $0x94] ss:$8 sps:$4 sm:$0xff]   ;;  %v7685_v10 = vld [vmem:[#allocation20 + $0x90] ss:$8 sps:$4 sm:$0xff]  }
0x16f0   : > { %7836 = vrsqrt.f32 %v4828_v63  ;;  %v7690_v56 = vld [vmem:[#allocation20 + $0xa4] ss:$8 sps:$4 sm:$0xff]   ;;  %v7688_v28 = vld [vmem:[#allocation20 + $0xa0] ss:$8 sps:$4 sm:$0xff]   ;;  %v7693_v26 = vld [vmem:[#allocation20 + $0xb4] ss:$8 sps:$4 sm:$0xff]  }
0x16f1   : > { %4798 = vadd.xlane.f32.xlu0 %v4797_v34  ;;  %v7691_v63 = vld [vmem:[#allocation20 + $0xb0] ss:$8 sps:$4 sm:$0xff]   ;;  %v7696_v34 = vld [vmem:[#allocation20 + $0xc4] ss:$8 sps:$4 sm:$0xff]  }
0x16f3   : > { %4801 = vadd.xlane.f32.xlu1 %v4800_v23  ;;  %v7694_v23 = vld [vmem:[#allocation20 + $0xc0] ss:$8 sps:$4 sm:$0xff]  }
0x16f8   : > { %v7835_v30 = vpop.eup %7834 }
0x16f9   : > { %v4836_v62 = vmul.f32 %v7835_v30, %v4820_v53  ;;  %v4835_v3 = vmul.f32 %v7835_v30, %v4819_v43  ;;  %v7697_v43 = vld [vmem:[#allocation20 + $0xd0] ss:$8 sps:$4 sm:$0xff]   ;;  %v7702_v53 = vld [vmem:[#allocation20 + $0xe4] ss:$8 sps:$4 sm:$0xff]   ;;  %v7705_v30 = vld [vmem:[#allocation20 + $0xf4] ss:$8 sps:$4 sm:$0xff]  }
0x16fa   : > { %v7837_v20 = vpop.eup %7836 }
0x16fb   : > { %v4838_v2 = vmul.f32 %v7837_v20, %v4822_v40  ;;  %v4855_v32 = vmul.f32 %v9906_v1, %v4836_v62  ;;  %v4837_v6 = vmul.f32 %v7837_v20, %v4821_v48  ;;  %v4854_v22 = vmul.f32 %v9903_v57, %v4835_v3  ;;  %v7703_v48 = vld [vmem:[#allocation20 + $0xf0] ss:$8 sps:$4 sm:$0xff]   ;;  %v7708_v40 = vld [vmem:[#allocation20 + $0x104] ss:$8 sps:$4 sm:$0xff]  }
0x16fd   : > { %v4857_v14 = vmul.f32 %v9906_v1, %v4838_v2  ;;  %v4856_v33 = vmul.f32 %v9903_v57, %v4837_v6  ;;  %v4874_v46 = vadd.f32 %v9914_v45, %v4855_v32  ;;  %v4873_v41 = vadd.f32 %v9911_v35, %v4854_v22 }
0x16ff   : > { %v4876_v11 = vadd.f32 %v9914_v45, %v4857_v14  ;;  %v4875_v7 = vadd.f32 %v9911_v35, %v4856_v33 }
0x1701   : > { %v4882_v49 = vpack.c.bf16 %v4876_v11, %v4874_v46  ;;  %v4881_v19 = vpack.c.bf16 %v4875_v7, %v4873_v41 }
0x1703   : > { %5323 = vmatprep.mubr.bf16.mxu1 %v4882_v49  ;;  %5376 = vmatprep.mubr.bf16.mxu0 %v4882_v49 }
0x1704   : > { %5324 = vmatmul.mubr.bf16.vlgmr.msra.gmra.mrb[60].mxu1 %v4881_v19  ;;  %5377 = vmatmul.mubr.bf16.vlgmr.msra.gmra.mrb[88].mxu0 %v4881_v19 }
0x1705   : > { %5818 = vmatpush1.bf16.msra.mxu1 %v7658_v37 }
0x1706   : > { %5819 = vmatprep.subr.bf16.mxu1 %v7663_v51 }
0x1709   : > { %5820 = vmatpush1.bf16.msra.mxu1 %v7661_v47 }
0x170a   : > { %5821 = vmatprep.subr.bf16.mxu1 %v7666_v60 }
0x170d   : > { %5822 = vmatpush1.bf16.msra.mxu1 %v7664_v21 }
0x170e   : > { %5823 = vmatprep.subr.bf16.mxu1 %v7669_v27 }
0x1711   : > { %5824 = vmatpush1.bf16.msra.mxu1 %v7667_v44 }
0x1712   : > { %5825 = vmatprep.subr.bf16.mxu1 %v7672_v52 }
0x1715   : > { %5826 = vmatpush1.bf16.msra.mxu1 %v7670_v42 }
0x1716   : > { %5827 = vmatprep.subr.bf16.mxu1 %v7675_v38 }
0x1719   : > { %5828 = vmatpush1.bf16.msra.mxu1 %v7673_v55 }
0x171a   : > { %5829 = vmatprep.subr.bf16.mxu1 %v7678_v5 }
0x171d   : > { %5830 = vmatpush1.bf16.msra.mxu1 %v7676_v24 }
0x171e   : > { %5831 = vmatprep.subr.bf16.mxu1 %v7681_v39 }
0x1721   : > { %5832 = vmatpush1.bf16.msra.mxu1 %v7679_v36 }
0x1722   : > { %5833 = vmatprep.subr.bf16.mxu1 %v7684_v15 }
0x1725   : > { %5834 = vmatpush1.bf16.msra.mxu1 %v7682_v17 }
0x1726   : > { %5835 = vmatprep.subr.bf16.mxu1 %v7687_v4 }
0x1729   : > { %5836 = vmatpush1.bf16.msra.mxu1 %v7685_v10 }
0x172a   : > { %5837 = vmatprep.subr.bf16.mxu1 %v7690_v56 }
0x172d   : > { %5838 = vmatpush1.bf16.msra.mxu1 %v7688_v28 }
0x172e   : > { %5839 = vmatprep.subr.bf16.mxu1 %v7693_v26 }
0x1731   : > { %5840 = vmatpush1.bf16.msra.mxu1 %v7691_v63 }
0x1732   : > { %5841 = vmatprep.subr.bf16.mxu1 %v7696_v34 }
0x1735   : > { %5842 = vmatpush1.bf16.msra.mxu1 %v7694_v23 }
0x1736   : > { %5843 = vmatprep.subr.bf16.mxu1 %v7699_v31 }
0x1739   : > { %5844 = vmatpush1.bf16.msra.mxu1 %v7697_v43 }
0x173a   : > { %5845 = vmatprep.subr.bf16.mxu1 %v7702_v53 }
0x173d   : > { %5846 = vmatpush1.bf16.msra.mxu1 %v7700_v54 }
0x173e   : > { %5847 = vmatprep.subr.bf16.mxu1 %v7705_v30 }
0x1741   : > { %5848 = vmatpush1.bf16.msra.mxu1 %v7703_v48 }
0x1742   : > { %5870 = vmatprep.subr.bf16.mxu1 %v7708_v40 }
0x177a   : > { %v4775_v62 = vpop.xlane.xlu0 %4774 }
0x177b   : > { %v4781_v3 = vmul.f32 0.00390625, %v4775_v62 }
0x177c   : > { %v4778_v20 = vpop.xlane.xlu1 %4777 }
0x177d   : > { %v4782_v2 = vmul.f32 0.00390625, %v4778_v20  ;;  %v4809_v6 = vmul.f32 %v4781_v3, %v4781_v3  ;;  %v4823_v29 = vsub.f32 %v9869_v9, %v4781_v3  ;;  %v4824_v51 = vsub.f32 %v9873_v50, %v4781_v3 }
0x177e   : > { %v4799_v32 = vpop.xlane.xlu0 %4798 }
0x177f   : > { %v4805_v22 = vmul.f32 0.00390625, %v4799_v32  ;;  %v4810_v46 = vmul.f32 %v4782_v2, %v4782_v2  ;;  %v4825_v60 = vsub.f32 %v9877_v25, %v4782_v2  ;;  %v4826_v21 = vsub.f32 %v9880_v61, %v4782_v2 }
0x1780   : > { %v4802_v14 = vpop.xlane.xlu1 %4801 }
0x1781   : > { %v4813_v33 = vsub.f32 %v4805_v22, %v4809_v6  ;;  %v4806_v11 = vmul.f32 0.00390625, %v4802_v14 }
0x1783   : > { %v4817_v41 = vmax.f32 %v4813_v33, 0.0  ;;  %v4814_v7 = vsub.f32 %v4806_v11, %v4810_v46 }
0x1785   : > { %v4829_v49 = vadd.f32 1e-12, %v4817_v41  ;;  %v4818_v19 = vmax.f32 %v4814_v7, 0.0 }
0x1787   : > { %7838 = vrsqrt.f32 %v4829_v49  ;;  %v4830_v37 = vadd.f32 1e-12, %v4818_v19 }
0x1789   : > { %7840 = vrsqrt.f32 %v4830_v37  ;;  %v7706_v37 = vld [vmem:[#allocation20 + $0x100] ss:$8 sps:$4 sm:$0xff]  }
0x1791   : > { %v7839_v47 = vpop.eup %7838 }
0x1792   : > { %v4840_v27 = vmul.f32 %v7839_v47, %v4824_v51  ;;  %v4839_v44 = vmul.f32 %v7839_v47, %v4823_v29  ;;  %v7711_v29 = vld [vmem:[#allocation20 + $0x114] ss:$8 sps:$4 sm:$0xff]   ;;  %v7709_v51 = vld [vmem:[#allocation20 + $0x110] ss:$8 sps:$4 sm:$0xff]   ;;  %v7714_v47 = vld [vmem:[#allocation20 + $0x124] ss:$8 sps:$4 sm:$0xff]  }
0x1793   : > { %v7841_v52 = vpop.eup %7840 }
0x1794   : > { %v4842_v42 = vmul.f32 %v7841_v52, %v4826_v21  ;;  %v4859_v38 = vmul.f32 %v9906_v1, %v4840_v27  ;;  %v4841_v55 = vmul.f32 %v7841_v52, %v4825_v60  ;;  %v4858_v5 = vmul.f32 %v9903_v57, %v4839_v44  ;;  %v7712_v60 = vld [vmem:[#allocation20 + $0x120] ss:$8 sps:$4 sm:$0xff]   ;;  %v7717_v21 = vld [vmem:[#allocation20 + $0x134] ss:$8 sps:$4 sm:$0xff]   ;;  %v7715_v27 = vld [vmem:[#allocation20 + $0x130] ss:$8 sps:$4 sm:$0xff]  }
0x1795   : > { %v7720_v44 = vld [vmem:[#allocation20 + $0x144] ss:$8 sps:$4 sm:$0xff]   ;;  %v7718_v52 = vld [vmem:[#allocation20 + $0x140] ss:$8 sps:$4 sm:$0xff]  }
0x1796   : > { %v4861_v24 = vmul.f32 %v9906_v1, %v4842_v42  ;;  %v4860_v39 = vmul.f32 %v9903_v57, %v4841_v55  ;;  %v4878_v36 = vadd.f32 %v9914_v45, %v4859_v38  ;;  %v4877_v17 = vadd.f32 %v9911_v35, %v4858_v5  ;;  %v4949_v1 = vld [vmem:[%s10326_s4] sm:$0xf]  ;;  %v7721_v38 = vld [vmem:[#allocation20 + $0x150] ss:$8 sps:$4 sm:$0xff]   ;;  %v7726_v55 = vld [vmem:[#allocation20 + $0x164] ss:$8 sps:$4 sm:$0xff]  }
0x1797   : > { %v9940_v57 = vrot.slane %v4949_v1, %v9028_v12  ;;  %v9943_v28 = vrot.slane %v4949_v1, %v10318_v59  ;;  %v7723_v42 = vld [vmem:[#allocation20 + $0x154] ss:$8 sps:$4 sm:$0xff]   ;;  %v7724_v5 = vld [vmem:[#allocation20 + $0x160] ss:$8 sps:$4 sm:$0xff]  }
0x1798   : > { %v4880_v15 = vadd.f32 %v9914_v45, %v4861_v24  ;;  %v4879_v4 = vadd.f32 %v9911_v35, %v4860_v39  ;;  %v9946_v45 = vrot.slane %v4949_v1, %v9025_v8  ;;  %v9949_v35 = vrot.slane %v4949_v1, %v10319_v58  ;;  %v7729_v24 = vld [vmem:[#allocation20 + $0x174] ss:$8 sps:$4 sm:$0xff]   ;;  %v7727_v39 = vld [vmem:[#allocation20 + $0x170] ss:$8 sps:$4 sm:$0xff]  }
0x1799   : > { %v7741_v1 = vld [vmem:[#allocation20 + $0x1b4] ss:$8 sps:$4 sm:$0xff]  }
0x179a   : > { %v4884_v10 = vpack.c.bf16 %v4880_v15, %v4878_v36  ;;  %v4883_v56 = vpack.c.bf16 %v4879_v4, %v4877_v17  ;;  %v7732_v36 = vld [vmem:[#allocation20 + $0x184] ss:$8 sps:$4 sm:$0xff]   ;;  %v7730_v15 = vld [vmem:[#allocation20 + $0x180] ss:$8 sps:$4 sm:$0xff]   ;;  %v7735_v17 = vld [vmem:[#allocation20 + $0x194] ss:$8 sps:$4 sm:$0xff]  }
0x179b   : > { %v7733_v4 = vld [vmem:[#allocation20 + $0x190] ss:$8 sps:$4 sm:$0xff]  }
0x179c   : > { %5333 = vmatprep.mubr.bf16.mxu1 %v4884_v10  ;;  %5386 = vmatprep.mubr.bf16.mxu0 %v4884_v10  ;;  %v7738_v10 = vld [vmem:[#allocation20 + $0x1a4] ss:$8 sps:$4 sm:$0xff]  }
0x179d   : > { %5334 = vmatmul.mubr.bf16.gmra.mrb[64].mxu1 %v4883_v56  ;;  %5387 = vmatmul.mubr.bf16.gmra.mrb[92].mxu0 %v4883_v56  ;;  %v7736_v56 = vld [vmem:[#allocation20 + $0x1a0] ss:$8 sps:$4 sm:$0xff]  }
0x17d7   : > { %v5325_v26 = vpop.f32.mrb[60].mxu1  ;;  %v5378_v63 = vpop.f32.mrb[88].mxu0 }
0x17d8   : > { %v5326_v34 = vadd.f32 %v5325_v26, %v9940_v57  ;;  %v5379_v23 = vadd.f32 %v5378_v63, %v9943_v28  ;;  %v5327_v31 = vpop.f32.mrb[61].mxu1  ;;  %v5380_v43 = vpop.f32.mrb[89].mxu0  ;;  %v7739_v26 = vld [vmem:[#allocation20 + $0x1b0] ss:$8 sps:$4 sm:$0xff]   ;;  %v7744_v63 = vld [vmem:[#allocation20 + $0x1c4] ss:$8 sps:$4 sm:$0xff]  }
0x17d9   : > { %v5328_v53 = vadd.f32 %v5327_v31, %v9946_v45  ;;  %v5381_v54 = vadd.f32 %v5380_v43, %v9949_v35  ;;  %v5329_v59 = vpop.f32.mrb[62].mxu1  ;;  %v5382_v30 = vpop.f32.mrb[90].mxu0  ;;  %v7745_v31 = vld [vmem:[#allocation20 + $0x1d0] ss:$8 sps:$4 sm:$0xff]   ;;  %v7750_v43 = vld [vmem:[#allocation20 + $0x1e4] ss:$8 sps:$4 sm:$0xff]  }
0x17da   : > { %v5330_v48 = vadd.f32 %v5329_v59, %v9940_v57  ;;  %v5383_v40 = vadd.f32 %v5382_v30, %v9943_v28  ;;  %v5331_v58 = vpop.f32.mrb[63].mxu1  ;;  %v5384_v62 = vpop.f32.mrb[91].mxu0  ;;  %v5397_v2 = vmax.f32 %v5326_v34, 0.0  ;;  %v5399_v32 = vmax.f32 %v5379_v23, 0.0  ;;  %v7742_v34 = vld [vmem:[#allocation20 + $0x1c0] ss:$8 sps:$4 sm:$0xff]  }
0x17db   : > { %v5332_v3 = vadd.f32 %v5331_v58, %v9946_v45  ;;  %v5385_v20 = vadd.f32 %v5384_v62, %v9949_v35  ;;  %v5398_v14 = vmax.f32 %v5328_v53, 0.0  ;;  %v5400_v33 = vmax.f32 %v5381_v54, 0.0  ;;  %v7747_v23 = vld [vmem:[#allocation20 + $0x1d4] ss:$8 sps:$4 sm:$0xff]   ;;  %v7748_v53 = vld [vmem:[#allocation20 + $0x1e0] ss:$8 sps:$4 sm:$0xff]  }
0x17dc   : > { %v5401_v6 = vmax.f32 %v5330_v48, 0.0  ;;  %v5403_v22 = vmax.f32 %v5383_v40, 0.0  ;;  %v7753_v54 = vld [vmem:[#allocation20 + $0x1f4] ss:$8 sps:$4 sm:$0xff]   ;;  %v7751_v59 = vld [vmem:[#allocation20 + $0x1f0] ss:$8 sps:$4 sm:$0xff]  }
0x17dd   : > { %v5402_v46 = vmax.f32 %v5332_v3, 0.0  ;;  %v5404_v11 = vmax.f32 %v5385_v20, 0.0 }
0x17de   : > { %v5413_v41 = vpack.c.bf16 %v5401_v6, %v5397_v2  ;;  %v9959_v7 = vpack.c.bf16 %v5403_v22, %v5399_v32 }
0x17df   : > { %v5414_v49 = vpack.c.bf16 %v5402_v46, %v5398_v14  ;;  %v9961_v19 = vpack.c.bf16 %v5404_v11, %v5400_v33 }
0x17e1   : > { %5849 = vmatprep.mubr.bf16.mxu1 %v5414_v49 }
0x17e2   : > { %5850 = vmatmul.mubr.bf16.vlgmr.msra.gmra.mrb[68].mxu1 %v5413_v41 }
0x17e3   : > { %5871 = vmatpush1.bf16.msra.mxu1 %v7706_v37 }
0x17e4   : > { %5872 = vmatprep.subr.bf16.mxu1 %v7711_v29 }
0x17e7   : > { %5873 = vmatpush1.bf16.msra.mxu1 %v7709_v51 }
0x17e8   : > { %5874 = vmatprep.subr.bf16.mxu1 %v7714_v47 }
0x17eb   : > { %5875 = vmatpush1.bf16.msra.mxu1 %v7712_v60 }
0x17ec   : > { %5876 = vmatprep.subr.bf16.mxu1 %v7717_v21 }
0x17ef   : > { %5877 = vmatpush1.bf16.msra.mxu1 %v7715_v27 }
0x17f0   : > { %5878 = vmatprep.subr.bf16.mxu1 %v7720_v44 }
0x17f3   : > { %5879 = vmatpush1.bf16.msra.mxu1 %v7718_v52 }
0x17f4   : > { %5880 = vmatprep.subr.bf16.mxu1 %v7723_v42 }
0x17f7   : > { %5881 = vmatpush1.bf16.msra.mxu1 %v7721_v38 }
0x17f8   : > { %5882 = vmatprep.subr.bf16.mxu1 %v7726_v55 }
0x17fb   : > { %5883 = vmatpush1.bf16.msra.mxu1 %v7724_v5 }
0x17fc   : > { %5884 = vmatprep.subr.bf16.mxu1 %v7729_v24 }
0x17ff   : > { %5885 = vmatpush1.bf16.msra.mxu1 %v7727_v39 }
0x1800   : > { %5886 = vmatprep.subr.bf16.mxu1 %v7732_v36 }
0x1803   : > { %5887 = vmatpush1.bf16.msra.mxu1 %v7730_v15 }
0x1804   : > { %5888 = vmatprep.subr.bf16.mxu1 %v7735_v17 }
0x1807   : > { %5889 = vmatpush1.bf16.msra.mxu1 %v7733_v4 }
0x1808   : > { %5890 = vmatprep.subr.bf16.mxu1 %v7738_v10 }
0x180b   : > { %5891 = vmatpush1.bf16.msra.mxu1 %v7736_v56 }
0x180c   : > { %5892 = vmatprep.subr.bf16.mxu1 %v7741_v1 }
0x180f   : > { %5893 = vmatpush1.bf16.msra.mxu1 %v7739_v26 }
0x1810   : > { %5894 = vmatprep.subr.bf16.mxu1 %v7744_v63 }
0x1813   : > { %5895 = vmatpush1.bf16.msra.mxu1 %v7742_v34 }
0x1814   : > { %5896 = vmatprep.subr.bf16.mxu1 %v7747_v23 }
0x1817   : > { %5897 = vmatpush1.bf16.msra.mxu1 %v7745_v31 }
0x1818   : > { %5898 = vmatprep.subr.bf16.mxu1 %v7750_v43 }
0x181b   : > { %5899 = vmatpush1.bf16.msra.mxu1 %v7748_v53 }
0x181c   : > { %5900 = vmatprep.subr.bf16.mxu1 %v7753_v54 }
0x181f   : > { %5901 = vmatpush1.bf16.msra.mxu1 %v7751_v59 }
0x1870   : > { %v5335_v30 = vpop.f32.mrb[64].mxu1  ;;  %v5388_v48 = vpop.f32.mrb[92].mxu0 }
0x1871   : > { %v5336_v40 = vadd.f32 %v5335_v30, %v9940_v57  ;;  %v5389_v58 = vadd.f32 %v5388_v48, %v9943_v28  ;;  %v5337_v62 = vpop.f32.mrb[65].mxu1  ;;  %v5390_v3 = vpop.f32.mrb[93].mxu0 }
0x1872   : > { %v5338_v20 = vadd.f32 %v5337_v62, %v9946_v45  ;;  %v5391_v2 = vadd.f32 %v5390_v3, %v9949_v35  ;;  %v5339_v32 = vpop.f32.mrb[66].mxu1  ;;  %v5392_v6 = vpop.f32.mrb[94].mxu0 }
0x1873   : > { %v5340_v22 = vadd.f32 %v5339_v32, %v9940_v57  ;;  %v5393_v14 = vadd.f32 %v5392_v6, %v9943_v28  ;;  %v5341_v33 = vpop.f32.mrb[67].mxu1  ;;  %v5394_v46 = vpop.f32.mrb[95].mxu0  ;;  %v5405_v49 = vmax.f32 %v5336_v40, 0.0  ;;  %v5407_v37 = vmax.f32 %v5389_v58, 0.0 }
0x1874   : > { %v5342_v11 = vadd.f32 %v5341_v33, %v9946_v45  ;;  %v5395_v41 = vadd.f32 %v5394_v46, %v9949_v35  ;;  %v5406_v47 = vmax.f32 %v5338_v20, 0.0  ;;  %v5408_v60 = vmax.f32 %v5391_v2, 0.0 }
0x1875   : > { %v5409_v29 = vmax.f32 %v5340_v22, 0.0  ;;  %v5411_v51 = vmax.f32 %v5393_v14, 0.0 }
0x1876   : > { %v5410_v21 = vmax.f32 %v5342_v11, 0.0  ;;  %v5412_v57 = vmax.f32 %v5395_v41, 0.0 }
0x1877   : > { %v5417_v27 = vpack.c.bf16 %v5409_v29, %v5405_v49  ;;  %v5419_v28 = vpack.c.bf16 %v5411_v51, %v5407_v37 }
0x1878   : > { %v5418_v44 = vpack.c.bf16 %v5410_v21, %v5406_v47  ;;  %v5420_v52 = vpack.c.bf16 %v5412_v57, %v5408_v60 }
0x187a   : > { %5859 = vmatprep.mubr.bf16.mxu1 %v5418_v44 }
0x187b   : > { %5860 = vmatmul.mubr.bf16.gmra.mrb[72].mxu1 %v5417_v27 }
0x187c   : > { %5902 = vmatprep.mubr.bf16.mxu1 %v9961_v19 }
0x1883   : > { %5903 = vmatmul.mubr.bf16.vlgmr.msra.gmra.mrb[68].mxu1 %v9959_v7 }
0x1884   : > { %5912 = vmatprep.mubr.bf16.mxu1 %v5420_v52 }
0x188b   : > { %5913 = vmatmul.mubr.bf16.gmra.mrb[72].mxu1 %v5419_v28 }
0x188c   : > { %8199 = shalt.err (!%p8196_p7)
}
0x188d   : > { %s8200_s16 = scalar_lea.hbm %s9979_s11, 512  ;;  %s8204_s29 = scalar_lea.hbm %s10328_s5, 1024 }
0x188e   : > { %p8201_p2 = scmp.ne.s32.totalorder %s9979_s11, %s8200_s16  ;;  %p8205_p0 = scmp.lt.u32.totalorder %s9979_s11, %s10328_s5 }
0x188f   : > { %p8206_p3 = scmp.lt.u32.totalorder %s8204_s29, %s8200_s16  ;;  %p8208_p10 = scmp.lt.u32.totalorder %s8200_s16, %s9979_s11 }
0x1890   : > { %p8202_p5 = pnand %p8201_p2, %p10329_p12 }
0x1891   : > { %p8207_p9 = por %p8206_p3, %p8205_p0 }
0x1892   : > { %p8203_p13 = pneg %p8202_p5 }
0x1893   : > { %p8209_p6 = por %p8208_p10, %p8207_p9 }
0x1895   : > { %p8210_p1 = pnand %p8209_p6, %p8203_p13 }
0x1897   : > { %8213 = shalt.err (!%p8210_p1)
}
0x1898   : > { %s8366_s4 = smov 64   ;;  %s8367_s6 = smov 4  }
0x1899   : > { %7040 = dma.vmem_to_hbm [thread:$0]  (%p10329_p12), %s9982_s17, 512, %s9979_s11, %s5945_s12, %s8366_s4, %s8366_s4, %s8367_s6  }
0x189a   : > { %s10330_s3 = sld [smem:[#allocation79_spill]]  ;;  %s5998_s16 = sshll.u32 %s9676_s15, 4  ;;  %s10019_s16 = int_to_ptr.vmem [resolvable:$true] %s5998_s16 }
0x189b   : > { %s8214_s7 = scalar_lea.vmem %s10019_s16, 512  ;;  %s8368_s10 = smov [#allocation25]  }
0x189c   : > { %p8215_p11 = scmp.ne.s32.totalorder %s10019_s16, %s8214_s7  ;;  %s8218_s29 = sshll.u32 %s8368_s10, 4  ;;  %s8219_s29 = int_to_ptr.vmem [resolvable:$false] %s8218_s29 }
0x189d   : > { %s8220_s11 = scalar_lea.vmem %s8219_s29, 1024  ;;  %p8221_p7 = scmp.lt.s32.totalorder %s10019_s16, %s8219_s29 }
0x189e   : > { %p8216_p8 = pnand %p8215_p11, %p10329_p12  ;;  %p8222_p2 = scmp.lt.s32.totalorder %s8220_s11, %s8214_s7 }
0x18a0   : > { %s10331_s25 = smov %s10330_s3  ;;  %s10016_s0 = scalar_lea.hbm %s10330_s3, %s6794_s8 }
0x18a1   : > { %p8217_p4 = pneg %p8216_p8  ;;  %p8223_p5 = por %p8222_p2, %p8221_p7 }
0x18a3   : > { %p8224_p13 = pnand %p8223_p5, %p8217_p4 }
0x18a5   : > { %8227 = shalt.err (!%p8224_p13)
}
0x18a6   : > { %s8228_s15 = scalar_lea.hbm %s10016_s0, 512  ;;  %s8232_s9 = scalar_lea.hbm %s10331_s25, 1024 }
0x18a7   : > { %p8229_p0 = scmp.ne.s32.totalorder %s10016_s0, %s8228_s15  ;;  %p8233_p10 = scmp.lt.u32.totalorder %s10016_s0, %s10331_s25 }
0x18a8   : > { %p8234_p6 = scmp.lt.u32.totalorder %s8232_s9, %s8228_s15  ;;  %p8236_p11 = scmp.lt.u32.totalorder %s8228_s15, %s10016_s0 }
0x18a9   : > { %p8230_p3 = pnand %p8229_p0, %p10329_p12 }
0x18aa   : > { %p8235_p1 = por %p8234_p6, %p8233_p10 }
0x18ab   : > { %p8231_p9 = pneg %p8230_p3 }
0x18ac   : > { %p8237_p8 = por %p8236_p11, %p8235_p1 }
0x18ae   : > { %p8238_p4 = pnand %p8237_p8, %p8231_p9 }
0x18b0   : > { %8241 = shalt.err (!%p8238_p4)
}
0x18b1   : > { %7041 = dma.vmem_to_hbm [thread:$0]  (%p10329_p12), %s10019_s16, 512, %s10016_s0, %s5945_s12, %s8366_s4, %s8366_s4, %s8367_s6  }
0x18b2   : > { %s10332_s7 = sld [smem:[#allocation76_spill]]  ;;  %s1048_s23 = scalar_lea.vmem [#allocation22], %s6304_s13 }
0x18b3   : > { %s5964_s12 = sshll.u32 %s1048_s23, 4  ;;  %s6792_s4 = sshll.u32 %s10274_s27, 10  ;;  %s10060_s12 = int_to_ptr.vmem [resolvable:$true] %s5964_s12 }
0x18b4   : > { %s10333_s0 = sld [smem:[#allocation77_spill]]  ;;  %s5940_s16 = scalar_lea.sflag [#allocation4], %s8922_s21 }
0x18b5   : > { %s8242_s10 = scalar_lea.vmem %s10060_s12, 1024  ;;  %s8369_s29 = smov [#allocation22]  }
0x18b6   : > { %p8243_p7 = scmp.ne.s32.totalorder %s10060_s12, %s8242_s10  ;;  %s8246_s11 = sshll.u32 %s8369_s29, 4  ;;  %s8247_s11 = int_to_ptr.vmem [resolvable:$false] %s8246_s11 }
0x18b7   : > { %s8248_s15 = scalar_lea.vmem %s8247_s11, 2048  ;;  %p8249_p13 = scmp.lt.s32.totalorder %s10060_s12, %s8247_s11 }
0x18b8   : > { %v5485_v45 = vld [vmem:[%s10332_s7] sm:$0x3]  ;;  %p8244_p2 = pnand %p8243_p7, %p10329_p12  ;;  %p8250_p0 = scmp.lt.s32.totalorder %s8248_s15, %s8242_s10 }
0x18b9   : > { %v5490_v35 = vrot.slane %v5485_v45, %v9028_v12  ;;  %v5494_v7 = vrot.slane %v5485_v45, %v9025_v8 }
0x18ba   : > { %s10067_s27 = scalar_lea.hbm %s10333_s0, %s6792_s4  ;;  %p8245_p5 = pneg %p8244_p2 }
0x18bb   : > { %p8251_p3 = por %p8250_p0, %p8249_p13 }
0x18bd   : > { %p8252_p9 = pnand %p8251_p3, %p8245_p5 }
0x1956   : > { %v5904_v19 = vpop.f32.mrb[68].mxu1 }
0x1957   : > { %v6971_v42 = vadd.f32 %v5904_v19, %v5490_v35  ;;  %v5906_v38 = vpop.f32.mrb[69].mxu1 }
0x1958   : > { %v6972_v55 = vadd.f32 %v5906_v38, %v5494_v7  ;;  %v5908_v5 = vpop.f32.mrb[70].mxu1 }
0x1959   : > { %v5923_v24 = vadd.f32 %v6971_v42, %v9841_v13  ;;  %v6973_v39 = vadd.f32 %v5908_v5, %v5490_v35  ;;  %v5910_v36 = vpop.f32.mrb[71].mxu1 }
0x195a   : > { %v5924_v15 = vadd.f32 %v6972_v55, %v9845_v16  ;;  %v6974_v17 = vadd.f32 %v5910_v36, %v5494_v7 }
0x195b   : > { %5931 = vst [vmem:[%s1048_s23] sm:$0xff] %v5923_v24  ;;  %v5925_v12 = vadd.f32 %v6973_v39, %v9849_v18 }
0x195c   : > { %5932 = vst [vmem:[%s1048_s23 + $0x8] sm:$0xff] %v5924_v15  ;;  %v5926_v8 = vadd.f32 %v6974_v17, %v9852_v0 }
0x195d   : > { %5933 = vst [vmem:[%s1048_s23 + $0x10] sm:$0xff] %v5925_v12 }
0x195e   : > { %5934 = vst [vmem:[%s1048_s23 + $0x18] sm:$0xff] %v5926_v8  ;;  %v5914_v4 = vpop.f32.mrb[72].mxu1 }
0x195f   : > { %v6975_v10 = vadd.f32 %v5914_v4, %v5490_v35  ;;  %v5916_v13 = vpop.f32.mrb[73].mxu1 }
0x1960   : > { %v6976_v56 = vadd.f32 %v5916_v13, %v5494_v7  ;;  %v5918_v1 = vpop.f32.mrb[74].mxu1 }
0x1961   : > { %v5927_v16 = vadd.f32 %v6975_v10, %v9869_v9  ;;  %v6977_v26 = vadd.f32 %v5918_v1, %v5490_v35  ;;  %v5920_v63 = vpop.f32.mrb[75].mxu1 }
0x1962   : > { %v5928_v18 = vadd.f32 %v6976_v56, %v9873_v50  ;;  %v6978_v0 = vadd.f32 %v5920_v63, %v5494_v7 }
0x1963   : > { %5935 = vst [vmem:[%s1048_s23 + $0x20] sm:$0xff] %v5927_v16  ;;  %v5929_v34 = vadd.f32 %v6977_v26, %v9877_v25 }
0x1964   : > { %5936 = vst [vmem:[%s1048_s23 + $0x28] sm:$0xff] %v5928_v18  ;;  %v5930_v9 = vadd.f32 %v6978_v0, %v9880_v61 }
0x1965   : > { %5937 = vst [vmem:[%s1048_s23 + $0x30] sm:$0xff] %v5929_v34 }
0x1966   : > { %5938 = vst [vmem:[%s1048_s23 + $0x38] sm:$0xff] %v5930_v9 }
0x1967   : > { %8255 = shalt.err (!%p8252_p9)
}
0x1968   : > { %s8256_s8 = scalar_lea.hbm %s10067_s27, 1024  ;;  %s8260_s1 = scalar_lea.hbm %s10333_s0, 2048 }
0x1969   : > { %p8257_p10 = scmp.ne.s32.totalorder %s10067_s27, %s8256_s8  ;;  %p8261_p11 = scmp.lt.u32.totalorder %s10067_s27, %s10333_s0 }
0x196a   : > { %p8262_p8 = scmp.lt.u32.totalorder %s8260_s1, %s8256_s8  ;;  %p8264_p7 = scmp.lt.u32.totalorder %s8256_s8, %s10067_s27 }
0x196b   : > { %p8258_p6 = pnand %p8257_p10, %p10329_p12 }
0x196c   : > { %p8263_p4 = por %p8262_p8, %p8261_p11 }
0x196d   : > { %p8259_p1 = pneg %p8258_p6 }
0x196e   : > { %p8265_p2 = por %p8264_p7, %p8263_p4 }
0x1970   : > { %p8266_p5 = pnand %p8265_p2, %p8259_p1 }
0x1972   : > { %8269 = shalt.err (!%p8266_p5)
}
0x1973   : > { %s8370_s3 = smov 256   ;;  %s8371_s7 = smov 16  }
0x1974   : > { %7039 = dma.vmem_to_hbm [thread:$0]  (%p10329_p12), %s10060_s12, 1024, %s10067_s27, %s5940_s16, %s8370_s3, %s8370_s3, %s8371_s7  }
0x1975 PF: > { %s10334_s23 = sld [smem:[#allocation36_spill]]  ;;  %s10335_s4 = sld [smem:[#allocation45_spill]] }
0x1976   : > { %p10337_p0 = scmp.ge.s32.totalorder %s8340_s28, 2 }
0x197b   : > { %s6013_s13 = sand.u32 1, %s10334_s23   ;;  %p10336_p13 = scmp.ne.s32.totalorder %s10335_s4, 0 }
0x197c   : > { %s6014_s6 = scalar_lea.sflag [#allocation4], %s6013_s13 }
0x197d   : > { %p7084_p3 = pnand %p10337_p0, %p10336_p13 }
0x197f   : > { %8319 = dma.done.wait (!%p7084_p3), %s6014_s6, 1024  }
0x1980   : > { %8321 = vsyncadd (!%p7084_p3), %s6014_s6, 4294966272  ;;  %s10338_s10 = sadd.s32 4294967294, %s8340_s28  }
0x1981   : > { %s6022_s29 = sand.u32 1, %s10338_s10  }
0x1982   : > { %s6023_s11 = scalar_lea.sflag [#allocation24], %s6022_s29 }
0x1983   : > { %8323 = dma.done.wait (!%p7084_p3), %s6023_s11, 1024  }
0x1984   : > { %8325 = vsyncadd (!%p7084_p3), %s6023_s11, 4294966272  ;;  %s10339_s28 = sld [smem:[#allocation41_spill]]  ;;  %s10340_s27 = sld [smem:[#allocation37_spill]] }
0x1985   : > { %s10341_s3 = sld [smem:[#allocation38_spill]]  ;;  %s10342_s7 = sld [smem:[#allocation42_spill]] }
0x198a   : > { %p53_p12 = scmp.ge.s32.totalorder %s10339_s28, 4  }
0x198c   :  { %55 = sbr.rel (!%p53_p12) target bundleno = 40 (0x28), region = 268 }
0x1993   :  { %6037 = vsyncpa [#allocation3], 1 }
0x1994   :  { %6039 = vsyncpa [#allocation3 + $0x1], 1 }
0x1995   :  { %6040 = vsyncpa [#allocation6], 1 }
0x1996   :  { %6042 = vsyncpa [#allocation6 + $0x1], 1 }
0x1997   :  { %6043 = vsyncpa [#allocation9], 1 }
0x1998   :  { %6045 = vsyncpa [#allocation9 + $0x1], 1 }
0x1999   :  { %6046 = vsyncpa [#allocation12], 1 }
0x199a   :  { %6047 = vsyncpa [#allocation15], 1 }
0x199b   :  { %6048 = vsyncpa [#allocation18], 1 }
0x199c   :  { %6049 = vsyncpa [#allocation21], 1 }
0x199d   :  { %6050 = vsyncpa [#allocation4], 1 }
0x199e   :  { %6052 = vsyncpa [#allocation4 + $0x1], 1 }
0x199f   :  { %6053 = vsyncpa [#allocation24], 1 }
0x19a0   :  { %6055 = vsyncpa [#allocation24 + $0x1], 1 }

</bundles_post_ra>
